<compile_context>
chip_gen: v7x
topology: tpu7x:2x2x1
jax: 0.10.0
libtpu: 0.0.40
codegen_flags: <defaults>
</compile_context>

<pallas_src>
from functools import partial

import jax
import jax.numpy as jnp
from jax.experimental import pallas as pl
from jax.experimental.pallas import tpu as pltpu


LATENT_DIM = 64
H1, H2, H3 = 512, 512, 256
W4_PAD = 128  # lane-width pad for the out_features=1 layer


def _bias_silu(acc_f32, bias_f32, epi_dtype):
    # silu(z) = z * sigmoid(z) = s * (tanh(s) + 1) with s = z / 2.
    # Bias add + halving on the f32 MXU accumulator; tanh and the remaining
    # multiplies in epi_dtype (bf16 on v6e/v7x, f32 on v5e). tanh rides the
    # EUP slot, so VPU cost is ~3 ops/element.
    s = (0.5 * (acc_f32 + bias_f32)).astype(epi_dtype)
    return (s * (jnp.tanh(s) + 1.0)).astype(jnp.bfloat16)


def ebm_kernel(x_ref,
               w1_ref, b1_ref,
               w2_ref, b2_ref,
               w3_ref, b3_ref,
               w4_ref,
               o_ref, *, epi_dtype):
    x = x_ref[...].astype(jnp.bfloat16)                                # [TB, 64]
    h = jnp.dot(x, w1_ref[...], preferred_element_type=jnp.float32)    # [TB, 512]
    h = _bias_silu(h, b1_ref[...], epi_dtype)
    h = jnp.dot(h, w2_ref[...], preferred_element_type=jnp.float32)    # [TB, 512]
    h = _bias_silu(h, b2_ref[...], epi_dtype)
    h = jnp.dot(h, w3_ref[...], preferred_element_type=jnp.float32)    # [TB, 256]
    h = _bias_silu(h, b3_ref[...], epi_dtype)
    # Layer 4 (out_features = 1): W4 is zero-padded to [256, 128] with the real
    # weights in lane 0, so this is a plain MXU matmul (no transposed-h
    # dot_general); only lane 0 of the result is kept.
    e = jnp.dot(h, w4_ref[...], preferred_element_type=jnp.float32)    # [TB, 128]
    o_ref[...] = e[:, 0:1].astype(o_ref.dtype)                         # [TB, 1]


def _epilogue_dtype():
    try:
        kind = jax.devices()[0].device_kind.lower()
    except Exception:
        return jnp.float32
    # bf16 VPU/EUP paths exist on v6e / v7x; be conservative elsewhere (v5e
    # and older have no bf16 elementwise path and are MXU-bound anyway).
    if ("v6" in kind) or ("v7" in kind) or ("7x" in kind):
        return jnp.bfloat16
    return jnp.float32


def _choose_tb(batch):
    # Big tiles amortize the ~0.35 us fixed per-grid-step overhead, but keep
    # >=2 tiles when the batch allows so the ("parallel",) grid axis can shard
    # across both TensorCores on v7x.
    if batch >= 2 * 1024:
        return 1024
    if batch >= 2 * 512:
        return 512
    return 256


@jax.jit
def ebm_forward(x, kernel_params):
    """x: [B, 64] float32.  kernel_params: output of prepare_params()."""
    w1, b1, w2, b2, w3, b3, w4p, b4 = kernel_params
    B, D = x.shape
    assert D == LATENT_DIM

    TB = _choose_tb(B)
    epi_dtype = _epilogue_dtype()

    num_tiles = pl.cdiv(B, TB)
    Bp = num_tiles * TB
    xp = x if Bp == B else jnp.pad(x, ((0, Bp - B), (0, 0)))

    full2d = lambda shape: pl.BlockSpec(shape, lambda i: (0, 0))

    out = pl.pallas_call(
        partial(ebm_kernel, epi_dtype=epi_dtype),
        out_shape=jax.ShapeDtypeStruct((Bp, 1), jnp.float32),
        grid_spec=pltpu.PrefetchScalarGridSpec(
            num_scalar_prefetch=0,
            grid=(num_tiles,),
            in_specs=[
                pl.BlockSpec((TB, LATENT_DIM), lambda i: (i, 0)),   # x batch tile
                full2d((LATENT_DIM, H1)), full2d((1, H1)),          # W1, b1
                full2d((H1, H2)),         full2d((1, H2)),          # W2, b2
                full2d((H2, H3)),         full2d((1, H3)),          # W3, b3
                full2d((H3, W4_PAD)),                               # W4 (lane-0 padded)
            ],
            out_specs=pl.BlockSpec((TB, 1), lambda i: (i, 0)),
        ),
        compiler_params=pltpu.CompilerParams(
            # Batch tiles are independent -> megacore sharding on multi-TC chips.
            dimension_semantics=("parallel",),
            # TB=1024 activation scratch (~10-14 MiB with double buffers) exceeds
            # v5e's 16 MiB scoped default; 48 MiB gives headroom and stays under
            # v7x's 64 MiB physical VMEM.
            vmem_limit_bytes=48 * 1024 * 1024,
        ),
    )(xp, w1, b1, w2, b2, w3, b3, w4p)

    # b4 is a single scalar; fold it into the tiny fused wrapper epilogue
    # instead of shipping a padded (1,1) VMEM block into the kernel.
    energy = out[:B, 0] + b4
    # nn.Sequential output is [B, 1]; .squeeze() drops all size-1 dims.
    return jnp.squeeze(energy)


def init_params(key):
    """f32 params mimicking nn.Linear's U(-1/sqrt(fan_in), 1/sqrt(fan_in))."""
    def linear(key, fan_in, fan_out):
        kw, kb = jax.random.split(key)
        bound = 1.0 / jnp.sqrt(fan_in)
        w = jax.random.uniform(kw, (fan_in, fan_out), jnp.float32, -bound, bound)
        b = jax.random.uniform(kb, (fan_out,), jnp.float32, -bound, bound)
        return w, b

    k1, k2, k3, k4 = jax.random.split(key, 4)
    w1, b1 = linear(k1, LATENT_DIM, H1)
    w2, b2 = linear(k2, H1, H2)
    w3, b3 = linear(k3, H2, H3)
    w4, b4 = linear(k4, H3, 1)
    return (w1, b1, w2, b2, w3, b3, w4, b4)


def prepare_params(params):
    """One-time cast/layout into kernel operands (bf16 weights, f32 biases)."""
    w1, b1, w2, b2, w3, b3, w4, b4 = params
    w4p = jnp.zeros((H3, W4_PAD), jnp.bfloat16).at[:, 0].set(
        w4[:, 0].astype(jnp.bfloat16))
    return (w1.astype(jnp.bfloat16), b1.reshape(1, H1),
            w2.astype(jnp.bfloat16), b2.reshape(1, H2),
            w3.astype(jnp.bfloat16), b3.reshape(1, H3),
            w4p,
            b4.reshape(()))


def ebm_reference(x, params):
    """Pure-f32 JAX mirror of the PyTorch module."""
    w1, b1, w2, b2, w3, b3, w4, b4 = params
    h = jax.nn.silu(x @ w1 + b1)
    h = jax.nn.silu(h @ w2 + b2)
    h = jax.nn.silu(h @ w3 + b3)
    return jnp.squeeze(h @ w4 + b4)


if __name__ == "__main__":
    key = jax.random.PRNGKey(0)
    kp, kx = jax.random.split(key)
    params = init_params(kp)
    kparams = prepare_params(params)

    # Small test batch; padded to a single 256-row tile inside the wrapper.
    B = 8
    x = jax.random.normal(kx, (B, LATENT_DIM), jnp.float32)
    out = jax.block_until_ready(ebm_forward(x, kparams))
    ref = ebm_reference(x, params)
    assert out.shape == (B,), out.shape
    # bf16 matmul operands + (on v6e/v7x) bf16 SiLU epilogue vs f32 reference.
    assert jnp.allclose(out, ref, atol=2e-2, rtol=2e-2), (out, ref)

    # Second check: non-tile-multiple batch exercising padding + 2 grid tiles.
    B2 = 300
    x2 = jax.random.normal(jax.random.fold_in(kx, 1), (B2, LATENT_DIM), jnp.float32)
    out2 = jax.block_until_ready(ebm_forward(x2, kparams))
    ref2 = ebm_reference(x2, params)
    assert out2.shape == (B2,), out2.shape
    assert jnp.allclose(out2, ref2, atol=2e-2, rtol=2e-2)

    print("KERNEL_OK")
</pallas_src>

<mosaic_0001>
module attributes {stable_mosaic.version = 11 : i64} {
  func.func @ebm_kernel(%arg0: i32, %arg1: memref<256x64xf32, #tpu.memory_space<vmem>>, %arg2: memref<64x512xbf16, #tpu.memory_space<vmem>>, %arg3: memref<1x512xf32, #tpu.memory_space<vmem>>, %arg4: memref<512x512xbf16, #tpu.memory_space<vmem>>, %arg5: memref<1x512xf32, #tpu.memory_space<vmem>>, %arg6: memref<512x256xbf16, #tpu.memory_space<vmem>>, %arg7: memref<1x256xf32, #tpu.memory_space<vmem>>, %arg8: memref<256x128xbf16, #tpu.memory_space<vmem>>, %arg9: memref<256x1xf32, #tpu.memory_space<vmem>>) attributes {dimension_semantics = [#tpu.dimension_semantics<parallel>], iteration_bounds = array<i64: 1>, scalar_prefetch = 0 : i64, scratch_operands = 0 : i64, tpu.core_type = #tpu.core_type<tc>, window_params = [{transform_indices = @transform_0, window_bounds = array<i64: 256, 64>}, {pipeline_mode = #tpu.pipeline_mode<synchronous>, transform_indices = @transform_1, window_bounds = array<i64: 64, 512>}, {pipeline_mode = #tpu.pipeline_mode<synchronous>, transform_indices = @transform_2, window_bounds = array<i64: 1, 512>}, {pipeline_mode = #tpu.pipeline_mode<synchronous>, transform_indices = @transform_3, window_bounds = array<i64: 512, 512>}, {pipeline_mode = #tpu.pipeline_mode<synchronous>, transform_indices = @transform_4, window_bounds = array<i64: 1, 512>}, {pipeline_mode = #tpu.pipeline_mode<synchronous>, transform_indices = @transform_5, window_bounds = array<i64: 512, 256>}, {pipeline_mode = #tpu.pipeline_mode<synchronous>, transform_indices = @transform_6, window_bounds = array<i64: 1, 256>}, {pipeline_mode = #tpu.pipeline_mode<synchronous>, transform_indices = @transform_7, window_bounds = array<i64: 256, 128>}, {transform_indices = @transform_8, window_bounds = array<i64: 256, 1>}]} {
    %c0 = arith.constant 0 : index
    %c0_0 = arith.constant 0 : index
    %0 = vector.load %arg1[%c0, %c0_0] : memref<256x64xf32, #tpu.memory_space<vmem>>, vector<256x64xf32>
    %1 = arith.truncf %0 : vector<256x64xf32> to vector<256x64xbf16>
    %c0_1 = arith.constant 0 : index
    %c0_2 = arith.constant 0 : index
    %2 = vector.load %arg2[%c0_1, %c0_2] : memref<64x512xbf16, #tpu.memory_space<vmem>>, vector<64x512xbf16>
    %cst = arith.constant dense<0.000000e+00> : vector<256x512xf32>
    %3 = tpu.matmul %1, %2, %cst {dimension_numbers = #tpu.dot_dimension_numbers<[1], [0], [0], [1], [0, 0, 1, 1], [], []>} : vector<256x64xbf16>, vector<64x512xbf16>, vector<256x512xf32> -> vector<256x512xf32>
    %c0_3 = arith.constant 0 : index
    %c0_4 = arith.constant 0 : index
    %4 = vector.load %arg3[%c0_3, %c0_4] : memref<1x512xf32, #tpu.memory_space<vmem>>, vector<1x512xf32>
    %5 = vector.broadcast %4 : vector<1x512xf32> to vector<256x512xf32>
    %6 = arith.addf %3, %5 : vector<256x512xf32>
    %cst_5 = arith.constant 5.000000e-01 : f32
    %7 = vector.broadcast %cst_5 : f32 to vector<256x512xf32>
    %8 = arith.mulf %7, %6 : vector<256x512xf32>
    %9 = math.tanh %8 : vector<256x512xf32>
    %cst_6 = arith.constant 1.000000e+00 : f32
    %10 = vector.broadcast %cst_6 : f32 to vector<256x512xf32>
    %11 = arith.addf %9, %10 : vector<256x512xf32>
    %12 = arith.mulf %8, %11 : vector<256x512xf32>
    %13 = arith.truncf %12 : vector<256x512xf32> to vector<256x512xbf16>
    %c0_7 = arith.constant 0 : index
    %c0_8 = arith.constant 0 : index
    %14 = vector.load %arg4[%c0_7, %c0_8] : memref<512x512xbf16, #tpu.memory_space<vmem>>, vector<512x512xbf16>
    %cst_9 = arith.constant dense<0.000000e+00> : vector<256x512xf32>
    %15 = tpu.matmul %13, %14, %cst_9 {dimension_numbers = #tpu.dot_dimension_numbers<[1], [0], [0], [1], [0, 0, 1, 1], [], []>} : vector<256x512xbf16>, vector<512x512xbf16>, vector<256x512xf32> -> vector<256x512xf32>
    %c0_10 = arith.constant 0 : index
    %c0_11 = arith.constant 0 : index
    %16 = vector.load %arg5[%c0_10, %c0_11] : memref<1x512xf32, #tpu.memory_space<vmem>>, vector<1x512xf32>
    %17 = vector.broadcast %16 : vector<1x512xf32> to vector<256x512xf32>
    %18 = arith.addf %15, %17 : vector<256x512xf32>
    %cst_12 = arith.constant 5.000000e-01 : f32
    %19 = vector.broadcast %cst_12 : f32 to vector<256x512xf32>
    %20 = arith.mulf %19, %18 : vector<256x512xf32>
    %21 = math.tanh %20 : vector<256x512xf32>
    %cst_13 = arith.constant 1.000000e+00 : f32
    %22 = vector.broadcast %cst_13 : f32 to vector<256x512xf32>
    %23 = arith.addf %21, %22 : vector<256x512xf32>
    %24 = arith.mulf %20, %23 : vector<256x512xf32>
    %25 = arith.truncf %24 : vector<256x512xf32> to vector<256x512xbf16>
    %c0_14 = arith.constant 0 : index
    %c0_15 = arith.constant 0 : index
    %26 = vector.load %arg6[%c0_14, %c0_15] : memref<512x256xbf16, #tpu.memory_space<vmem>>, vector<512x256xbf16>
    %cst_16 = arith.constant dense<0.000000e+00> : vector<256x256xf32>
    %27 = tpu.matmul %25, %26, %cst_16 {dimension_numbers = #tpu.dot_dimension_numbers<[1], [0], [0], [1], [0, 0, 1, 1], [], []>} : vector<256x512xbf16>, vector<512x256xbf16>, vector<256x256xf32> -> vector<256x256xf32>
    %c0_17 = arith.constant 0 : index
    %c0_18 = arith.constant 0 : index
    %28 = vector.load %arg7[%c0_17, %c0_18] : memref<1x256xf32, #tpu.memory_space<vmem>>, vector<1x256xf32>
    %29 = vector.broadcast %28 : vector<1x256xf32> to vector<256x256xf32>
    %30 = arith.addf %27, %29 : vector<256x256xf32>
    %cst_19 = arith.constant 5.000000e-01 : f32
    %31 = vector.broadcast %cst_19 : f32 to vector<256x256xf32>
    %32 = arith.mulf %31, %30 : vector<256x256xf32>
    %33 = math.tanh %32 : vector<256x256xf32>
    %cst_20 = arith.constant 1.000000e+00 : f32
    %34 = vector.broadcast %cst_20 : f32 to vector<256x256xf32>
    %35 = arith.addf %33, %34 : vector<256x256xf32>
    %36 = arith.mulf %32, %35 : vector<256x256xf32>
    %37 = arith.truncf %36 : vector<256x256xf32> to vector<256x256xbf16>
    %c0_21 = arith.constant 0 : index
    %c0_22 = arith.constant 0 : index
    %38 = vector.load %arg8[%c0_21, %c0_22] : memref<256x128xbf16, #tpu.memory_space<vmem>>, vector<256x128xbf16>
    %cst_23 = arith.constant dense<0.000000e+00> : vector<256x128xf32>
    %39 = tpu.matmul %37, %38, %cst_23 {dimension_numbers = #tpu.dot_dimension_numbers<[1], [0], [0], [1], [0, 0, 1, 1], [], []>} : vector<256x256xbf16>, vector<256x128xbf16>, vector<256x128xf32> -> vector<256x128xf32>
    %40 = vector.extract_strided_slice %39 {offsets = [0, 0], sizes = [256, 1], strides = [1, 1]} : vector<256x128xf32> to vector<256x1xf32>
    %c0_24 = arith.constant 0 : index
    %c0_25 = arith.constant 0 : index
    %41 = vector.load %arg9[%c0_24, %c0_25] : memref<256x1xf32, #tpu.memory_space<vmem>>, vector<256x1xf32>
    tpu.vector_store %arg9[%c0_24, %c0_25], %40 {strides = array<i32>} : memref<256x1xf32, #tpu.memory_space<vmem>>, vector<256x1xf32>,
    return
  }
  func.func @transform_0(%arg0: i32) -> (i32, i32) {
    %c0_i32 = arith.constant 0 : i32
    %c0_i32_0 = arith.constant 0 : i32
    return %arg0, %c0_i32 : i32, i32
  }
  func.func @transform_1(%arg0: i32) -> (i32, i32) {
    %c0_i32 = arith.constant 0 : i32
    %c0_i32_0 = arith.constant 0 : i32
    %c0_i32_1 = arith.constant 0 : i32
    return %c0_i32, %c0_i32_0 : i32, i32
  }
  func.func @transform_2(%arg0: i32) -> (i32, i32) {
    %c0_i32 = arith.constant 0 : i32
    %c0_i32_0 = arith.constant 0 : i32
    %c0_i32_1 = arith.constant 0 : i32
    return %c0_i32, %c0_i32_0 : i32, i32
  }
  func.func @transform_3(%arg0: i32) -> (i32, i32) {
    %c0_i32 = arith.constant 0 : i32
    %c0_i32_0 = arith.constant 0 : i32
    %c0_i32_1 = arith.constant 0 : i32
    return %c0_i32, %c0_i32_0 : i32, i32
  }
  func.func @transform_4(%arg0: i32) -> (i32, i32) {
    %c0_i32 = arith.constant 0 : i32
    %c0_i32_0 = arith.constant 0 : i32
    %c0_i32_1 = arith.constant 0 : i32
    return %c0_i32, %c0_i32_0 : i32, i32
  }
  func.func @transform_5(%arg0: i32) -> (i32, i32) {
    %c0_i32 = arith.constant 0 : i32
    %c0_i32_0 = arith.constant 0 : i32
    %c0_i32_1 = arith.constant 0 : i32
    return %c0_i32, %c0_i32_0 : i32, i32
  }
  func.func @transform_6(%arg0: i32) -> (i32, i32) {
    %c0_i32 = arith.constant 0 : i32
    %c0_i32_0 = arith.constant 0 : i32
    %c0_i32_1 = arith.constant 0 : i32
    return %c0_i32, %c0_i32_0 : i32, i32
  }
  func.func @transform_7(%arg0: i32) -> (i32, i32) {
    %c0_i32 = arith.constant 0 : i32
    %c0_i32_0 = arith.constant 0 : i32
    %c0_i32_1 = arith.constant 0 : i32
    return %c0_i32, %c0_i32_0 : i32, i32
  }
  func.func @transform_8(%arg0: i32) -> (i32, i32) {
    %c0_i32 = arith.constant 0 : i32
    %c0_i32_0 = arith.constant 0 : i32
    return %arg0, %c0_i32 : i32, i32
  }
}

</mosaic_0001>

<bundles_post_ra>
// kernel: ebm_forward.1
= control target key start
LH: loop header
LB: loop body
LE: loop exit
PB: predicated region body
PF: predicated region fallthrough
CT: control target
= control target key end

     0   :  { %13 = vsyncpa [#allocation3], 0  ;;  %s9674_s0 = inlined_call_operand.vmem [shape: f32[256,64], index: 0, kind: input, shape index: {}]   ;;  %s9675_s1 = inlined_call_operand.vmem [shape: bf16[64,512], index: 1, kind: input, shape index: {}]   ;;  %s9676_s2 = inlined_call_operand.vmem [shape: f32[1,512], index: 2, kind: input, shape index: {}]   ;;  %s9677_s3 = inlined_call_operand.hbm [shape: bf16[512,512], index: 3, kind: input, shape index: {}]   ;;  %s9678_s4 = inlined_call_operand.vmem [shape: f32[1,512], index: 4, kind: input, shape index: {}]   ;;  %s9679_s5 = inlined_call_operand.hbm [shape: bf16[512,256], index: 5, kind: input, shape index: {}]   ;;  %s9680_s6 = inlined_call_operand.vmem [shape: f32[1,256], index: 6, kind: input, shape index: {}]   ;;  %s9681_s7 = inlined_call_operand.vmem [shape: bf16[256,128], index: 7, kind: input, shape index: {}]   ;;  %s9682_s8 = inlined_call_operand.vmem [shape: f32[256,1], index: 8, kind: output, shape index: {}]  }
   0x1   :  { %14 = vsyncpa [#allocation5], 0  ;;  %s6554_s27 = smov [#allocation2]   ;;  %s6506_s9 = scalar_lea.hbm %s9677_s3, 16384 }
   0x2   :  { %s26_s28 = sshll.u32 %s6554_s27, 4  ;;  %p6507_p0 = scmp.ne.s32.totalorder %s9677_s3, %s6506_s9  ;;  %s27_s28 = int_to_ptr.vmem [resolvable:$true] %s26_s28 }
   0x3   :  { %p6510_p1 = scmp.lt.u32.totalorder %s6506_s9, %s9677_s3 }
   0x5   :  { %p6512_p2 = pnand %p6510_p1, %p6507_p0 }
   0x7   :  { %6515 = shalt.err (!%p6512_p2)
}
   0x8   :  { %s6516_s14 = scalar_lea.vmem %s27_s28, 16384  ;;  %p6521_p4 = scmp.lt.s32.totalorder %s27_s28, %s27_s28 }
   0x9   :  { %p6517_p3 = scmp.ne.s32.totalorder %s27_s28, %s6516_s14  ;;  %p6522_p5 = scmp.lt.s32.totalorder %s6516_s14, %s6516_s14 }
   0xb   :  { %p6523_p6 = por %p6522_p5, %p6521_p4 }
   0xd   :  { %p6524_p7 = pnand %p6523_p6, %p6517_p3 }
   0xf   :  { %6527 = shalt.err (!%p6524_p7)
}
  0x10   :  { %s6555_s15 = smov 256   ;;  %s6556_s16 = smov 16  }
  0x11   :  { %32 = dma.hbm_to_vmem [thread:$0]  %s9677_s3, 16384, %s27_s28, [#allocation3], %s6555_s15, %s6555_s15, %s6556_s16  }
  0x12   :  { %s6557_s19 = smov [#allocation4]   ;;  %s6528_s23 = scalar_lea.hbm %s9679_s5, 8192 }
  0x13   :  { %s40_s20 = sshll.u32 %s6557_s19, 4  ;;  %p6529_p8 = scmp.ne.s32.totalorder %s9679_s5, %s6528_s23  ;;  %s41_s20 = int_to_ptr.vmem [resolvable:$true] %s40_s20 }
  0x14   :  { %p6532_p9 = scmp.lt.u32.totalorder %s6528_s23, %s9679_s5 }
  0x16   :  { %p6534_p10 = pnand %p6532_p9, %p6529_p8 }
  0x18   :  { %6537 = shalt.err (!%p6534_p10)
}
  0x19   :  { %s6538_s29 = scalar_lea.vmem %s41_s20, 8192  ;;  %p6543_p12 = scmp.lt.s32.totalorder %s41_s20, %s41_s20 }
  0x1a   :  { %p6539_p11 = scmp.ne.s32.totalorder %s41_s20, %s6538_s29  ;;  %p6544_p13 = scmp.lt.s32.totalorder %s6538_s29, %s6538_s29 }
  0x1c   :  { %p6545_p0 = por %p6544_p13, %p6543_p12 }
  0x1e   :  { %p6546_p1 = pnand %p6545_p0, %p6539_p11 }
  0x20   :  { %6549 = shalt.err (!%p6546_p1)
}
  0x21   :  { %s6558_s3 = smov 128   ;;  %s6559_s28 = smov 8  }
  0x22   :  { %46 = dma.hbm_to_vmem [thread:$0]  %s9679_s5, 8192, %s41_s20, [#allocation5], %s6558_s3, %s6558_s3, %s6559_s28  }
  0x23   :  { %6550 = dma.done.wait [#allocation3], 16384  }
  0x24   :  { %6551 = vsyncadd [#allocation3], 4294950912 }
  0x25   :  { %6552 = dma.done.wait [#allocation5], 8192  }
  0x26   :  { %6553 = vsyncadd [#allocation5], 4294959104  ;;  %v6560_v0 = vmov 0   ;;  %v5538_v1 = vld [vmem:[%s9675_s1 + $0x4] ss:$16 sps:$4 sm:$0xff]   ;;  %v59_v10 = vld [vmem:[%s9674_s0 + $0x8] sm:$0xff] }
  0x27   :  { %305 = vmatprep.mubr.bf16.mxu0 %v6560_v0  ;;  %385 = vmatprep.mubr.bf16.mxu1 %v6560_v0  ;;  %v5540_v2 = vld [vmem:[%s9675_s1] ss:$16 sps:$4 sm:$0xff]   ;;  %v5541_v3 = vld [vmem:[%s9675_s1 + $0x24] ss:$16 sps:$4 sm:$0xff]   ;;  %v75_v12 = vld [vmem:[%s9674_s0 + $0x88] sm:$0xff]  ;;  %vm224_vm0 = vcmask 523264  }
  0x28   :  { %273 = vmatprep.subr.bf16.mxu0 %v5538_v1  ;;  %5139 = vmatprep.subr.bf16.mxu1 %v5538_v1  ;;  %v5543_v4 = vld [vmem:[%s9675_s1 + $0x20] ss:$16 sps:$4 sm:$0xff]   ;;  %v5544_v5 = vld [vmem:[%s9675_s1 + $0x44] ss:$16 sps:$4 sm:$0xff]   ;;  %v5552_v13 = vld [vmem:[%s9675_s1 + $0xc] ss:$16 sps:$4 sm:$0xff]  }
  0x29   :  { %274 = vmatpush1.bf16.msra.mxu0 %v5540_v2  ;;  %5143 = vmatpush1.bf16.msra.mxu1 %v5540_v2  ;;  %v5546_v6 = vld [vmem:[%s9675_s1 + $0x40] ss:$16 sps:$4 sm:$0xff]   ;;  %v5547_v7 = vld [vmem:[%s9675_s1 + $0x64] ss:$16 sps:$4 sm:$0xff]   ;;  %v5550_v16 = vld [vmem:[%s9675_s1 + $0x8] ss:$16 sps:$4 sm:$0xff]  }
  0x2a   :  { %275 = vmatprep.subr.bf16.mxu0 %v5541_v3  ;;  %5140 = vmatprep.subr.bf16.mxu1 %v5541_v3  ;;  %v5549_v8 = vld [vmem:[%s9675_s1 + $0x60] ss:$16 sps:$4 sm:$0xff]   ;;  %v5555_v17 = vld [vmem:[%s9675_s1 + $0x2c] ss:$16 sps:$4 sm:$0xff]   ;;  %v5553_v22 = vld [vmem:[%s9675_s1 + $0x28] ss:$16 sps:$4 sm:$0xff]  }
  0x2b   :  { %v58_v9 = vld [vmem:[%s9674_s0] sm:$0xff]  ;;  %v60_v18 = vld [vmem:[%s9674_s0 + $0x10] sm:$0xff]  ;;  %v61_v19 = vld [vmem:[%s9674_s0 + $0x18] sm:$0xff]  ;;  %vm4732_vm1 = vcmask 7168  }
  0x2c   :  { %v74_v11 = vld [vmem:[%s9674_s0 + $0x80] sm:$0xff]  ;;  %v6671_v14 = vpack.c.bf16 %v59_v10, %v58_v9  ;;  %v76_v20 = vld [vmem:[%s9674_s0 + $0x90] sm:$0xff]  ;;  %v77_v21 = vld [vmem:[%s9674_s0 + $0x98] sm:$0xff]  ;;  %v6705_v24 = vpack.c.bf16 %v61_v19, %v60_v18 }
  0x2d   :  { %276 = vmatpush1.bf16.msra.mxu0 %v5543_v4  ;;  %5144 = vmatpush1.bf16.msra.mxu1 %v5543_v4  ;;  %v6673_v15 = vpack.c.bf16 %v75_v12, %v74_v11  ;;  %v5558_v23 = vld [vmem:[%s9675_s1 + $0x4c] ss:$16 sps:$4 sm:$0xff]   ;;  %v6707_v25 = vpack.c.bf16 %v77_v21, %v76_v20  ;;  %v5562_v26 = vld [vmem:[#allocation2] ss:$16 sps:$4 sm:$0xff]   ;;  %v5564_v27 = vld [vmem:[#allocation2 + $0x4] ss:$16 sps:$4 sm:$0xff]  }
  0x2e   :  { %277 = vmatprep.subr.bf16.mxu0 %v5544_v5  ;;  %5141 = vmatprep.subr.bf16.mxu1 %v5544_v5  ;;  %v5556_v28 = vld [vmem:[%s9675_s1 + $0x48] ss:$16 sps:$4 sm:$0xff]   ;;  %v5561_v29 = vld [vmem:[%s9675_s1 + $0x6c] ss:$16 sps:$4 sm:$0xff]   ;;  %v5568_v30 = vld [vmem:[#allocation2 + $0x20] ss:$16 sps:$4 sm:$0xff]  }
  0x2f   :  { %v62_v31 = vld [vmem:[%s9674_s0 + $0x20] sm:$0xff]  ;;  %v63_v32 = vld [vmem:[%s9674_s0 + $0x28] sm:$0xff]  ;;  %v64_v43 = vld [vmem:[%s9674_s0 + $0x30] sm:$0xff] }
  0x30   :  { %v5570_v33 = vld [vmem:[#allocation2 + $0x24] ss:$16 sps:$4 sm:$0xff]   ;;  %v79_v35 = vld [vmem:[%s9674_s0 + $0xa8] sm:$0xff]  ;;  %v5574_v39 = vld [vmem:[#allocation2 + $0x40] ss:$16 sps:$4 sm:$0xff]   ;;  %v6736_v40 = vpack.c.bf16 %v63_v32, %v62_v31 }
  0x31   :  { %278 = vmatpush1.bf16.msra.mxu0 %v5546_v6  ;;  %5145 = vmatpush1.bf16.msra.mxu1 %v5546_v6  ;;  %v78_v34 = vld [vmem:[%s9674_s0 + $0xa0] sm:$0xff]  ;;  %v5559_v36 = vld [vmem:[%s9675_s1 + $0x68] ss:$16 sps:$4 sm:$0xff]   ;;  %v5567_v38 = vld [vmem:[#allocation2 + $0xc] ss:$16 sps:$4 sm:$0xff]  }
  0x32   :  { %279 = vmatprep.subr.bf16.mxu0 %v5547_v7  ;;  %5142 = vmatprep.subr.bf16.mxu1 %v5547_v7  ;;  %v5576_v37 = vld [vmem:[#allocation2 + $0x44] ss:$16 sps:$4 sm:$0xff]   ;;  %v6738_v41 = vpack.c.bf16 %v79_v35, %v78_v34  ;;  %v5580_v44 = vld [vmem:[#allocation2 + $0x60] ss:$16 sps:$4 sm:$0xff]   ;;  %v65_v45 = vld [vmem:[%s9674_s0 + $0x38] sm:$0xff] }
  0x33   :  { %v5582_v42 = vld [vmem:[#allocation2 + $0x64] ss:$16 sps:$4 sm:$0xff]   ;;  %v81_v48 = vld [vmem:[%s9674_s0 + $0xb8] sm:$0xff]  ;;  %v5586_v49 = vld [vmem:[#allocation2 + $0x80] ss:$16 sps:$4 sm:$0xff]   ;;  %v6758_v50 = vpack.c.bf16 %v65_v45, %v64_v43 }
  0x34   :  { %v5588_v46 = vld [vmem:[#allocation2 + $0x84] ss:$16 sps:$4 sm:$0xff]   ;;  %v5592_v53 = vld [vmem:[#allocation2 + $0xa0] ss:$16 sps:$4 sm:$0xff]   ;;  %v67_v56 = vld [vmem:[%s9674_s0 + $0x48] sm:$0xff] }
  0x35   :  { %280 = vmatpush1.bf16.msra.mxu0 %v5549_v8  ;;  %5146 = vmatpush1.bf16.msra.mxu1 %v5549_v8  ;;  %v80_v47 = vld [vmem:[%s9674_s0 + $0xb0] sm:$0xff]  ;;  %v66_v54 = vld [vmem:[%s9674_s0 + $0x40] sm:$0xff]  ;;  %v83_v58 = vld [vmem:[%s9674_s0 + $0xc8] sm:$0xff] }
  0x36   :  { %466 = vmatprep.subr.bf16.mxu1 %v5552_v13  ;;  %2025 = vmatprep.subr.bf16.mxu0 %v5564_v27  ;;  %v6760_v51 = vpack.c.bf16 %v81_v48, %v80_v47  ;;  %v5594_v52 = vld [vmem:[#allocation2 + $0xa4] ss:$16 sps:$4 sm:$0xff]   ;;  %v5598_v59 = vld [vmem:[#allocation2 + $0xc0] ss:$16 sps:$4 sm:$0xff]   ;;  %v6780_v60 = vpack.c.bf16 %v67_v56, %v66_v54  ;;  %v69_v3 = vld [vmem:[%s9674_s0 + $0x58] sm:$0xff] }
  0x37   :  { %v5600_v55 = vld [vmem:[#allocation2 + $0xc4] ss:$16 sps:$4 sm:$0xff]   ;;  %v5604_v63 = vld [vmem:[#allocation2 + $0xe0] ss:$16 sps:$4 sm:$0xff]   ;;  %v85_v5 = vld [vmem:[%s9674_s0 + $0xd8] sm:$0xff] }
  0x38   :  { %4787 = vmatmul.mubr.msk.bf16.vlgmr.msra.gmra.mrb[0].mxu0 %vm224_vm0, %v6671_v14  ;;  %4795 = vmatmul.mubr.msk.bf16.vlgmr.msra.gmra.mrb[0].mxu1 %vm224_vm0, %v6673_v15  ;;  %v82_v57 = vld [vmem:[%s9674_s0 + $0xc0] sm:$0xff]  ;;  %v68_v1 = vld [vmem:[%s9674_s0 + $0x50] sm:$0xff]  ;;  %v71_v12 = vld [vmem:[%s9674_s0 + $0x68] sm:$0xff] }
  0x39   :  { %315 = vmatprep.mubr.bf16.mxu0 %v6560_v0  ;;  %395 = vmatprep.mubr.bf16.mxu1 %v6560_v0  ;;  %v6782_v61 = vpack.c.bf16 %v83_v58, %v82_v57  ;;  %v5606_v62 = vld [vmem:[#allocation2 + $0xe4] ss:$16 sps:$4 sm:$0xff]   ;;  %v5610_v6 = vld [vmem:[#allocation2 + $0x100] ss:$16 sps:$4 sm:$0xff]   ;;  %v6802_v7 = vpack.c.bf16 %v69_v3, %v68_v1  ;;  %v73_v20 = vld [vmem:[%s9674_s0 + $0x78] sm:$0xff] }
  0x3a   :  { %467 = vmatpush1.bf16.msra.mxu1 %v5550_v16  ;;  %2026 = vmatpush1.bf16.msra.mxu0 %v5562_v26  ;;  %v5612_v2 = vld [vmem:[#allocation2 + $0x104] ss:$16 sps:$4 sm:$0xff]   ;;  %v5616_v10 = vld [vmem:[#allocation2 + $0x120] ss:$16 sps:$4 sm:$0xff]   ;;  %v87_v16 = vld [vmem:[%s9674_s0 + $0xe8] sm:$0xff] }
  0x3b   :  { %468 = vmatprep.subr.bf16.mxu1 %v5555_v17  ;;  %2027 = vmatprep.subr.bf16.mxu0 %v5570_v33  ;;  %v84_v4 = vld [vmem:[%s9674_s0 + $0xd0] sm:$0xff]  ;;  %v70_v11 = vld [vmem:[%s9674_s0 + $0x60] sm:$0xff]  ;;  %v5565_v27 = vld [vmem:[#allocation2 + $0x8] ss:$16 sps:$4 sm:$0xff]  }
  0x3c   :  { %v6804_v8 = vpack.c.bf16 %v85_v5, %v84_v4  ;;  %v5618_v9 = vld [vmem:[#allocation2 + $0x124] ss:$16 sps:$4 sm:$0xff]   ;;  %v6824_v17 = vpack.c.bf16 %v71_v12, %v70_v11  ;;  %v5577_v31 = vld [vmem:[#allocation2 + $0x48] ss:$16 sps:$4 sm:$0xff]   ;;  %v5585_v32 = vld [vmem:[#allocation2 + $0x6c] ss:$16 sps:$4 sm:$0xff]  }
  0x3d   :  { %v86_v13 = vld [vmem:[%s9674_s0 + $0xe0] sm:$0xff]  ;;  %v72_v19 = vld [vmem:[%s9674_s0 + $0x70] sm:$0xff]  ;;  %v5583_v33 = vld [vmem:[#allocation2 + $0x68] ss:$16 sps:$4 sm:$0xff]  }
  0x3e   :  { %469 = vmatpush1.bf16.msra.mxu1 %v5553_v22  ;;  %2028 = vmatpush1.bf16.msra.mxu0 %v5568_v30  ;;  %v6826_v18 = vpack.c.bf16 %v87_v16, %v86_v13  ;;  %v88_v21 = vld [vmem:[%s9674_s0 + $0xf0] sm:$0xff]  ;;  %v89_v22 = vld [vmem:[%s9674_s0 + $0xf8] sm:$0xff] }
  0x3f   :  { %470 = vmatprep.subr.bf16.mxu1 %v5558_v23  ;;  %2029 = vmatprep.subr.bf16.mxu0 %v5576_v37  ;;  %v6846_v23 = vpack.c.bf16 %v73_v20, %v72_v19  ;;  %v6848_v26 = vpack.c.bf16 %v89_v22, %v88_v21  ;;  %v5579_v30 = vld [vmem:[#allocation2 + $0x4c] ss:$16 sps:$4 sm:$0xff]   ;;  %v5589_v35 = vld [vmem:[#allocation2 + $0x88] ss:$16 sps:$4 sm:$0xff]   ;;  %v5636_v47 = vld [vmem:[#allocation2 + $0x184] ss:$16 sps:$4 sm:$0xff]  }
  0x40   :  { %4788 = vmatmul.mubr.msk.bf16.gmra.mrb[4].mxu0 %vm224_vm0, %v6705_v24  ;;  %4796 = vmatmul.mubr.msk.bf16.gmra.mrb[4].mxu1 %vm224_vm0, %v6707_v25  ;;  %v5591_v34 = vld [vmem:[#allocation2 + $0x8c] ss:$16 sps:$4 sm:$0xff]   ;;  %v5607_v43 = vld [vmem:[#allocation2 + $0xe8] ss:$16 sps:$4 sm:$0xff]   ;;  %v5646_v56 = vld [vmem:[#allocation2 + $0x1c0] ss:$16 sps:$4 sm:$0xff]  }
  0x41   :  { %325 = vmatprep.mubr.bf16.mxu0 %v6560_v0  ;;  %405 = vmatprep.mubr.bf16.mxu1 %v6560_v0  ;;  %v5603_v37 = vld [vmem:[#allocation2 + $0xcc] ss:$16 sps:$4 sm:$0xff]   ;;  %v5625_v57 = vld [vmem:[#allocation2 + $0x148] ss:$16 sps:$4 sm:$0xff]  }
  0x42   :  { %471 = vmatpush1.bf16.msra.mxu1 %v5556_v28  ;;  %2030 = vmatpush1.bf16.msra.mxu0 %v5574_v39  ;;  %v5573_v28 = vld [vmem:[#allocation2 + $0x2c] ss:$16 sps:$4 sm:$0xff]   ;;  %v5637_v1 = vld [vmem:[#allocation2 + $0x188] ss:$16 sps:$4 sm:$0xff]  }
  0x43   :  { %472 = vmatprep.subr.bf16.mxu1 %v5561_v29  ;;  %2031 = vmatprep.subr.bf16.mxu0 %v5582_v42  ;;  %v5571_v29 = vld [vmem:[#allocation2 + $0x28] ss:$16 sps:$4 sm:$0xff]   ;;  %v5609_v39 = vld [vmem:[#allocation2 + $0xec] ss:$16 sps:$4 sm:$0xff]   ;;  %v5622_v42 = vld [vmem:[#allocation2 + $0x140] ss:$16 sps:$4 sm:$0xff]  }
  0x44   :  { %v5615_v45 = vld [vmem:[#allocation2 + $0x10c] ss:$16 sps:$4 sm:$0xff]   ;;  %v5643_v3 = vld [vmem:[#allocation2 + $0x1a8] ss:$16 sps:$4 sm:$0xff]  }
  0x45   :  { %v5621_v48 = vld [vmem:[#allocation2 + $0x12c] ss:$16 sps:$4 sm:$0xff]   ;;  %v5649_v5 = vld [vmem:[#allocation2 + $0x1c8] ss:$16 sps:$4 sm:$0xff]  }
  0x46   :  { %473 = vmatpush1.bf16.msra.mxu1 %v5559_v36  ;;  %2032 = vmatpush1.bf16.msra.mxu0 %v5580_v44  ;;  %v5595_v36 = vld [vmem:[#allocation2 + $0xa8] ss:$16 sps:$4 sm:$0xff]   ;;  %v5630_v44 = vld [vmem:[#allocation2 + $0x164] ss:$16 sps:$4 sm:$0xff]   ;;  %v5627_v54 = vld [vmem:[#allocation2 + $0x14c] ss:$16 sps:$4 sm:$0xff]  }
  0x47   :  { %2411 = vmatprep.subr.bf16.mxu1 %v5567_v38  ;;  %2033 = vmatprep.subr.bf16.mxu0 %v5588_v46  ;;  %v5601_v38 = vld [vmem:[#allocation2 + $0xc8] ss:$16 sps:$4 sm:$0xff]   ;;  %v5633_v58 = vld [vmem:[#allocation2 + $0x16c] ss:$16 sps:$4 sm:$0xff]  }
  0x48   :  { %4789 = vmatmul.mubr.msk.bf16.gmra.mrb[8].mxu0 %vm224_vm0, %v6736_v40  ;;  %4797 = vmatmul.mubr.msk.bf16.gmra.mrb[8].mxu1 %vm224_vm0, %v6738_v41  ;;  %v5613_v46 = vld [vmem:[#allocation2 + $0x108] ss:$16 sps:$4 sm:$0xff]   ;;  %v5651_v4 = vld [vmem:[#allocation2 + $0x1cc] ss:$16 sps:$4 sm:$0xff]  }
  0x49   :  { %335 = vmatprep.mubr.bf16.mxu0 %v6560_v0  ;;  %415 = vmatprep.mubr.bf16.mxu1 %v6560_v0 }
  0x4a   :  { %2034 = vmatpush1.bf16.msra.mxu0 %v5586_v49  ;;  %v5634_v49 = vld [vmem:[#allocation2 + $0x180] ss:$16 sps:$4 sm:$0xff]  }
  0x4b   :  { %2035 = vmatprep.subr.bf16.mxu0 %v5594_v52  ;;  %v5642_v52 = vld [vmem:[#allocation2 + $0x1a4] ss:$16 sps:$4 sm:$0xff]  }
  0x4e   :  { %2036 = vmatpush1.bf16.msra.mxu0 %v5592_v53  ;;  %v5619_v53 = vld [vmem:[#allocation2 + $0x128] ss:$16 sps:$4 sm:$0xff]  }
  0x4f   :  { %2037 = vmatprep.subr.bf16.mxu0 %v5600_v55  ;;  %v5648_v55 = vld [vmem:[#allocation2 + $0x1c4] ss:$16 sps:$4 sm:$0xff]  }
  0x50   :  { %4790 = vmatmul.mubr.msk.bf16.gmra.mrb[12].mxu0 %vm224_vm0, %v6758_v50  ;;  %4798 = vmatmul.mubr.msk.bf16.gmra.mrb[12].mxu1 %vm224_vm0, %v6760_v51 }
  0x51   :  { %345 = vmatprep.mubr.bf16.mxu0 %v6560_v0  ;;  %425 = vmatprep.mubr.bf16.mxu1 %v6560_v0 }
  0x52   :  { %2038 = vmatpush1.bf16.msra.mxu0 %v5598_v59  ;;  %v5654_v59 = vld [vmem:[#allocation2 + $0x1e4] ss:$16 sps:$4 sm:$0xff]  }
  0x53   :  { %2039 = vmatprep.subr.bf16.mxu0 %v5606_v62  ;;  %v5631_v62 = vld [vmem:[#allocation2 + $0x168] ss:$16 sps:$4 sm:$0xff]  }
  0x56   :  { %2040 = vmatpush1.bf16.msra.mxu0 %v5604_v63  ;;  %v5639_v63 = vld [vmem:[#allocation2 + $0x18c] ss:$16 sps:$4 sm:$0xff]  }
  0x57   :  { %2041 = vmatprep.subr.bf16.mxu0 %v5612_v2  ;;  %v5645_v2 = vld [vmem:[#allocation2 + $0x1ac] ss:$16 sps:$4 sm:$0xff]  }
  0x58   :  { %4791 = vmatmul.mubr.msk.bf16.gmra.mrb[16].mxu0 %vm224_vm0, %v6780_v60  ;;  %4799 = vmatmul.mubr.msk.bf16.gmra.mrb[16].mxu1 %vm224_vm0, %v6782_v61 }
  0x59   :  { %355 = vmatprep.mubr.bf16.mxu0 %v6560_v0  ;;  %435 = vmatprep.mubr.bf16.mxu1 %v6560_v0 }
  0x5a   :  { %2042 = vmatpush1.bf16.msra.mxu0 %v5610_v6  ;;  %v5657_v6 = vld [vmem:[#allocation2 + $0x1ec] ss:$16 sps:$4 sm:$0xff]  }
  0x5b   :  { %2043 = vmatprep.subr.bf16.mxu0 %v5618_v9  ;;  %v5660_v9 = vld [vmem:[#allocation2 + $0x204] ss:$16 sps:$4 sm:$0xff]  }
  0x5e   :  { %2044 = vmatpush1.bf16.msra.mxu0 %v5616_v10 }
  0x60   :  { %4792 = vmatmul.mubr.msk.bf16.gmra.mrb[20].mxu0 %vm224_vm0, %v6802_v7  ;;  %4800 = vmatmul.mubr.msk.bf16.gmra.mrb[20].mxu1 %vm224_vm0, %v6804_v8 }
  0x61   :  { %365 = vmatprep.mubr.bf16.mxu0 %v6560_v0  ;;  %445 = vmatprep.mubr.bf16.mxu1 %v6560_v0 }
  0x68   :  { %4793 = vmatmul.mubr.msk.bf16.gmra.mrb[24].mxu0 %vm224_vm0, %v6824_v17  ;;  %4801 = vmatmul.mubr.msk.bf16.gmra.mrb[24].mxu1 %vm224_vm0, %v6826_v18 }
  0x69   :  { %375 = vmatprep.mubr.bf16.mxu0 %v6560_v0  ;;  %455 = vmatprep.mubr.bf16.mxu1 %v6560_v0 }
  0x70   :  { %4794 = vmatmul.mubr.msk.bf16.gmra.mrb[28].mxu0 %vm224_vm0, %v6846_v23  ;;  %4802 = vmatmul.mubr.msk.bf16.gmra.mrb[28].mxu1 %vm224_vm0, %v6848_v26 }
  0x71   :  { %498 = vmatprep.mubr.bf16.mxu1 %v6560_v0 }
  0x78   :  { %4803 = vmatmul.mubr.msk.bf16.vlgmr.msra.gmra.mrb[32].mxu1 %vm224_vm0, %v6671_v14  ;;  %v5597_v14 = vld [vmem:[#allocation2 + $0xac] ss:$16 sps:$4 sm:$0xff]  }
  0x79   :  { %508 = vmatprep.mubr.bf16.mxu1 %v6560_v0  ;;  %2412 = vmatpush1.bf16.msra.mxu1 %v5565_v27 }
  0x7a   :  { %2413 = vmatprep.subr.bf16.mxu1 %v5573_v28 }
  0x7d   :  { %2414 = vmatpush1.bf16.msra.mxu1 %v5571_v29 }
  0x7e   :  { %2415 = vmatprep.subr.bf16.mxu1 %v5579_v30 }
  0x80   :  { %4804 = vmatmul.mubr.msk.bf16.gmra.mrb[36].mxu1 %vm224_vm0, %v6705_v24  ;;  %v5624_v24 = vld [vmem:[#allocation2 + $0x144] ss:$16 sps:$4 sm:$0xff]  }
  0x81   :  { %518 = vmatprep.mubr.bf16.mxu1 %v6560_v0  ;;  %2416 = vmatpush1.bf16.msra.mxu1 %v5577_v31 }
  0x82   :  { %2417 = vmatprep.subr.bf16.mxu1 %v5585_v32  ;;  %2045 = vmatprep.subr.bf16.mxu0 %v5624_v24 }
  0x83   :  { %2046 = vmatpush1.bf16.msra.mxu0 %v5622_v42 }
  0x84   :  { %2047 = vmatprep.subr.bf16.mxu0 %v5630_v44 }
  0x85   :  { %2418 = vmatpush1.bf16.msra.mxu1 %v5583_v33 }
  0x86   :  { %2419 = vmatprep.subr.bf16.mxu1 %v5591_v34 }
  0x88   :  { %4805 = vmatmul.mubr.msk.bf16.gmra.mrb[40].mxu1 %vm224_vm0, %v6736_v40  ;;  %v5628_v40 = vld [vmem:[#allocation2 + $0x160] ss:$16 sps:$4 sm:$0xff]  }
  0x89   :  { %528 = vmatprep.mubr.bf16.mxu1 %v6560_v0  ;;  %2420 = vmatpush1.bf16.msra.mxu1 %v5589_v35 }
  0x8a   :  { %2421 = vmatprep.subr.bf16.mxu1 %v5597_v14  ;;  %2048 = vmatpush1.bf16.msra.mxu0 %v5628_v40 }
  0x8b   :  { %2049 = vmatprep.subr.bf16.mxu0 %v5636_v47 }
  0x8d   :  { %2422 = vmatpush1.bf16.msra.mxu1 %v5595_v36 }
  0x8e   :  { %2423 = vmatprep.subr.bf16.mxu1 %v5603_v37  ;;  %2050 = vmatpush1.bf16.msra.mxu0 %v5634_v49 }
  0x8f   :  { %2051 = vmatprep.subr.bf16.mxu0 %v5642_v52 }
  0x90   :  { %4806 = vmatmul.mubr.msk.bf16.gmra.mrb[44].mxu1 %vm224_vm0, %v6758_v50  ;;  %v5640_v50 = vld [vmem:[#allocation2 + $0x1a0] ss:$16 sps:$4 sm:$0xff]  }
  0x91   :  { %538 = vmatprep.mubr.bf16.mxu1 %v6560_v0  ;;  %2424 = vmatpush1.bf16.msra.mxu1 %v5601_v38 }
  0x92   :  { %2425 = vmatprep.subr.bf16.mxu1 %v5609_v39  ;;  %2052 = vmatpush1.bf16.msra.mxu0 %v5640_v50 }
  0x93   :  { %2053 = vmatprep.subr.bf16.mxu0 %v5648_v55 }
  0x95   :  { %2426 = vmatpush1.bf16.msra.mxu1 %v5607_v43 }
  0x96   :  { %2427 = vmatprep.subr.bf16.mxu1 %v5615_v45  ;;  %2054 = vmatpush1.bf16.msra.mxu0 %v5646_v56 }
  0x97   :  { %2055 = vmatprep.subr.bf16.mxu0 %v5654_v59 }
  0x98   :  { %4807 = vmatmul.mubr.msk.bf16.gmra.mrb[48].mxu1 %vm224_vm0, %v6780_v60  ;;  %v5652_v60 = vld [vmem:[#allocation2 + $0x1e0] ss:$16 sps:$4 sm:$0xff]  }
  0x99   :  { %548 = vmatprep.mubr.bf16.mxu1 %v6560_v0  ;;  %2428 = vmatpush1.bf16.msra.mxu1 %v5613_v46 }
  0x9a   :  { %2429 = vmatprep.subr.bf16.mxu1 %v5621_v48  ;;  %2056 = vmatpush1.bf16.msra.mxu0 %v5652_v60 }
  0x9b   :  { %2218 = vmatprep.subr.bf16.mxu0 %v5660_v9 }
  0x9d   :  { %2430 = vmatpush1.bf16.msra.mxu1 %v5619_v53 }
  0x9e   :  { %2431 = vmatprep.subr.bf16.mxu1 %v5627_v54 }
  0xa0   :  { %4808 = vmatmul.mubr.msk.bf16.gmra.mrb[52].mxu1 %vm224_vm0, %v6802_v7  ;;  %v5655_v7 = vld [vmem:[#allocation2 + $0x1e8] ss:$16 sps:$4 sm:$0xff]  }
  0xa1   :  { %558 = vmatprep.mubr.bf16.mxu1 %v6560_v0  ;;  %2432 = vmatpush1.bf16.msra.mxu1 %v5625_v57 }
  0xa2   :  { %2433 = vmatprep.subr.bf16.mxu1 %v5633_v58 }
  0xa5   :  { %2434 = vmatpush1.bf16.msra.mxu1 %v5631_v62 }
  0xa6   :  { %2435 = vmatprep.subr.bf16.mxu1 %v5639_v63 }
  0xa8   :  { %4809 = vmatmul.mubr.msk.bf16.gmra.mrb[56].mxu1 %vm224_vm0, %v6824_v17 }
  0xa9   :  { %568 = vmatprep.mubr.bf16.mxu1 %v6560_v0  ;;  %2436 = vmatpush1.bf16.msra.mxu1 %v5637_v1 }
  0xaa   :  { %2437 = vmatprep.subr.bf16.mxu1 %v5645_v2 }
  0xad   :  { %2438 = vmatpush1.bf16.msra.mxu1 %v5643_v3 }
  0xae   :  { %2439 = vmatprep.subr.bf16.mxu1 %v5651_v4 }
  0xb0   :  { %4810 = vmatmul.mubr.msk.bf16.gmra.mrb[60].mxu1 %vm224_vm0, %v6846_v23 }
  0xb1   :  { %578 = vmatprep.mubr.bf16.mxu1 %v6560_v0  ;;  %2440 = vmatpush1.bf16.msra.mxu1 %v5649_v5 }
  0xb2   :  { %2441 = vmatprep.subr.bf16.mxu1 %v5657_v6 }
  0xb5   :  { %2442 = vmatpush1.bf16.msra.mxu1 %v5655_v7 }
  0xb8   :  { %4811 = vmatmul.mubr.msk.bf16.gmra.mrb[64].mxu1 %vm224_vm0, %v6673_v15  ;;  %v5687_v15 = vld [vmem:[#allocation2 + $0x20c] ss:$16 sps:$4 sm:$0xff]  }
  0xb9   :  { %588 = vmatprep.mubr.bf16.mxu1 %v6560_v0  ;;  %2604 = vmatprep.subr.bf16.mxu1 %v5687_v15 }
  0xc0   :  { %4812 = vmatmul.mubr.msk.bf16.gmra.mrb[68].mxu1 %vm224_vm0, %v6707_v25  ;;  %v124_v25 = vlaneseq }
  0xc1   :  { %598 = vmatprep.mubr.bf16.mxu1 %v6560_v0 }
  0xc8   :  { %4813 = vmatmul.mubr.msk.bf16.gmra.mrb[72].mxu1 %vm224_vm0, %v6738_v41  ;;  %v6902_v41 = vshrl.u32 %v124_v25, 7 }
  0xc9   :  { %608 = vmatprep.mubr.bf16.mxu1 %v6560_v0 }
  0xca   :  { %9734 = vst [vmem:[#allocation8_spill] sm:$0xff] %v6902_v41  ;;  %v9684_v48 = vsub.s32 2, %v6902_v41  ;;  %v9683_v54 = vsub.s32 3, %v6902_v41 }
  0xd0   :  { %4814 = vmatmul.mubr.msk.bf16.gmra.mrb[76].mxu1 %vm224_vm0, %v6760_v51  ;;  %v6905_v51 = vsub.s32 0, %v6902_v41 }
  0xd1   :  { %618 = vmatprep.mubr.bf16.mxu1 %v6560_v0 }
  0xd2   :  { %9735 = vst [vmem:[#allocation9_spill] sm:$0xff] %v6905_v51 }
  0xd8   :  { %4815 = vmatmul.mubr.msk.bf16.gmra.mrb[80].mxu1 %vm224_vm0, %v6782_v61  ;;  %v6910_v61 = vld [vmem:[%s9676_s2] sm:$0xf] }
  0xd9   :  { %628 = vmatprep.mubr.bf16.mxu1 %v6560_v0  ;;  %v6983_v2 = vrot.slane %v6910_v61, %v9684_v48  ;;  %v6988_v3 = vrot.slane %v6910_v61, %v9683_v54 }
  0xdb   :  { %9737 = vst [vmem:[#allocation11_spill] sm:$0xff] %v6983_v2  ;;  %9738 = vst [vmem:[#allocation12_spill] sm:$0xff] %v6988_v3 }
  0xe0   :  { %4816 = vmatmul.mubr.msk.bf16.gmra.mrb[84].mxu1 %vm224_vm0, %v6804_v8  ;;  %v6913_v8 = vsub.s32 1, %v6902_v41 }
  0xe1   :  { %638 = vmatprep.mubr.bf16.mxu1 %v6560_v0 }
  0xe2   :  { %9736 = vst [vmem:[#allocation10_spill] sm:$0xff] %v6913_v8  ;;  %v6921_v10 = vrot.slane %v6910_v61, %v6913_v8 }
  0xe8   :  { %4817 = vmatmul.mubr.msk.bf16.gmra.mrb[88].mxu1 %vm224_vm0, %v6826_v18 }
  0xe9   :  { %648 = vmatprep.mubr.bf16.mxu1 %v6560_v0  ;;  %v6917_v0 = vrot.slane %v6910_v61, %v6905_v51 }
  0xf0   :  { %4818 = vmatmul.mubr.msk.bf16.gmra.mrb[92].mxu1 %vm224_vm0, %v6848_v26 }
 0x10b   :  { %v307_v11 = vpop.f32.mrb[0].mxu0  ;;  %v387_v12 = vpop.f32.mrb[0].mxu1 }
 0x10c   :  { %v308_v13 = vadd.f32 %v307_v11, %v6917_v0  ;;  %v309_v16 = vpop.f32.mrb[1].mxu0  ;;  %v388_v17 = vadd.f32 %v387_v12, %v6917_v0  ;;  %v389_v18 = vpop.f32.mrb[1].mxu1 }
 0x10d   :  { %v310_v19 = vadd.f32 %v309_v16, %v6921_v10  ;;  %v311_v20 = vpop.f32.mrb[2].mxu0  ;;  %v390_v21 = vadd.f32 %v389_v18, %v6921_v10  ;;  %v391_v22 = vpop.f32.mrb[2].mxu1 }
 0x10e   :  { %v6927_v23 = vmul.f32 0.5, %v308_v13  ;;  %v312_v26 = vadd.f32 %v311_v20, %v6917_v0  ;;  %v313_v27 = vpop.f32.mrb[3].mxu0  ;;  %v392_v28 = vadd.f32 %v391_v22, %v6917_v0  ;;  %v393_v29 = vpop.f32.mrb[3].mxu1  ;;  %v6938_v34 = vmul.f32 0.5, %v388_v17 }
 0x10f   :  { %v6931_v30 = vmul.f32 0.5, %v310_v19  ;;  %v314_v31 = vadd.f32 %v313_v27, %v6921_v10  ;;  %v394_v32 = vadd.f32 %v393_v29, %v6921_v10  ;;  %v6943_v14 = vmul.f32 0.5, %v390_v21 }
 0x110   :  { %5866 = vtanh.f32 %v6927_v23  ;;  %v6936_v33 = vmul.f32 0.5, %v312_v26  ;;  %v6946_v36 = vmul.f32 0.5, %v392_v28 }
 0x111   :  { %5868 = vtanh.f32 %v6931_v30  ;;  %v6941_v35 = vmul.f32 0.5, %v314_v31  ;;  %v6949_v38 = vmul.f32 0.5, %v394_v32 }
 0x112   :  { %5870 = vtanh.f32 %v6936_v33 }
 0x113   :  { %5872 = vtanh.f32 %v6941_v35  ;;  %v317_v37 = vpop.f32.mrb[4].mxu0  ;;  %v397_v24 = vpop.f32.mrb[4].mxu1 }
 0x114   :  { %v318_v39 = vadd.f32 %v317_v37, %v6917_v0  ;;  %v319_v42 = vpop.f32.mrb[5].mxu0  ;;  %5874 = vtanh.f32 %v6938_v34  ;;  %v398_v43 = vadd.f32 %v397_v24, %v6917_v0  ;;  %v399_v44 = vpop.f32.mrb[5].mxu1 }
 0x115   :  { %v320_v45 = vadd.f32 %v319_v42, %v6921_v10  ;;  %v321_v40 = vpop.f32.mrb[6].mxu0  ;;  %5876 = vtanh.f32 %v6943_v14  ;;  %v400_v46 = vadd.f32 %v399_v44, %v6921_v10  ;;  %v401_v47 = vpop.f32.mrb[6].mxu1 }
 0x116   :  { %v6958_v49 = vmul.f32 0.5, %v318_v39  ;;  %v322_v52 = vadd.f32 %v321_v40, %v6917_v0  ;;  %v323_v50 = vpop.f32.mrb[7].mxu0  ;;  %5878 = vtanh.f32 %v6946_v36  ;;  %v403_v53 = vpop.f32.mrb[7].mxu1  ;;  %v6967_v57 = vmul.f32 0.5, %v398_v43 }
 0x117   :  { %v6963_v55 = vmul.f32 0.5, %v320_v45  ;;  %v324_v56 = vadd.f32 %v323_v50, %v6921_v10  ;;  %5880 = vtanh.f32 %v6949_v38  ;;  %v402_v59 = vadd.f32 %v401_v47, %v6917_v0  ;;  %v5663_v50 = vld [vmem:[#allocation2 + $0x224] ss:$16 sps:$4 sm:$0xff]  }
 0x118   :  { %5882 = vtanh.f32 %v6958_v49  ;;  %v6970_v58 = vmul.f32 0.5, %v322_v52  ;;  %v404_v60 = vadd.f32 %v403_v53, %v6921_v10  ;;  %v6977_v63 = vmul.f32 0.5, %v400_v46 }
 0x119   :  { %5884 = vtanh.f32 %v6963_v55  ;;  %v6975_v62 = vmul.f32 0.5, %v324_v56  ;;  %v6991_v7 = vmul.f32 0.5, %v402_v59 }
 0x11a   :  { %v5867_v1 = vpop.eup %5866  ;;  %5886 = vtanh.f32 %v6970_v58  ;;  %v6993_v9 = vmul.f32 0.5, %v404_v60 }
 0x11b   :  { %v5869_v4 = vpop.eup %5868  ;;  %v915_v5 = vadd.f32 1.0, %v5867_v1  ;;  %5888 = vtanh.f32 %v6975_v62  ;;  %v327_v6 = vpop.f32.mrb[8].mxu0  ;;  %v5685_v1 = vld [vmem:[#allocation2 + $0x208] ss:$16 sps:$4 sm:$0xff]  }
 0x11c   :  { %v407_v15 = vpop.f32.mrb[8].mxu1  ;;  %v5871_v25 = vpop.eup %5870  ;;  %v916_v11 = vadd.f32 1.0, %v5869_v4  ;;  %v328_v12 = vadd.f32 %v327_v6, %v6917_v0  ;;  %5890 = vtanh.f32 %v6967_v57  ;;  %v5690_v4 = vld [vmem:[#allocation2 + $0x22c] ss:$16 sps:$4 sm:$0xff]  }
 0x11d   :  { %v329_v13 = vpop.f32.mrb[9].mxu0  ;;  %v408_v61 = vadd.f32 %v407_v15, %v6917_v0  ;;  %v6998_v16 = vpop.f32.mrb[9].mxu1  ;;  %v1043_v18 = vmul.f32 %v915_v5, %v6927_v23  ;;  %v919_v19 = vadd.f32 1.0, %v5871_v25  ;;  %5892 = vtanh.f32 %v6977_v63 }
 0x11e   :  { %v5873_v17 = vpop.eup %5872  ;;  %v330_v20 = vadd.f32 %v329_v13, %v6921_v10  ;;  %v331_v21 = vpop.f32.mrb[10].mxu0  ;;  %v1044_v27 = vmul.f32 %v916_v11, %v6931_v30  ;;  %v7006_v29 = vmul.f32 0.5, %v328_v12 }
 0x11f   :  { %v7003_v22 = vpop.f32.mrb[10].mxu1  ;;  %v5875_v26 = vpop.eup %5874  ;;  %v920_v28 = vadd.f32 1.0, %v5873_v17  ;;  %v332_v31 = vadd.f32 %v331_v21, %v6917_v0  ;;  %v1047_v24 = vmul.f32 %v919_v19, %v6936_v33  ;;  %v5658_v33 = vld [vmem:[#allocation2 + $0x200] ss:$16 sps:$4 sm:$0xff]   ;;  %v7030_v11 = vmul.f32 0.5, %v408_v61 }
 0x120   :  { %v333_v32 = vpop.f32.mrb[11].mxu0  ;;  %v7009_v37 = vpop.f32.mrb[11].mxu1  ;;  %v7012_v39 = vmul.f32 0.5, %v330_v20  ;;  %v979_v43 = vadd.f32 1.0, %v5875_v26  ;;  %5894 = vtanh.f32 %v7006_v29 }
 0x121   :  { %v5877_v23 = vpop.eup %5876  ;;  %v334_v42 = vadd.f32 %v333_v32, %v6921_v10  ;;  %v1048_v45 = vmul.f32 %v920_v28, %v6941_v35  ;;  %v7017_v30 = vmul.f32 0.5, %v332_v31  ;;  %v1171_v47 = vpack.c.bf16 %v1047_v24, %v1043_v18  ;;  %v5661_v28 = vld [vmem:[#allocation2 + $0x220] ss:$16 sps:$4 sm:$0xff]  }
 0x122   :  { %v5879_v44 = vpop.eup %5878  ;;  %v980_v40 = vadd.f32 1.0, %v5877_v23  ;;  %5896 = vtanh.f32 %v7012_v39  ;;  %v7023_v53 = vmul.f32 %v979_v43, %v6938_v34 }
 0x123   :  { %v5881_v46 = vpop.eup %5880  ;;  %v7020_v52 = vmul.f32 0.5, %v334_v42  ;;  %5898 = vtanh.f32 %v7017_v30  ;;  %v1172_v35 = vpack.c.bf16 %v1048_v45, %v1044_v27  ;;  %v983_v60 = vadd.f32 1.0, %v5879_v44  ;;  %v337_v15 = vpop.f32.mrb[12].mxu0  ;;  %v5688_v45 = vld [vmem:[#allocation2 + $0x228] ss:$16 sps:$4 sm:$0xff]  }
 0x124   :  { %v5883_v56 = vpop.eup %5882  ;;  %v7027_v59 = vmul.f32 %v980_v40, %v6943_v14  ;;  %v984_v25 = vadd.f32 1.0, %v5881_v46  ;;  %v7032_v34 = vpop.f32.mrb[12].mxu1  ;;  %v338_v17 = vadd.f32 %v337_v15, %v6917_v0  ;;  %v5664_v15 = vld [vmem:[#allocation2 + $0x240] ss:$16 sps:$4 sm:$0xff]  }
 0x125   :  { %v5885_v5 = vpop.eup %5884  ;;  %v923_v6 = vadd.f32 1.0, %v5883_v56  ;;  %5900 = vtanh.f32 %v7020_v52  ;;  %v339_v18 = vpop.f32.mrb[13].mxu0  ;;  %2057 = vmatprep.mubr.bf16.mxu0 %v1172_v35  ;;  %2443 = vmatprep.mubr.bf16.mxu1 %v1172_v35  ;;  %v7036_v14 = vmul.f32 %v983_v60, %v6946_v36  ;;  %v5696_v35 = vld [vmem:[#allocation2 + $0x24c] ss:$16 sps:$4 sm:$0xff]  }
 0x126   :  { %v5887_v12 = vpop.eup %5886  ;;  %v924_v13 = vadd.f32 1.0, %v5885_v5  ;;  %5902 = vtanh.f32 %v6991_v7  ;;  %v7039_v19 = vpop.f32.mrb[13].mxu1  ;;  %v340_v26 = vadd.f32 %v339_v18, %v6921_v10  ;;  %2058 = vmatmul.mubr.bf16.vlgmr.msra.gmra.mrb[32].mxu0 %v1171_v47  ;;  %2444 = vmatmul.mubr.bf16.vlgmr.msra.gmra.mrb[96].mxu1 %v1171_v47  ;;  %v7044_v31 = vmul.f32 %v984_v25, %v6949_v38 }
 0x127   :  { %v5889_v20 = vpop.eup %5888  ;;  %v1051_v61 = vmul.f32 %v923_v6, %v6958_v49  ;;  %v927_v21 = vadd.f32 1.0, %v5887_v12  ;;  %v341_v27 = vpop.f32.mrb[14].mxu0  ;;  %v7049_v42 = vmul.f32 0.5, %v338_v17  ;;  %2219 = vmatpush1.bf16.msra.mxu0 %v5658_v33  ;;  %2605 = vmatpush1.bf16.msra.mxu1 %v5685_v1  ;;  %v410_v12 = vadd.f32 %v6998_v16, %v6921_v10 }
 0x128   :  { %v7046_v32 = vpop.f32.mrb[14].mxu1  ;;  %v5891_v36 = vpop.eup %5890  ;;  %v1052_v23 = vmul.f32 %v924_v13, %v6963_v55  ;;  %v928_v24 = vadd.f32 1.0, %v5889_v20  ;;  %v342_v49 = vadd.f32 %v341_v27, %v6917_v0  ;;  %v7055_v46 = vmul.f32 0.5, %v340_v26  ;;  %2220 = vmatprep.subr.bf16.mxu0 %v5663_v50  ;;  %v5666_v55 = vld [vmem:[#allocation2 + $0x244] ss:$16 sps:$4 sm:$0xff]   ;;  %2606 = vmatprep.subr.bf16.mxu1 %v5690_v4 }
 0x129   :  { %v343_v43 = vpop.f32.mrb[15].mxu0  ;;  %v7052_v44 = vpop.f32.mrb[15].mxu1  ;;  %v1055_v38 = vmul.f32 %v927_v21, %v6970_v58  ;;  %v987_v56 = vadd.f32 1.0, %v5891_v36  ;;  %5904 = vtanh.f32 %v7049_v42  ;;  %v5694_v13 = vld [vmem:[#allocation2 + $0x248] ss:$16 sps:$4 sm:$0xff]   ;;  %v412_v20 = vadd.f32 %v7003_v22, %v6917_v0 }
 0x12a   :  { %v5893_v40 = vpop.eup %5892  ;;  %v344_v47 = vadd.f32 %v343_v43, %v6921_v10  ;;  %v1056_v60 = vmul.f32 %v928_v24, %v6975_v62  ;;  %v7060_v33 = vmul.f32 0.5, %v342_v49  ;;  %5906 = vtanh.f32 %v7055_v46  ;;  %v5669_v62 = vld [vmem:[#allocation2 + $0x264] ss:$16 sps:$4 sm:$0xff]  }
 0x12b   :  { %v988_v1 = vadd.f32 1.0, %v5893_v40  ;;  %v1175_v58 = vpack.c.bf16 %v1055_v38, %v1051_v61  ;;  %v7066_v6 = vmul.f32 %v987_v56, %v6967_v57  ;;  %v5895_v50 = vpop.eup %5894  ;;  %2221 = vmatpush1.bf16.msra.mxu0 %v5661_v28  ;;  %2607 = vmatpush1.bf16.msra.mxu1 %v5688_v45  ;;  %v347_v57 = vpop.f32.mrb[16].mxu0  ;;  %v414_v61 = vadd.f32 %v7009_v37, %v6921_v10  ;;  %v5667_v45 = vld [vmem:[#allocation2 + $0x260] ss:$16 sps:$4 sm:$0xff]  }
 0x12c   :  { %v7063_v5 = vmul.f32 0.5, %v344_v47  ;;  %5908 = vtanh.f32 %v7060_v33  ;;  %v1176_v4 = vpack.c.bf16 %v1056_v60, %v1052_v23  ;;  %v5897_v17 = vpop.eup %5896  ;;  %v931_v18 = vadd.f32 1.0, %v5895_v50  ;;  %2222 = vmatprep.subr.bf16.mxu0 %v5666_v55  ;;  %v7079_v21 = vpop.f32.mrb[16].mxu1  ;;  %2608 = vmatprep.subr.bf16.mxu1 %v5696_v35 }
 0x12d   :  { %v7070_v25 = vmul.f32 %v988_v1, %v6977_v63  ;;  %v5699_v63 = vld [vmem:[#allocation2 + $0x26c] ss:$16 sps:$4 sm:$0xff]   ;;  %v5899_v26 = vpop.eup %5898  ;;  %v932_v16 = vadd.f32 1.0, %v5897_v17  ;;  %v348_v27 = vadd.f32 %v347_v57, %v6917_v0  ;;  %v349_v28 = vpop.f32.mrb[17].mxu0  ;;  %v7083_v36 = vmul.f32 0.5, %v410_v12 }
 0x12e   :  { %5910 = vtanh.f32 %v7063_v5  ;;  %2067 = vmatprep.mubr.bf16.mxu0 %v1176_v4  ;;  %2453 = vmatprep.mubr.bf16.mxu1 %v1176_v4  ;;  %v7085_v23 = vpop.f32.mrb[17].mxu1  ;;  %v1059_v37 = vmul.f32 %v931_v18, %v7006_v29  ;;  %v935_v24 = vadd.f32 1.0, %v5899_v26  ;;  %v350_v49 = vadd.f32 %v349_v28, %v6921_v10  ;;  %v351_v43 = vpop.f32.mrb[18].mxu0  ;;  %v5697_v1 = vld [vmem:[#allocation2 + $0x268] ss:$16 sps:$4 sm:$0xff]  }
 0x12f   :  { %5912 = vtanh.f32 %v6993_v9  ;;  %v5901_v22 = vpop.eup %5900  ;;  %2068 = vmatmul.mubr.bf16.gmra.mrb[36].mxu0 %v1175_v58  ;;  %2454 = vmatmul.mubr.bf16.gmra.mrb[100].mxu1 %v1175_v58  ;;  %v7090_v40 = vpop.f32.mrb[18].mxu1  ;;  %v1060_v47 = vmul.f32 %v932_v16, %v7012_v39  ;;  %v7093_v56 = vmul.f32 0.5, %v348_v27  ;;  %v352_v35 = vadd.f32 %v351_v43, %v6917_v0  ;;  %v5672_v12 = vld [vmem:[#allocation2 + $0x284] ss:$16 sps:$4 sm:$0xff]   ;;  %v5705_v17 = vld [vmem:[#allocation2 + $0x28c] ss:$16 sps:$4 sm:$0xff]  }
 0x130   :  { %5914 = vtanh.f32 %v7030_v11  ;;  %v5903_v38 = vpop.eup %5902  ;;  %v936_v55 = vadd.f32 1.0, %v5901_v22  ;;  %v353_v29 = vpop.f32.mrb[19].mxu0  ;;  %2223 = vmatpush1.bf16.msra.mxu0 %v5664_v15  ;;  %2609 = vmatpush1.bf16.msra.mxu1 %v5694_v13  ;;  %v1063_v58 = vmul.f32 %v935_v24, %v7017_v30  ;;  %v7099_v50 = vmul.f32 0.5, %v350_v49  ;;  %v5670_v26 = vld [vmem:[#allocation2 + $0x280] ss:$16 sps:$4 sm:$0xff]  }
 0x131   :  { %v7096_v60 = vpop.f32.mrb[19].mxu1  ;;  %v354_v4 = vadd.f32 %v353_v29, %v6921_v10  ;;  %2224 = vmatprep.subr.bf16.mxu0 %v5669_v62  ;;  %v991_v39 = vadd.f32 1.0, %v5903_v38  ;;  %2610 = vmatprep.subr.bf16.mxu1 %v5699_v63  ;;  %5916 = vtanh.f32 %v7093_v56  ;;  %v7104_v15 = vmul.f32 0.5, %v352_v35  ;;  %v5703_v28 = vld [vmem:[#allocation2 + $0x288] ss:$16 sps:$4 sm:$0xff]  }
 0x132   :  { %v1064_v18 = vmul.f32 %v936_v55, %v7020_v52  ;;  %v7106_v57 = vmul.f32 0.5, %v412_v20  ;;  %5918 = vtanh.f32 %v7099_v50  ;;  %v1179_v13 = vpack.c.bf16 %v1063_v58, %v1059_v37  ;;  %v5675_v52 = vld [vmem:[#allocation2 + $0x2a4] ss:$16 sps:$4 sm:$0xff]   ;;  %v5708_v43 = vld [vmem:[#allocation2 + $0x2ac] ss:$16 sps:$4 sm:$0xff]  }
 0x133   :  { %v7109_v30 = vmul.f32 0.5, %v354_v4  ;;  %v7112_v62 = vmul.f32 %v991_v39, %v6991_v7  ;;  %v5905_v16 = vpop.eup %5904  ;;  %5920 = vtanh.f32 %v7104_v15  ;;  %v7115_v27 = vmul.f32 0.5, %v414_v61  ;;  %v357_v37 = vpop.f32.mrb[20].mxu0  ;;  %v5673_v4 = vld [vmem:[#allocation2 + $0x2a0] ss:$16 sps:$4 sm:$0xff]  }
 0x134   :  { %v1180_v63 = vpack.c.bf16 %v1064_v18, %v1060_v47  ;;  %2225 = vmatpush1.bf16.msra.mxu0 %v5667_v45  ;;  %v418_v20 = vadd.f32 %v7032_v34, %v6917_v0  ;;  %2611 = vmatpush1.bf16.msra.mxu1 %v5697_v1  ;;  %v5907_v22 = vpop.eup %5906  ;;  %v939_v24 = vadd.f32 1.0, %v5905_v16  ;;  %v420_v7 = vadd.f32 %v7039_v19, %v6921_v10  ;;  %v7126_v61 = vpop.f32.mrb[20].mxu1 }
 0x135   :  { %5922 = vtanh.f32 %v7109_v30  ;;  %2226 = vmatprep.subr.bf16.mxu0 %v5672_v12  ;;  %v7124_v49 = vadd.f32 %v7046_v32, %v6917_v0  ;;  %2612 = vmatprep.subr.bf16.mxu1 %v5705_v17  ;;  %v940_v45 = vadd.f32 1.0, %v5907_v22  ;;  %v358_v38 = vadd.f32 %v357_v37, %v6917_v0  ;;  %v359_v47 = vpop.f32.mrb[21].mxu0  ;;  %v7132_v19 = vpop.f32.mrb[21].mxu1  ;;  %v5706_v22 = vld [vmem:[#allocation2 + $0x2a8] ss:$16 sps:$4 sm:$0xff]  }
 0x136   :  { %v5909_v34 = vpop.eup %5908  ;;  %2077 = vmatprep.mubr.bf16.mxu0 %v1180_v63  ;;  %2463 = vmatprep.mubr.bf16.mxu1 %v1180_v63  ;;  %5924 = vtanh.f32 %v7083_v36  ;;  %v7130_v55 = vmul.f32 0.5, %v418_v20  ;;  %v1067_v32 = vmul.f32 %v939_v24, %v7049_v42  ;;  %v360_v1 = vadd.f32 %v359_v47, %v6921_v10  ;;  %v361_v58 = vpop.f32.mrb[22].mxu0 }
 0x137   :  { %v943_v29 = vadd.f32 1.0, %v5909_v34  ;;  %2078 = vmatmul.mubr.bf16.gmra.mrb[40].mxu0 %v1179_v13  ;;  %2464 = vmatmul.mubr.bf16.gmra.mrb[104].mxu1 %v1179_v13  ;;  %5926 = vtanh.f32 %v7106_v57  ;;  %v7137_v12 = vpop.f32.mrb[22].mxu1  ;;  %v1068_v17 = vmul.f32 %v940_v45, %v7055_v46  ;;  %v7140_v16 = vmul.f32 0.5, %v358_v38  ;;  %v363_v42 = vpop.f32.mrb[23].mxu0  ;;  %v5678_v46 = vld [vmem:[#allocation2 + $0x2c4] ss:$16 sps:$4 sm:$0xff]  }
 0x138   :  { %v5911_v35 = vpop.eup %5910  ;;  %v362_v63 = vadd.f32 %v361_v58, %v6917_v0  ;;  %2227 = vmatpush1.bf16.msra.mxu0 %v5670_v26  ;;  %v7143_v20 = vpop.f32.mrb[23].mxu1  ;;  %2613 = vmatpush1.bf16.msra.mxu1 %v5703_v28  ;;  %v7146_v37 = vmul.f32 0.5, %v360_v1  ;;  %v364_v34 = vadd.f32 %v363_v42, %v6921_v10  ;;  %v5714_v45 = vld [vmem:[#allocation2 + $0x2cc] ss:$16 sps:$4 sm:$0xff]   ;;  %v5676_v1 = vld [vmem:[#allocation2 + $0x2c0] ss:$16 sps:$4 sm:$0xff]  }
 0x139   :  { %v5913_v39 = vpop.eup %5912  ;;  %v944_v18 = vadd.f32 1.0, %v5911_v35  ;;  %v1071_v24 = vmul.f32 %v943_v29, %v7060_v33  ;;  %2228 = vmatprep.subr.bf16.mxu0 %v5675_v52  ;;  %2614 = vmatprep.subr.bf16.mxu1 %v5708_v43  ;;  %5928 = vtanh.f32 %v7140_v16  ;;  %v7163_v58 = vmul.f32 0.5, %v420_v7  ;;  %v5717_v7 = vld [vmem:[#allocation2 + $0x2ec] ss:$16 sps:$4 sm:$0xff]  }
 0x13a   :  { %v5915_v13 = vpop.eup %5914  ;;  %v992_v47 = vadd.f32 1.0, %v5913_v39  ;;  %v7151_v26 = vmul.f32 0.5, %v362_v63  ;;  %5930 = vtanh.f32 %v7146_v37  ;;  %v7154_v35 = vmul.f32 0.5, %v364_v34  ;;  %v5681_v39 = vld [vmem:[#allocation2 + $0x2e4] ss:$16 sps:$4 sm:$0xff]  }
 0x13b   :  { %v1072_v38 = vmul.f32 %v944_v18, %v7063_v5  ;;  %v995_v28 = vadd.f32 1.0, %v5915_v13  ;;  %v1183_v33 = vpack.c.bf16 %v1071_v24, %v1067_v32  ;;  %v5917_v52 = vpop.eup %5916  ;;  %v5712_v18 = vld [vmem:[#allocation2 + $0x2c8] ss:$16 sps:$4 sm:$0xff]   ;;  %v7167_v32 = vmul.f32 0.5, %v7124_v49 }
 0x13c   :  { %v7157_v29 = vmul.f32 %v992_v47, %v6993_v9  ;;  %5932 = vtanh.f32 %v7151_v26  ;;  %2229 = vmatpush1.bf16.msra.mxu0 %v5673_v4  ;;  %2615 = vmatpush1.bf16.msra.mxu1 %v5706_v22  ;;  %v5919_v63 = vpop.eup %5918  ;;  %v947_v42 = vadd.f32 1.0, %v5917_v52  ;;  %v367_v9 = vpop.f32.mrb[24].mxu0  ;;  %v428_v49 = vadd.f32 %v7079_v21, %v6917_v0 }
 0x13d   :  { %v1184_v43 = vpack.c.bf16 %v1072_v38, %v1068_v17  ;;  %v7161_v5 = vmul.f32 %v995_v28, %v7030_v11  ;;  %5934 = vtanh.f32 %v7154_v35  ;;  %2230 = vmatprep.subr.bf16.mxu0 %v5678_v46  ;;  %v424_v17 = vadd.f32 %v7052_v44, %v6921_v10  ;;  %v7171_v11 = vpop.f32.mrb[24].mxu1  ;;  %2616 = vmatprep.subr.bf16.mxu1 %v5714_v45  ;;  %v5921_v4 = vpop.eup %5920  ;;  %v5679_v28 = vld [vmem:[#allocation2 + $0x2e0] ss:$16 sps:$4 sm:$0xff]  }
 0x13e   :  { %v948_v13 = vadd.f32 1.0, %v5919_v63  ;;  %v368_v22 = vadd.f32 %v367_v9, %v6917_v0  ;;  %v369_v24 = vpop.f32.mrb[25].mxu0  ;;  %5936 = vtanh.f32 %v7115_v27  ;;  %v7177_v34 = vpop.f32.mrb[25].mxu1  ;;  %v1075_v44 = vmul.f32 %v947_v42, %v7093_v56 }
 0x13f   :  { %2087 = vmatprep.mubr.bf16.mxu0 %v1184_v43  ;;  %2473 = vmatprep.mubr.bf16.mxu1 %v1184_v43  ;;  %v5923_v47 = vpop.eup %5922  ;;  %v951_v46 = vadd.f32 1.0, %v5921_v4  ;;  %v370_v45 = vadd.f32 %v369_v24, %v6921_v10  ;;  %v371_v38 = vpop.f32.mrb[26].mxu0  ;;  %5938 = vtanh.f32 %v7130_v55  ;;  %v5715_v4 = vld [vmem:[#allocation2 + $0x2e8] ss:$16 sps:$4 sm:$0xff]  }
 0x140   :  { %2088 = vmatmul.mubr.bf16.gmra.mrb[44].mxu0 %v1183_v33  ;;  %2474 = vmatmul.mubr.bf16.gmra.mrb[108].mxu1 %v1183_v33  ;;  %v7182_v52 = vpop.f32.mrb[26].mxu1  ;;  %v5925_v43 = vpop.eup %5924  ;;  %v1076_v63 = vmul.f32 %v948_v13, %v7099_v50  ;;  %v952_v21 = vadd.f32 1.0, %v5923_v47  ;;  %v7185_v9 = vmul.f32 0.5, %v368_v22  ;;  %v372_v54 = vadd.f32 %v371_v38, %v6917_v0  ;;  %v5684_v50 = vld [vmem:[#allocation2 + $0x304] ss:$16 sps:$4 sm:$0xff]  }
 0x141   :  { %v373_v56 = vpop.f32.mrb[27].mxu0  ;;  %2231 = vmatpush1.bf16.msra.mxu0 %v5676_v1  ;;  %v7188_v42 = vpop.f32.mrb[27].mxu1  ;;  %2617 = vmatpush1.bf16.msra.mxu1 %v5712_v18  ;;  %v1079_v24 = vmul.f32 %v951_v46, %v7104_v15  ;;  %v7191_v48 = vmul.f32 0.5, %v370_v45  ;;  %v996_v41 = vadd.f32 1.0, %v5925_v43  ;;  %v5723_v13 = vld [vmem:[#allocation2 + $0x30c] ss:$16 sps:$4 sm:$0xff]  }
 0x142   :  { %v5927_v33 = vpop.eup %5926  ;;  %v374_v8 = vadd.f32 %v373_v56, %v6921_v10  ;;  %2232 = vmatprep.subr.bf16.mxu0 %v5681_v39  ;;  %2618 = vmatprep.subr.bf16.mxu1 %v5717_v7  ;;  %v1080_v22 = vmul.f32 %v952_v21, %v7109_v30  ;;  %5940 = vtanh.f32 %v7185_v9  ;;  %v7196_v1 = vmul.f32 0.5, %v372_v54  ;;  %v5682_v45 = vld [vmem:[#allocation2 + $0x300] ss:$16 sps:$4 sm:$0xff]   ;;  %v5693_v54 = vld [vmem:[#allocation2 + $0x324] ss:$16 sps:$4 sm:$0xff]  }
 0x143   :  { %v999_v18 = vadd.f32 1.0, %v5927_v33  ;;  %5942 = vtanh.f32 %v7191_v48  ;;  %v1187_v15 = vpack.c.bf16 %v1079_v24, %v1075_v44  ;;  %v7202_v46 = vmul.f32 %v996_v41, %v7083_v36  ;;  %v5929_v39 = vpop.eup %5928  ;;  %v5721_v43 = vld [vmem:[#allocation2 + $0x308] ss:$16 sps:$4 sm:$0xff]   ;;  %v377_v41 = vpop.f32.mrb[28].mxu0 }
 0x144   :  { %v7199_v47 = vmul.f32 0.5, %v374_v8  ;;  %5944 = vtanh.f32 %v7196_v1  ;;  %v1188_v7 = vpack.c.bf16 %v1080_v22, %v1076_v63  ;;  %v7208_v38 = vmul.f32 0.5, %v424_v17  ;;  %v5931_v8 = vpop.eup %5930  ;;  %v7215_v63 = vpop.f32.mrb[28].mxu1 }
 0x145   :  { %v7206_v30 = vmul.f32 %v999_v18, %v7106_v57  ;;  %2233 = vmatpush1.bf16.msra.mxu0 %v5679_v28  ;;  %2619 = vmatpush1.bf16.msra.mxu1 %v5715_v4  ;;  %v955_v21 = vadd.f32 1.0, %v5929_v39  ;;  %v7211_v36 = vmul.f32 0.5, %v428_v49  ;;  %v430_v44 = vadd.f32 %v7085_v23, %v6921_v10  ;;  %v5726_v57 = vld [vmem:[#allocation2 + $0x32c] ss:$16 sps:$4 sm:$0xff]   ;;  %v379_v4 = vpop.f32.mrb[29].mxu0  ;;  %v7221_v33 = vpop.f32.mrb[29].mxu1 }
 0x146   :  { %5946 = vtanh.f32 %v7199_v47  ;;  %2234 = vmatprep.subr.bf16.mxu0 %v5684_v50  ;;  %2620 = vmatprep.subr.bf16.mxu1 %v5723_v13  ;;  %v5933_v17 = vpop.eup %5932  ;;  %v956_v28 = vadd.f32 1.0, %v5931_v8  ;;  %v378_v56 = vadd.f32 %v377_v41, %v6917_v0  ;;  %v432_v49 = vadd.f32 %v7090_v40, %v6917_v0  ;;  %v381_v22 = vpop.f32.mrb[30].mxu0  ;;  %v5691_v18 = vld [vmem:[#allocation2 + $0x320] ss:$16 sps:$4 sm:$0xff]  }
 0x147   :  { %9739 = vst [vmem:[#allocation13_spill] sm:$0xff] %v7206_v30  ;;  %2097 = vmatprep.mubr.bf16.mxu0 %v1188_v7  ;;  %2483 = vmatprep.mubr.bf16.mxu1 %v1188_v7  ;;  %5948 = vtanh.f32 %v7163_v58  ;;  %v5935_v23 = vpop.eup %5934  ;;  %v1083_v24 = vmul.f32 %v955_v21, %v7140_v16  ;;  %v959_v50 = vadd.f32 1.0, %v5933_v17  ;;  %v380_v13 = vadd.f32 %v379_v4, %v6921_v10  ;;  %v7226_v39 = vpop.f32.mrb[30].mxu1  ;;  %v5724_v17 = vld [vmem:[#allocation2 + $0x328] ss:$16 sps:$4 sm:$0xff]  }
 0x148   :  { %2098 = vmatmul.mubr.bf16.gmra.mrb[48].mxu0 %v1187_v15  ;;  %2484 = vmatmul.mubr.bf16.gmra.mrb[112].mxu1 %v1187_v15  ;;  %5950 = vtanh.f32 %v7167_v32  ;;  %v5937_v7 = vpop.eup %5936  ;;  %v1084_v8 = vmul.f32 %v956_v28, %v7146_v37  ;;  %v960_v40 = vadd.f32 1.0, %v5935_v23  ;;  %v7229_v41 = vmul.f32 0.5, %v378_v56  ;;  %v383_v16 = vpop.f32.mrb[31].mxu0  ;;  %v5702_v37 = vld [vmem:[#allocation2 + $0x344] ss:$16 sps:$4 sm:$0xff]  }
 0x149   :  { %v382_v51 = vadd.f32 %v381_v22, %v6917_v0  ;;  %2235 = vmatpush1.bf16.msra.mxu0 %v5682_v45  ;;  %v7232_v21 = vpop.f32.mrb[31].mxu1  ;;  %2621 = vmatpush1.bf16.msra.mxu1 %v5721_v43  ;;  %v5939_v15 = vpop.eup %5938  ;;  %v1087_v4 = vmul.f32 %v959_v50, %v7151_v26  ;;  %v7235_v3 = vmul.f32 0.5, %v380_v13  ;;  %v384_v2 = vadd.f32 %v383_v16, %v6921_v10  ;;  %v5732_v28 = vld [vmem:[#allocation2 + $0x34c] ss:$16 sps:$4 sm:$0xff]   ;;  %v5700_v13 = vld [vmem:[#allocation2 + $0x340] ss:$16 sps:$4 sm:$0xff]  }
 0x14a   :  { %v1000_v30 = vadd.f32 1.0, %v5937_v7  ;;  %2236 = vmatprep.subr.bf16.mxu0 %v5693_v54  ;;  %2622 = vmatprep.subr.bf16.mxu1 %v5726_v57  ;;  %v1088_v56 = vmul.f32 %v960_v40, %v7154_v35  ;;  %5952 = vtanh.f32 %v7229_v41  ;;  %v1003_v43 = vadd.f32 1.0, %v5939_v15  ;;  %v5730_v7 = vld [vmem:[#allocation2 + $0x348] ss:$16 sps:$4 sm:$0xff]  }
 0x14b   :  { %v7240_v45 = vmul.f32 0.5, %v382_v51  ;;  %5954 = vtanh.f32 %v7235_v3  ;;  %v7243_v23 = vmul.f32 0.5, %v384_v2  ;;  %v1191_v26 = vpack.c.bf16 %v1087_v4, %v1083_v24  ;;  %v5711_v51 = vld [vmem:[#allocation2 + $0x364] ss:$16 sps:$4 sm:$0xff]   ;;  %v7259_v24 = vpop.f32.mrb[32].mxu1 }
 0x14c   :  { %v7246_v50 = vmul.f32 %v1000_v30, %v7115_v27  ;;  %v5941_v54 = vpop.eup %5940  ;;  %v1192_v57 = vpack.c.bf16 %v1088_v56, %v1084_v8  ;;  %v7250_v35 = vmul.f32 %v1003_v43, %v7130_v55  ;;  %v7252_v22 = vmul.f32 0.5, %v430_v44  ;;  %v5735_v55 = vld [vmem:[#allocation2 + $0x36c] ss:$16 sps:$4 sm:$0xff]   ;;  %v7268_v16 = vpop.f32.mrb[33].mxu1  ;;  %v5733_v43 = vld [vmem:[#allocation2 + $0x368] ss:$16 sps:$4 sm:$0xff]  }
 0x14d   :  { %5956 = vtanh.f32 %v7240_v45  ;;  %2237 = vmatpush1.bf16.msra.mxu0 %v5691_v18  ;;  %2623 = vmatpush1.bf16.msra.mxu1 %v5724_v17  ;;  %v5943_v2 = vpop.eup %5942  ;;  %v963_v40 = vadd.f32 1.0, %v5941_v54  ;;  %v7255_v27 = vmul.f32 0.5, %v432_v49  ;;  %v434_v30 = vadd.f32 %v7096_v60, %v6921_v10 }
 0x14e   :  { %5958 = vtanh.f32 %v7243_v23  ;;  %2238 = vmatprep.subr.bf16.mxu0 %v5702_v37  ;;  %2624 = vmatprep.subr.bf16.mxu1 %v5732_v28  ;;  %v5945_v44 = vpop.eup %5944  ;;  %v964_v8 = vadd.f32 1.0, %v5943_v2  ;;  %v7264_v18 = vpack.c.bf16 %v7044_v31, %v7027_v59  ;;  %v438_v49 = vadd.f32 %v7126_v61, %v6917_v0  ;;  %v5709_v37 = vld [vmem:[#allocation2 + $0x360] ss:$16 sps:$4 sm:$0xff]   ;;  %v7274_v28 = vpop.f32.mrb[34].mxu1 }
 0x14f   :  { %2107 = vmatprep.mubr.bf16.mxu0 %v1192_v57  ;;  %2493 = vmatprep.mubr.bf16.mxu1 %v1192_v57  ;;  %5960 = vtanh.f32 %v7208_v38  ;;  %v1091_v17 = vmul.f32 %v963_v40, %v7185_v9  ;;  %v967_v15 = vadd.f32 1.0, %v5945_v44  ;;  %v7272_v4 = vmul.f32 0.5, %v434_v30  ;;  %v7280_v9 = vpop.f32.mrb[35].mxu1  ;;  %v5741_v40 = vld [vmem:[#allocation2 + $0x38c] ss:$16 sps:$4 sm:$0xff]  }
 0x150   :  { %v5947_v60 = vpop.eup %5946  ;;  %2108 = vmatmul.mubr.bf16.gmra.mrb[52].mxu0 %v1191_v26  ;;  %2494 = vmatmul.mubr.bf16.gmra.mrb[116].mxu1 %v1191_v26  ;;  %5962 = vtanh.f32 %v7211_v36  ;;  %v1092_v31 = vmul.f32 %v964_v8, %v7191_v48  ;;  %v7278_v61 = vmul.f32 0.5, %v438_v49  ;;  %v440_v2 = vadd.f32 %v7132_v19, %v6921_v10  ;;  %v5720_v48 = vld [vmem:[#allocation2 + $0x384] ss:$16 sps:$4 sm:$0xff]  }
 0x151   :  { %v5949_v59 = vpop.eup %5948  ;;  %v968_v56 = vadd.f32 1.0, %v5947_v60  ;;  %5964 = vtanh.f32 %v7252_v22  ;;  %2239 = vmatpush1.bf16.msra.mxu0 %v5700_v13  ;;  %2625 = vmatpush1.bf16.msra.mxu1 %v5730_v7  ;;  %v1095_v54 = vmul.f32 %v967_v15, %v7196_v1  ;;  %v442_v7 = vadd.f32 %v7137_v12, %v6917_v0  ;;  %v5718_v12 = vld [vmem:[#allocation2 + $0x380] ss:$16 sps:$4 sm:$0xff]  }
 0x152   :  { %v5951_v26 = vpop.eup %5950  ;;  %v1004_v57 = vadd.f32 1.0, %v5949_v59  ;;  %5966 = vtanh.f32 %v7255_v27  ;;  %2240 = vmatprep.subr.bf16.mxu0 %v5711_v51  ;;  %2626 = vmatprep.subr.bf16.mxu1 %v5735_v55  ;;  %v7294_v8 = vmul.f32 0.5, %v440_v2  ;;  %v7303_v49 = vpack.c.bf16 %v7036_v14, %v7023_v53  ;;  %v5729_v53 = vld [vmem:[#allocation2 + $0x3a4] ss:$16 sps:$4 sm:$0xff]   ;;  %v5744_v14 = vld [vmem:[#allocation2 + $0x3ac] ss:$16 sps:$4 sm:$0xff]  }
 0x153   :  { %v1096_v30 = vmul.f32 %v968_v56, %v7199_v47  ;;  %v1007_v13 = vadd.f32 1.0, %v5951_v26  ;;  %5968 = vtanh.f32 %v7272_v4  ;;  %v1195_v44 = vpack.c.bf16 %v1095_v54, %v1091_v17  ;;  %v7312_v59 = vpop.f32.mrb[36].mxu1 }
 0x154   :  { %v7291_v1 = vmul.f32 %v1004_v57, %v7163_v58  ;;  %5970 = vtanh.f32 %v7278_v61  ;;  %v5953_v19 = vpop.eup %5952  ;;  %v7299_v47 = vmul.f32 0.5, %v442_v7  ;;  %v5739_v58 = vld [vmem:[#allocation2 + $0x388] ss:$16 sps:$4 sm:$0xff]   ;;  %v444_v15 = vadd.f32 %v7143_v20, %v6921_v10 }
 0x155   :  { %v1196_v51 = vpack.c.bf16 %v1096_v30, %v1092_v31  ;;  %v7297_v55 = vmul.f32 %v1007_v13, %v7167_v32  ;;  %2241 = vmatpush1.bf16.msra.mxu0 %v5709_v37  ;;  %2627 = vmatpush1.bf16.msra.mxu1 %v5733_v43  ;;  %v5955_v60 = vpop.eup %5954  ;;  %v971_v17 = vadd.f32 1.0, %v5953_v19  ;;  %5972 = vtanh.f32 %v7294_v8  ;;  %v5742_v7 = vld [vmem:[#allocation2 + $0x3a8] ss:$16 sps:$4 sm:$0xff]  }
 0x156   :  { %v7310_v32 = vpack.c.bf16 %v7157_v29, %v7070_v25  ;;  %2242 = vmatprep.subr.bf16.mxu0 %v5720_v48  ;;  %2628 = vmatprep.subr.bf16.mxu1 %v5741_v40  ;;  %v972_v31 = vadd.f32 1.0, %v5955_v60  ;;  %5974 = vtanh.f32 %v7299_v47  ;;  %v448_v56 = vadd.f32 %v7171_v11, %v6917_v0  ;;  %v7319_v25 = vpop.f32.mrb[37].mxu1  ;;  %v5727_v48 = vld [vmem:[#allocation2 + $0x3a0] ss:$16 sps:$4 sm:$0xff]   ;;  %v5750_v60 = vld [vmem:[#allocation2 + $0x3cc] ss:$16 sps:$4 sm:$0xff]  }
 0x157   :  { %v5957_v37 = vpop.eup %5956  ;;  %2117 = vmatprep.mubr.bf16.mxu0 %v1196_v51  ;;  %2503 = vmatprep.mubr.bf16.mxu1 %v1196_v51  ;;  %v450_v20 = vadd.f32 %v7177_v34, %v6921_v10  ;;  %v1099_v43 = vmul.f32 %v971_v17, %v7229_v41  ;;  %v7322_v54 = vmul.f32 0.5, %v444_v15  ;;  %v452_v57 = vadd.f32 %v7182_v52, %v6917_v0  ;;  %v7326_v2 = vpop.f32.mrb[38].mxu1 }
 0x158   :  { %v5959_v29 = vpop.eup %5958  ;;  %v975_v26 = vadd.f32 1.0, %v5957_v37  ;;  %2118 = vmatmul.mubr.bf16.gmra.mrb[56].mxu0 %v1195_v44  ;;  %2504 = vmatmul.mubr.bf16.gmra.mrb[120].mxu1 %v1195_v44  ;;  %v1100_v40 = vmul.f32 %v972_v31, %v7235_v3  ;;  %v7329_v30 = vmul.f32 0.5, %v448_v56  ;;  %v7333_v41 = vpop.f32.mrb[39].mxu1  ;;  %v5738_v3 = vld [vmem:[#allocation2 + $0x3c4] ss:$16 sps:$4 sm:$0xff]  }
 0x159   :  { %v5961_v11 = vpop.eup %5960  ;;  %v976_v34 = vadd.f32 1.0, %v5959_v29  ;;  %v7331_v13 = vmul.f32 0.5, %v450_v20  ;;  %2243 = vmatpush1.bf16.msra.mxu0 %v5718_v12  ;;  %2629 = vmatpush1.bf16.msra.mxu1 %v5739_v58  ;;  %5976 = vtanh.f32 %v7322_v54  ;;  %v7337_v51 = vmul.f32 0.5, %v452_v57  ;;  %v5748_v57 = vld [vmem:[#allocation2 + $0x3c8] ss:$16 sps:$4 sm:$0xff]  }
 0x15a   :  { %v5963_v44 = vpop.eup %5962  ;;  %v1103_v19 = vmul.f32 %v975_v26, %v7240_v45  ;;  %v1008_v52 = vadd.f32 1.0, %v5961_v11  ;;  %2244 = vmatprep.subr.bf16.mxu0 %v5729_v53  ;;  %2630 = vmatprep.subr.bf16.mxu1 %v5744_v14  ;;  %5978 = vtanh.f32 %v7329_v30  ;;  %v7343_v58 = vpack.c.bf16 %v7112_v62, %v7066_v6  ;;  %v5736_v26 = vld [vmem:[#allocation2 + $0x3c0] ss:$16 sps:$4 sm:$0xff]  }
 0x15b   :  { %v5965_v17 = vpop.eup %5964  ;;  %v1104_v15 = vmul.f32 %v976_v34, %v7243_v23  ;;  %v1011_v12 = vadd.f32 1.0, %v5963_v44  ;;  %5980 = vtanh.f32 %v7331_v13  ;;  %v458_v11 = vadd.f32 %v7215_v63, %v6917_v0 }
 0x15c   :  { %v5967_v45 = vpop.eup %5966  ;;  %v1136_v37 = vmul.f32 %v1008_v52, %v7208_v38  ;;  %v1012_v31 = vadd.f32 1.0, %v5965_v17  ;;  %v1199_v56 = vpack.c.bf16 %v1103_v19, %v1099_v43  ;;  %5982 = vtanh.f32 %v7337_v51  ;;  %v9740_v19 = vld [vmem:[#allocation13_spill] sm:$0xff] }
 0x15d   :  { %v5969_v53 = vpop.eup %5968  ;;  %v7348_v14 = vmul.f32 %v1011_v12, %v7211_v36  ;;  %v1200_v20 = vpack.c.bf16 %v1104_v15, %v1100_v40  ;;  %v1015_v23 = vadd.f32 1.0, %v5967_v45  ;;  %2245 = vmatpush1.bf16.msra.mxu0 %v5727_v48  ;;  %2631 = vmatpush1.bf16.msra.mxu1 %v5742_v7  ;;  %v454_v38 = vadd.f32 %v7188_v42, %v6921_v10  ;;  %v7360_v36 = vpop.f32.mrb[40].mxu1  ;;  %v5753_v40 = vld [vmem:[#allocation2 + $0x3ec] ss:$16 sps:$4 sm:$0xff]  }
 0x15e   :  { %v5971_v29 = vpop.eup %5970  ;;  %v7352_v6 = vmul.f32 %v1012_v31, %v7252_v22  ;;  %v1016_v62 = vadd.f32 1.0, %v5969_v53  ;;  %v7358_v43 = vpack.c.bf16 %v7246_v50, %v7202_v46  ;;  %2246 = vmatprep.subr.bf16.mxu0 %v5738_v3  ;;  %2632 = vmatprep.subr.bf16.mxu1 %v5750_v60  ;;  %v460_v42 = vadd.f32 %v7221_v33, %v6921_v10  ;;  %v7369_v46 = vpop.f32.mrb[41].mxu1  ;;  %v5747_v50 = vld [vmem:[#allocation2 + $0x3e4] ss:$16 sps:$4 sm:$0xff]   ;;  %v9741_v31 = vld [vmem:[#allocation11_spill] sm:$0xff] }
 0x15f   :  { %2127 = vmatprep.mubr.bf16.mxu0 %v1200_v20  ;;  %2513 = vmatprep.mubr.bf16.mxu1 %v1200_v20  ;;  %v7363_v48 = vmul.f32 %v1015_v23, %v7255_v27  ;;  %v1019_v22 = vadd.f32 1.0, %v5971_v29  ;;  %v5973_v34 = vpop.eup %5972  ;;  %v7372_v44 = vmul.f32 0.5, %v454_v38  ;;  %v462_v27 = vadd.f32 %v7226_v39, %v6917_v0  ;;  %v7380_v52 = vpop.f32.mrb[42].mxu1 }
 0x160   :  { %2128 = vmatmul.mubr.bf16.gmra.mrb[60].mxu0 %v1199_v56  ;;  %2514 = vmatmul.mubr.bf16.gmra.mrb[124].mxu1 %v1199_v56  ;;  %v1144_v7 = vmul.f32 %v1016_v62, %v7272_v4  ;;  %v7378_v63 = vpack.c.bf16 %v9740_v19, %v7161_v5  ;;  %v5975_v33 = vpop.eup %5974  ;;  %v1020_v4 = vadd.f32 1.0, %v5973_v34  ;;  %v7387_v60 = vmul.f32 0.5, %v458_v11  ;;  %v7391_v0 = vpop.f32.mrb[43].mxu1 }
 0x161   :  { %2137 = vmatprep.mubr.bf16.mxu0 %v7264_v18  ;;  %2523 = vmatprep.mubr.bf16.mxu1 %v7264_v18  ;;  %v7385_v3 = vmul.f32 %v1019_v22, %v7278_v61  ;;  %v7389_v17 = vmul.f32 0.5, %v460_v42  ;;  %v1023_v39 = vadd.f32 1.0, %v5975_v33  ;;  %5984 = vtanh.f32 %v7372_v44  ;;  %v5745_v18 = vld [vmem:[#allocation2 + $0x3e0] ss:$16 sps:$4 sm:$0xff]   ;;  %v5751_v61 = vld [vmem:[#allocation2 + $0x3e8] ss:$16 sps:$4 sm:$0xff]  }
 0x162   :  { %v7394_v5 = vmul.f32 0.5, %v462_v27  ;;  %v464_v15 = vadd.f32 %v7232_v21, %v6921_v10  ;;  %2247 = vmatpush1.bf16.msra.mxu0 %v5736_v26  ;;  %2633 = vmatpush1.bf16.msra.mxu1 %v5748_v57  ;;  %v1148_v12 = vmul.f32 %v1020_v4, %v7294_v8  ;;  %5986 = vtanh.f32 %v7387_v60  ;;  %v9742_v21 = vld [vmem:[#allocation12_spill] sm:$0xff] }
 0x163   :  { %v7401_v45 = vpack.c.bf16 %v1136_v37, %v7291_v1  ;;  %v501_v56 = vadd.f32 %v7259_v24, %v9741_v31  ;;  %2248 = vmatprep.subr.bf16.mxu0 %v5747_v50  ;;  %2634 = vmatprep.subr.bf16.mxu1 %v5753_v40  ;;  %v5977_v53 = vpop.eup %5976  ;;  %v7406_v20 = vmul.f32 %v1023_v39, %v7299_v47  ;;  %5988 = vtanh.f32 %v7389_v17 }
 0x164   :  { %v7409_v10 = vmul.f32 0.5, %v464_v15  ;;  %v503_v8 = vadd.f32 %v7268_v16, %v9742_v21  ;;  %v5979_v23 = vpop.eup %5978  ;;  %v1024_v29 = vadd.f32 1.0, %v5977_v53  ;;  %5990 = vtanh.f32 %v7394_v5  ;;  %v7425_v16 = vpop.f32.mrb[44].mxu1 }
 0x165   :  { %v7414_v1 = vmul.f32 0.5, %v501_v56  ;;  %v505_v24 = vadd.f32 %v7274_v28, %v9741_v31  ;;  %v5981_v37 = vpop.eup %5980  ;;  %v1027_v62 = vadd.f32 1.0, %v5979_v23  ;;  %v7423_v38 = vpack.c.bf16 %v7297_v55, %v7250_v35  ;;  %v7431_v11 = vpop.f32.mrb[45].mxu1 }
 0x166   :  { %5992 = vtanh.f32 %v7409_v10  ;;  %v7419_v47 = vmul.f32 0.5, %v503_v8  ;;  %2249 = vmatpush1.bf16.msra.mxu0 %v5745_v18  ;;  %2635 = vmatpush1.bf16.msra.mxu1 %v5751_v61  ;;  %v5983_v26 = vpop.eup %5982  ;;  %v1152_v57 = vmul.f32 %v1024_v29, %v7322_v54  ;;  %v1028_v22 = vadd.f32 1.0, %v5981_v37  ;;  %v7441_v42 = vpop.f32.mrb[46].mxu1 }
 0x167   :  { %5994 = vtanh.f32 %v7414_v1  ;;  %v7429_v28 = vmul.f32 0.5, %v505_v24  ;;  %v7436_v35 = vmul.f32 %v1027_v62, %v7329_v30  ;;  %v1031_v55 = vadd.f32 1.0, %v5983_v26  ;;  %v7452_v40 = vpop.f32.mrb[47].mxu1 }
 0x168   :  { %2138 = vmatmul.mubr.bf16.gmra.mrb[64].mxu0 %v7303_v49  ;;  %2524 = vmatmul.mubr.bf16.gmra.mrb[128].mxu1 %v7303_v49  ;;  %5996 = vtanh.f32 %v7419_v47  ;;  %v507_v54 = vadd.f32 %v7280_v9, %v9742_v21  ;;  %v1156_v50 = vmul.f32 %v1028_v22, %v7331_v13  ;;  %v7448_v49 = vpack.c.bf16 %v1144_v7, %v7352_v6 }
 0x169   :  { %2147 = vmatprep.mubr.bf16.mxu0 %v7310_v32  ;;  %2533 = vmatprep.mubr.bf16.mxu1 %v7310_v32  ;;  %5998 = vtanh.f32 %v7429_v28  ;;  %v511_v30 = vadd.f32 %v7312_v59, %v9741_v31  ;;  %v7455_v9 = vmul.f32 %v1031_v55, %v7337_v51  ;;  %v513_v32 = vadd.f32 %v7319_v25, %v9742_v21 }
 0x16a   :  { %v7457_v34 = vmul.f32 0.5, %v507_v54  ;;  %v515_v13 = vadd.f32 %v7326_v2, %v9741_v31  ;;  %v7467_v6 = vpack.c.bf16 %v7363_v48, %v7348_v14  ;;  %v517_v59 = vadd.f32 %v7333_v41, %v9742_v21 }
 0x16b   :  { %v7463_v27 = vmul.f32 0.5, %v511_v30  ;;  %v7471_v7 = vpack.c.bf16 %v1152_v57, %v1148_v12  ;;  %v5985_v51 = vpop.eup %5984  ;;  %v7474_v19 = vmul.f32 0.5, %v513_v32  ;;  %v521_v2 = vadd.f32 %v7360_v36, %v9741_v31  ;;  %v7490_v61 = vpop.f32.mrb[48].mxu1 }
 0x16c   :  { %6000 = vtanh.f32 %v7457_v34  ;;  %v7476_v25 = vmul.f32 0.5, %v515_v13  ;;  %v5987_v33 = vpop.eup %5986  ;;  %v1032_v4 = vadd.f32 1.0, %v5985_v51  ;;  %v7481_v14 = vmul.f32 0.5, %v517_v59 }
 0x16d   :  { %6002 = vtanh.f32 %v7463_v27  ;;  %v523_v41 = vadd.f32 %v7369_v46, %v9742_v21  ;;  %v5989_v48 = vpop.eup %5988  ;;  %v1035_v39 = vadd.f32 1.0, %v5987_v33  ;;  %v7486_v15 = vmul.f32 0.5, %v521_v2  ;;  %v7496_v46 = vpop.f32.mrb[49].mxu1 }
 0x16e   :  { %6004 = vtanh.f32 %v7474_v19  ;;  %v525_v18 = vadd.f32 %v7380_v52, %v9741_v31  ;;  %v5991_v36 = vpop.eup %5990  ;;  %v1160_v12 = vmul.f32 %v1032_v4, %v7372_v44  ;;  %v1036_v56 = vadd.f32 1.0, %v5989_v48  ;;  %v7506_v44 = vpop.f32.mrb[50].mxu1 }
 0x16f   :  { %6006 = vtanh.f32 %v7476_v25  ;;  %v7494_v53 = vmul.f32 0.5, %v523_v41  ;;  %v7501_v23 = vmul.f32 %v1035_v39, %v7387_v60  ;;  %v1039_v52 = vadd.f32 1.0, %v5991_v36  ;;  %v7516_v60 = vpop.f32.mrb[51].mxu1 }
 0x170   :  { %v5993_v8 = vpop.eup %5992  ;;  %2148 = vmatmul.mubr.bf16.gmra.mrb[68].mxu0 %v7343_v58  ;;  %2534 = vmatmul.mubr.bf16.gmra.mrb[132].mxu1 %v7343_v58  ;;  %6008 = vtanh.f32 %v7481_v14  ;;  %v7504_v29 = vmul.f32 0.5, %v525_v18  ;;  %v1164_v37 = vmul.f32 %v1036_v56, %v7389_v17  ;;  %v7514_v58 = vpack.c.bf16 %v7406_v20, %v7385_v3 }
 0x171   :  { %v5995_v24 = vpop.eup %5994  ;;  %2157 = vmatprep.mubr.bf16.mxu0 %v7358_v43  ;;  %2543 = vmatprep.mubr.bf16.mxu1 %v7358_v43  ;;  %v1040_v62 = vadd.f32 1.0, %v5993_v8  ;;  %6010 = vtanh.f32 %v7486_v15  ;;  %v7519_v57 = vmul.f32 %v1039_v52, %v7394_v5  ;;  %v527_v43 = vadd.f32 %v7391_v0, %v9742_v21 }
 0x172   :  { %v5997_v26 = vpop.eup %5996  ;;  %v917_v22 = vadd.f32 1.0, %v5995_v24  ;;  %6012 = vtanh.f32 %v7494_v53  ;;  %v7526_v3 = vpack.c.bf16 %v1160_v12, %v1156_v50  ;;  %v531_v5 = vadd.f32 %v7425_v16, %v9741_v31 }
 0x173   :  { %v5999_v17 = vpop.eup %5998  ;;  %v1168_v55 = vmul.f32 %v1040_v62, %v7409_v10  ;;  %v918_v54 = vadd.f32 1.0, %v5997_v26  ;;  %6014 = vtanh.f32 %v7504_v29  ;;  %v7529_v32 = vmul.f32 0.5, %v527_v43  ;;  %v550_v16 = vpop.f32.mrb[52].mxu1 }
 0x174   :  { %v1045_v20 = vmul.f32 %v917_v22, %v7414_v1  ;;  %v921_v30 = vadd.f32 1.0, %v5999_v17  ;;  %v533_v0 = vadd.f32 %v7431_v11, %v9742_v21  ;;  %v535_v10 = vadd.f32 %v7441_v42, %v9741_v31 }
 0x175   :  { %v1046_v13 = vmul.f32 %v918_v54, %v7419_v47  ;;  %v7540_v50 = vpack.c.bf16 %v7455_v9, %v7436_v35  ;;  %6016 = vtanh.f32 %v7529_v32  ;;  %v7544_v51 = vmul.f32 0.5, %v531_v5  ;;  %v552_v35 = vpop.f32.mrb[53].mxu1 }
 0x176   :  { %v6001_v59 = vpop.eup %6000  ;;  %v1049_v1 = vmul.f32 %v921_v30, %v7429_v28  ;;  %v537_v47 = vadd.f32 %v7452_v40, %v9742_v21  ;;  %v7548_v33 = vmul.f32 0.5, %v533_v0  ;;  %v7550_v42 = vmul.f32 0.5, %v535_v10  ;;  %v554_v48 = vpop.f32.mrb[54].mxu1 }
 0x177   :  { %v6003_v2 = vpop.eup %6002  ;;  %v922_v11 = vadd.f32 1.0, %v6001_v59  ;;  %v7552_v4 = vpack.c.bf16 %v1168_v55, %v1164_v37  ;;  %6018 = vtanh.f32 %v7544_v51  ;;  %v556_v12 = vpop.f32.mrb[55].mxu1  ;;  %v543_v24 = vadd.f32 %v7496_v46, %v9742_v21 }
 0x178   :  { %v6005_v9 = vpop.eup %6004  ;;  %2158 = vmatmul.mubr.bf16.gmra.mrb[72].mxu0 %v7378_v63  ;;  %2544 = vmatmul.mubr.bf16.gmra.mrb[136].mxu1 %v7378_v63  ;;  %v7556_v28 = vpack.c.bf16 %v1049_v1, %v1045_v20  ;;  %v925_v41 = vadd.f32 1.0, %v6003_v2  ;;  %v7559_v40 = vmul.f32 0.5, %v537_v47  ;;  %6020 = vtanh.f32 %v7548_v33 }
 0x179   :  { %v6007_v39 = vpop.eup %6006  ;;  %2167 = vmatprep.mubr.bf16.mxu0 %v7401_v45  ;;  %2553 = vmatprep.mubr.bf16.mxu1 %v7401_v45  ;;  %v1050_v18 = vmul.f32 %v922_v11, %v7457_v34  ;;  %v926_v36 = vadd.f32 1.0, %v6005_v9  ;;  %v541_v63 = vadd.f32 %v7490_v61, %v9741_v31  ;;  %6022 = vtanh.f32 %v7550_v42 }
 0x17a   :  { %v6009_v56 = vpop.eup %6008  ;;  %v7568_v8 = vmul.f32 %v925_v41, %v7463_v27  ;;  %v929_v52 = vadd.f32 1.0, %v6007_v39  ;;  %6024 = vtanh.f32 %v7559_v40  ;;  %v7580_v22 = vmul.f32 0.5, %v543_v24 }
 0x17b   :  { %v6011_v45 = vpop.eup %6010  ;;  %v1054_v34 = vmul.f32 %v926_v36, %v7474_v19  ;;  %v930_v37 = vadd.f32 1.0, %v6009_v56  ;;  %v7575_v62 = vmul.f32 0.5, %v541_v63  ;;  %v545_v43 = vadd.f32 %v7506_v44, %v9741_v31  ;;  %v560_v30 = vpop.f32.mrb[56].mxu1 }
 0x17c   :  { %v6013_v61 = vpop.eup %6012  ;;  %v7578_v26 = vmul.f32 %v929_v52, %v7476_v25  ;;  %v933_v27 = vadd.f32 1.0, %v6011_v45  ;;  %v7588_v19 = vpack.c.bf16 %v7519_v57, %v7501_v23  ;;  %v7601_v5 = vpack.c.bf16 %v1050_v18, %v1046_v13  ;;  %v562_v57 = vpop.f32.mrb[57].mxu1 }
 0x17d   :  { %v6015_v17 = vpop.eup %6014  ;;  %v1058_v46 = vmul.f32 %v930_v37, %v7481_v14  ;;  %v934_v55 = vadd.f32 1.0, %v6013_v61  ;;  %6026 = vtanh.f32 %v7575_v62  ;;  %v7594_v20 = vmul.f32 0.5, %v545_v43 }
 0x17e   :  { %v7591_v54 = vmul.f32 %v933_v27, %v7486_v15  ;;  %v937_v25 = vadd.f32 1.0, %v6015_v17  ;;  %6028 = vtanh.f32 %v7580_v22  ;;  %v547_v14 = vadd.f32 %v7516_v60, %v9742_v21  ;;  %v564_v60 = vpop.f32.mrb[58].mxu1 }
 0x17f   :  { %v7597_v44 = vmul.f32 %v934_v55, %v7494_v53  ;;  %v551_v23 = vadd.f32 %v550_v16, %v9741_v31  ;;  %v6017_v0 = vpop.eup %6016  ;;  %6030 = vtanh.f32 %v7594_v20  ;;  %v553_v53 = vadd.f32 %v552_v35, %v9742_v21 }
 0x180   :  { %2168 = vmatmul.mubr.bf16.gmra.mrb[76].mxu0 %v7423_v38  ;;  %2554 = vmatmul.mubr.bf16.gmra.mrb[140].mxu1 %v7423_v38  ;;  %v7607_v15 = vmul.f32 %v937_v25, %v7504_v29  ;;  %v555_v10 = vadd.f32 %v554_v48, %v9741_v31  ;;  %v938_v13 = vadd.f32 1.0, %v6017_v0  ;;  %v7614_v59 = vmul.f32 0.5, %v547_v14  ;;  %v566_v29 = vpop.f32.mrb[59].mxu1 }
 0x181   :  { %2177 = vmatprep.mubr.bf16.mxu0 %v7448_v49  ;;  %2563 = vmatprep.mubr.bf16.mxu1 %v7448_v49  ;;  %v7616_v1 = vmul.f32 0.5, %v551_v23  ;;  %v557_v38 = vadd.f32 %v556_v12, %v9742_v21  ;;  %v6019_v47 = vpop.eup %6018  ;;  %v7619_v16 = vmul.f32 0.5, %v553_v53  ;;  %v7623_v11 = vpack.c.bf16 %v1058_v46, %v1054_v34 }
 0x182   :  { %v7621_v2 = vmul.f32 0.5, %v555_v10  ;;  %v561_v35 = vadd.f32 %v560_v30, %v9741_v31  ;;  %v6021_v9 = vpop.eup %6020  ;;  %v1066_v49 = vmul.f32 %v938_v13, %v7529_v32  ;;  %v941_v41 = vadd.f32 1.0, %v6019_v47 }
 0x183   :  { %6032 = vtanh.f32 %v7614_v59  ;;  %v7628_v48 = vmul.f32 0.5, %v557_v38  ;;  %v6023_v39 = vpop.eup %6022  ;;  %v942_v18 = vadd.f32 1.0, %v6021_v9  ;;  %v563_v63 = vadd.f32 %v562_v57, %v9742_v21  ;;  %v570_v37 = vpop.f32.mrb[60].mxu1 }
 0x184   :  { %6034 = vtanh.f32 %v7616_v1  ;;  %v7631_v36 = vmul.f32 0.5, %v561_v35  ;;  %v6025_v12 = vpop.eup %6024  ;;  %v1069_v56 = vmul.f32 %v941_v41, %v7544_v51  ;;  %v945_v52 = vadd.f32 1.0, %v6023_v39  ;;  %v572_v17 = vpop.f32.mrb[61].mxu1 }
 0x185   :  { %6036 = vtanh.f32 %v7619_v16  ;;  %v565_v32 = vadd.f32 %v564_v60, %v9741_v31  ;;  %v1070_v24 = vmul.f32 %v942_v18, %v7548_v33  ;;  %v946_v45 = vadd.f32 1.0, %v6025_v12  ;;  %v574_v25 = vpop.f32.mrb[62].mxu1 }
 0x186   :  { %6038 = vtanh.f32 %v7621_v2  ;;  %v7639_v34 = vmul.f32 0.5, %v563_v63  ;;  %v1073_v27 = vmul.f32 %v945_v52, %v7550_v42  ;;  %v7647_v51 = vpack.c.bf16 %v7578_v26, %v7568_v8  ;;  %v576_v30 = vpop.f32.mrb[63].mxu1 }
 0x187   :  { %v6027_v61 = vpop.eup %6026  ;;  %6040 = vtanh.f32 %v7628_v48  ;;  %v7643_v43 = vmul.f32 0.5, %v565_v32  ;;  %v1074_v33 = vmul.f32 %v946_v45, %v7559_v40  ;;  %v567_v42 = vadd.f32 %v566_v29, %v9742_v21 }
 0x188   :  { %v6029_v46 = vpop.eup %6028  ;;  %2178 = vmatmul.mubr.bf16.gmra.mrb[80].mxu0 %v7467_v6  ;;  %2564 = vmatmul.mubr.bf16.gmra.mrb[144].mxu1 %v7467_v6  ;;  %v949_v55 = vadd.f32 1.0, %v6027_v61  ;;  %6042 = vtanh.f32 %v7631_v36  ;;  %v7658_v26 = vpack.c.bf16 %v1066_v49, %v7597_v44  ;;  %v571_v6 = vadd.f32 %v570_v37, %v9741_v31 }
 0x189   :  { %2187 = vmatprep.mubr.bf16.mxu0 %v7471_v7  ;;  %2573 = vmatprep.mubr.bf16.mxu1 %v7471_v7  ;;  %v950_v8 = vadd.f32 1.0, %v6029_v46  ;;  %6044 = vtanh.f32 %v7639_v34  ;;  %v6031_v40 = vpop.eup %6030  ;;  %v7663_v23 = vmul.f32 0.5, %v567_v42  ;;  %v573_v57 = vadd.f32 %v572_v17, %v9742_v21  ;;  %v5756_v42 = vld [vmem:[#allocation4 + $0x4] ss:$8 sps:$4 sm:$0xff]  }
 0x18a   :  { %v1077_v14 = vmul.f32 %v949_v55, %v7575_v62  ;;  %6046 = vtanh.f32 %v7643_v43  ;;  %v953_v0 = vadd.f32 1.0, %v6031_v40  ;;  %v7667_v53 = vmul.f32 0.5, %v571_v6  ;;  %3769 = vmatprep.subr.bf16.mxu0 %v5756_v42 }
 0x18b   :  { %v1078_v7 = vmul.f32 %v950_v8, %v7580_v22  ;;  %v575_v44 = vadd.f32 %v574_v25, %v9741_v31  ;;  %6048 = vtanh.f32 %v7663_v23  ;;  %v7671_v10 = vmul.f32 0.5, %v573_v57  ;;  %v580_v49 = vpop.f32.mrb[64].mxu1 }
 0x18c   :  { %v7675_v62 = vpack.c.bf16 %v7607_v15, %v7591_v54  ;;  %v577_v60 = vadd.f32 %v576_v30, %v9742_v21  ;;  %v1081_v38 = vmul.f32 %v953_v0, %v7594_v20  ;;  %6050 = vtanh.f32 %v7667_v53  ;;  %v582_v39 = vpop.f32.mrb[65].mxu1 }
 0x18d   :  { %v6033_v13 = vpop.eup %6032  ;;  %v7680_v22 = vmul.f32 0.5, %v575_v44  ;;  %v7682_v29 = vpack.c.bf16 %v1074_v33, %v1070_v24  ;;  %6052 = vtanh.f32 %v7671_v10  ;;  %v7687_v54 = vpack.c.bf16 %v1073_v27, %v1069_v56  ;;  %v584_v32 = vpop.f32.mrb[66].mxu1 }
 0x18e   :  { %v6035_v47 = vpop.eup %6034  ;;  %v954_v35 = vadd.f32 1.0, %v6033_v13  ;;  %v7685_v9 = vmul.f32 0.5, %v577_v60  ;;  %v581_v20 = vadd.f32 %v580_v49, %v9741_v31  ;;  %v7691_v18 = vpack.c.bf16 %v1081_v38, %v1077_v14  ;;  %v586_v27 = vpop.f32.mrb[67].mxu1 }
 0x18f   :  { %v6037_v15 = vpop.eup %6036  ;;  %v957_v41 = vadd.f32 1.0, %v6035_v47  ;;  %6054 = vtanh.f32 %v7680_v22  ;;  %v583_v56 = vadd.f32 %v582_v39, %v9742_v21  ;;  %v587_v55 = vadd.f32 %v586_v27, %v9742_v21 }
 0x190   :  { %v6039_v63 = vpop.eup %6038  ;;  %2188 = vmatmul.mubr.bf16.gmra.mrb[84].mxu0 %v7514_v58  ;;  %2574 = vmatmul.mubr.bf16.gmra.mrb[148].mxu1 %v7514_v58  ;;  %v1082_v12 = vmul.f32 %v954_v35, %v7614_v59  ;;  %v958_v52 = vadd.f32 1.0, %v6037_v15  ;;  %6056 = vtanh.f32 %v7685_v9  ;;  %v7701_v61 = vmul.f32 0.5, %v581_v20 }
 0x191   :  { %v6041_v24 = vpop.eup %6040  ;;  %2197 = vmatprep.mubr.bf16.mxu0 %v7526_v3  ;;  %2583 = vmatprep.mubr.bf16.mxu1 %v7526_v3  ;;  %v1085_v45 = vmul.f32 %v957_v41, %v7616_v1  ;;  %v961_v37 = vadd.f32 1.0, %v6039_v63  ;;  %v585_v58 = vadd.f32 %v584_v32, %v9741_v31  ;;  %v7705_v33 = vmul.f32 0.5, %v583_v56 }
 0x192   :  { %v6043_v59 = vpop.eup %6042  ;;  %v1086_v17 = vmul.f32 %v958_v52, %v7619_v16  ;;  %v962_v46 = vadd.f32 1.0, %v6041_v24  ;;  %6058 = vtanh.f32 %v7701_v61  ;;  %v7714_v16 = vmul.f32 0.5, %v587_v55 }
 0x193   :  { %v6045_v25 = vpop.eup %6044  ;;  %v1089_v3 = vmul.f32 %v961_v37, %v7621_v2  ;;  %v965_v8 = vadd.f32 1.0, %v6043_v59  ;;  %v7710_v1 = vmul.f32 0.5, %v585_v58  ;;  %6060 = vtanh.f32 %v7705_v33  ;;  %v590_v0 = vpop.f32.mrb[68].mxu1 }
 0x194   :  { %v6047_v6 = vpop.eup %6046  ;;  %v1090_v30 = vmul.f32 %v962_v46, %v7628_v48  ;;  %v966_v40 = vadd.f32 1.0, %v6045_v25  ;;  %v7717_v57 = vpack.c.bf16 %v1082_v12, %v1078_v7  ;;  %v591_v47 = vadd.f32 %v590_v0, %v9741_v31  ;;  %v592_v35 = vpop.f32.mrb[69].mxu1 }
 0x195   :  { %v969_v14 = vadd.f32 1.0, %v6047_v6  ;;  %6062 = vtanh.f32 %v7710_v1  ;;  %v6049_v2 = vpop.eup %6048  ;;  %v7722_v60 = vpack.c.bf16 %v1089_v3, %v1085_v45  ;;  %v1093_v13 = vmul.f32 %v965_v8, %v7631_v36  ;;  %v594_v39 = vpop.f32.mrb[70].mxu1 }
 0x196   :  { %6064 = vtanh.f32 %v7714_v16  ;;  %v7720_v44 = vpack.c.bf16 %v1090_v30, %v1086_v17  ;;  %v6051_v48 = vpop.eup %6050  ;;  %v970_v38 = vadd.f32 1.0, %v6049_v2  ;;  %v1094_v7 = vmul.f32 %v966_v40, %v7639_v34  ;;  %v596_v56 = vpop.f32.mrb[71].mxu1 }
 0x197   :  { %v6053_v49 = vpop.eup %6052  ;;  %v1097_v15 = vmul.f32 %v969_v14, %v7643_v43  ;;  %v973_v41 = vadd.f32 1.0, %v6051_v48  ;;  %v593_v20 = vadd.f32 %v592_v35, %v9742_v21  ;;  %v7734_v52 = vmul.f32 0.5, %v591_v47 }
 0x198   :  { %2198 = vmatmul.mubr.bf16.gmra.mrb[88].mxu0 %v7540_v50  ;;  %2584 = vmatmul.mubr.bf16.gmra.mrb[152].mxu1 %v7540_v50  ;;  %v1098_v36 = vmul.f32 %v970_v38, %v7663_v23  ;;  %v974_v12 = vadd.f32 1.0, %v6053_v49  ;;  %v595_v50 = vadd.f32 %v594_v39, %v9741_v31  ;;  %v597_v45 = vadd.f32 %v596_v56, %v9742_v21 }
 0x199   :  { %v6055_v63 = vpop.eup %6054  ;;  %2207 = vmatprep.mubr.bf16.mxu0 %v7552_v4  ;;  %2593 = vmatprep.mubr.bf16.mxu1 %v7552_v4  ;;  %v1101_v43 = vmul.f32 %v973_v41, %v7667_v53  ;;  %v7738_v24 = vmul.f32 0.5, %v593_v20  ;;  %6066 = vtanh.f32 %v7734_v52  ;;  %v7753_v46 = vpack.c.bf16 %v1097_v15, %v1093_v13 }
 0x19a   :  { %v6057_v34 = vpop.eup %6056  ;;  %v977_v32 = vadd.f32 1.0, %v6055_v63  ;;  %v1102_v37 = vmul.f32 %v974_v12, %v7671_v10  ;;  %v7743_v4 = vmul.f32 0.5, %v595_v50  ;;  %v7747_v27 = vmul.f32 0.5, %v597_v45  ;;  %v5754_v63 = vld [vmem:[#allocation4] ss:$8 sps:$4 sm:$0xff]  }
 0x19b   :  { %v978_v58 = vadd.f32 1.0, %v6057_v34  ;;  %6068 = vtanh.f32 %v7738_v24  ;;  %v7749_v59 = vpack.c.bf16 %v1098_v36, %v1094_v7  ;;  %v600_v42 = vpop.f32.mrb[72].mxu1  ;;  %v5759_v34 = vld [vmem:[#allocation4 + $0x14] ss:$8 sps:$4 sm:$0xff]  }
 0x19c   :  { %v1105_v23 = vmul.f32 %v977_v32, %v7680_v22  ;;  %v6059_v53 = vpop.eup %6058  ;;  %6070 = vtanh.f32 %v7743_v4  ;;  %v601_v8 = vadd.f32 %v600_v42, %v9741_v31  ;;  %v602_v6 = vpop.f32.mrb[73].mxu1 }
 0x19d   :  { %v1106_v17 = vmul.f32 %v978_v58, %v7685_v9  ;;  %v6061_v10 = vpop.eup %6060  ;;  %v981_v55 = vadd.f32 1.0, %v6059_v53  ;;  %6072 = vtanh.f32 %v7747_v27  ;;  %v603_v2 = vadd.f32 %v602_v6, %v9742_v21  ;;  %v604_v0 = vpop.f32.mrb[74].mxu1 }
 0x19e   :  { %v7756_v25 = vpack.c.bf16 %v1105_v23, %v1101_v43  ;;  %v982_v3 = vadd.f32 1.0, %v6061_v10  ;;  %v7768_v38 = vmul.f32 0.5, %v601_v8  ;;  %v605_v47 = vadd.f32 %v604_v0, %v9741_v31  ;;  %v606_v35 = vpop.f32.mrb[75].mxu1 }
 0x19f   :  { %v6063_v22 = vpop.eup %6062  ;;  %v7759_v30 = vpack.c.bf16 %v1106_v17, %v1102_v37  ;;  %v1109_v9 = vmul.f32 %v981_v55, %v7701_v61  ;;  %v7772_v49 = vmul.f32 0.5, %v603_v2  ;;  %v607_v61 = vadd.f32 %v606_v35, %v9742_v21  ;;  %v5760_v2 = vld [vmem:[#allocation4 + $0x20] ss:$8 sps:$4 sm:$0xff]   ;;  %v5765_v35 = vld [vmem:[#allocation4 + $0x34] ss:$8 sps:$4 sm:$0xff]  }
 0x1a0   :  { %v6065_v40 = vpop.eup %6064  ;;  %2208 = vmatmul.mubr.bf16.gmra.mrb[92].mxu0 %v7588_v19  ;;  %2594 = vmatmul.mubr.bf16.gmra.mrb[156].mxu1 %v7588_v19  ;;  %v985_v14 = vadd.f32 1.0, %v6063_v22  ;;  %v1110_v48 = vmul.f32 %v982_v3, %v7705_v33  ;;  %6074 = vtanh.f32 %v7768_v38  ;;  %v7777_v15 = vmul.f32 0.5, %v605_v47  ;;  %v5757_v22 = vld [vmem:[#allocation4 + $0x10] ss:$8 sps:$4 sm:$0xff]  }
 0x1a1   :  { %2250 = vmatprep.mubr.bf16.mxu0 %v7601_v5  ;;  %2636 = vmatprep.mubr.bf16.mxu1 %v7601_v5  ;;  %v986_v13 = vadd.f32 1.0, %v6065_v40  ;;  %6076 = vtanh.f32 %v7772_v49  ;;  %v7780_v5 = vmul.f32 0.5, %v607_v61 }
 0x1a2   :  { %v1113_v19 = vmul.f32 %v985_v14, %v7710_v1  ;;  %6078 = vtanh.f32 %v7777_v15 }
 0x1a3   :  { %v1114_v7 = vmul.f32 %v986_v13, %v7714_v16  ;;  %v6067_v41 = vpop.eup %6066  ;;  %6080 = vtanh.f32 %v7780_v5  ;;  %v610_v16 = vpop.f32.mrb[76].mxu1 }
 0x1a4   :  { %v7782_v33 = vpack.c.bf16 %v1113_v19, %v1109_v9  ;;  %v989_v39 = vadd.f32 1.0, %v6067_v41  ;;  %v611_v50 = vadd.f32 %v610_v16, %v9741_v31  ;;  %v612_v56 = vpop.f32.mrb[77].mxu1 }
 0x1a5   :  { %v7785_v1 = vpack.c.bf16 %v1114_v7, %v1110_v48  ;;  %v6069_v20 = vpop.eup %6068  ;;  %v613_v37 = vadd.f32 %v612_v56, %v9742_v21  ;;  %v614_v58 = vpop.f32.mrb[78].mxu1  ;;  %v5763_v56 = vld [vmem:[#allocation4 + $0x30] ss:$8 sps:$4 sm:$0xff]  }
 0x1a6   :  { %v6071_v36 = vpop.eup %6070  ;;  %v990_v12 = vadd.f32 1.0, %v6069_v20  ;;  %v1117_v32 = vmul.f32 %v989_v39, %v7734_v52  ;;  %v7796_v17 = vmul.f32 0.5, %v611_v50  ;;  %v615_v10 = vadd.f32 %v614_v58, %v9741_v31  ;;  %v616_v55 = vpop.f32.mrb[79].mxu1 }
 0x1a7   :  { %v6073_v43 = vpop.eup %6072  ;;  %v993_v45 = vadd.f32 1.0, %v6071_v36  ;;  %v7800_v42 = vmul.f32 0.5, %v613_v37  ;;  %v617_v52 = vadd.f32 %v616_v55, %v9742_v21 }
 0x1a8   :  { %2251 = vmatmul.mubr.bf16.vlgmr.msra.gmra.mrb[32].mxu0 %v7556_v28  ;;  %2637 = vmatmul.mubr.bf16.vlgmr.msra.gmra.mrb[96].mxu1 %v7556_v28  ;;  %v1118_v23 = vmul.f32 %v990_v12, %v7738_v24  ;;  %v994_v53 = vadd.f32 1.0, %v6073_v43  ;;  %6082 = vtanh.f32 %v7796_v17  ;;  %v5762_v24 = vld [vmem:[#allocation4 + $0x24] ss:$8 sps:$4 sm:$0xff]  }
 0x1a9   :  { %2260 = vmatprep.mubr.bf16.mxu0 %v7623_v11  ;;  %2646 = vmatprep.mubr.bf16.mxu1 %v7623_v11  ;;  %v1121_v28 = vmul.f32 %v993_v45, %v7743_v4  ;;  %v7805_v11 = vmul.f32 0.5, %v615_v10  ;;  %6084 = vtanh.f32 %v7800_v42  ;;  %v7808_v8 = vmul.f32 0.5, %v617_v52  ;;  %v5771_v52 = vld [vmem:[#allocation4 + $0x54] ss:$8 sps:$4 sm:$0xff]  }
 0x1aa   :  { %3770 = vmatpush1.bf16.msra.mxu0 %v5754_v63  ;;  %v1122_v3 = vmul.f32 %v994_v53, %v7747_v27  ;;  %v6075_v4 = vpop.eup %6074 }
 0x1ab   :  { %3771 = vmatprep.subr.bf16.mxu0 %v5759_v34  ;;  %v7810_v6 = vpack.c.bf16 %v1121_v28, %v1117_v32  ;;  %6086 = vtanh.f32 %v7805_v11  ;;  %v6077_v9 = vpop.eup %6076  ;;  %v997_v14 = vadd.f32 1.0, %v6075_v4  ;;  %v620_v27 = vpop.f32.mrb[80].mxu1 }
 0x1ac   :  { %v7813_v40 = vpack.c.bf16 %v1122_v3, %v1118_v23  ;;  %6088 = vtanh.f32 %v7808_v8  ;;  %v6079_v0 = vpop.eup %6078  ;;  %v998_v48 = vadd.f32 1.0, %v6077_v9  ;;  %v621_v13 = vadd.f32 %v620_v27, %v9741_v31  ;;  %v622_v47 = vpop.f32.mrb[81].mxu1  ;;  %v5766_v23 = vld [vmem:[#allocation4 + $0x40] ss:$8 sps:$4 sm:$0xff]  }
 0x1ad   :  { %v6081_v19 = vpop.eup %6080  ;;  %v1125_v61 = vmul.f32 %v997_v14, %v7768_v38  ;;  %v1001_v7 = vadd.f32 1.0, %v6079_v0  ;;  %v623_v41 = vadd.f32 %v622_v47, %v9742_v21  ;;  %v624_v20 = vpop.f32.mrb[82].mxu1  ;;  %v5769_v47 = vld [vmem:[#allocation4 + $0x50] ss:$8 sps:$4 sm:$0xff]  }
 0x1ae   :  { %3772 = vmatpush1.bf16.msra.mxu0 %v5757_v22  ;;  %v1126_v39 = vmul.f32 %v998_v48, %v7772_v49  ;;  %v1002_v16 = vadd.f32 1.0, %v6081_v19  ;;  %v7824_v63 = vmul.f32 0.5, %v621_v13  ;;  %v625_v36 = vadd.f32 %v624_v20, %v9741_v31  ;;  %v626_v12 = vpop.f32.mrb[83].mxu1  ;;  %v5768_v49 = vld [vmem:[#allocation4 + $0x44] ss:$8 sps:$4 sm:$0xff]  }
 0x1af   :  { %3773 = vmatprep.subr.bf16.mxu0 %v5762_v24  ;;  %v7828_v50 = vmul.f32 0.5, %v623_v41  ;;  %v627_v38 = vadd.f32 %v626_v12, %v9742_v21 }
 0x1b0   :  { %2261 = vmatmul.mubr.bf16.gmra.mrb[36].mxu0 %v7647_v51  ;;  %2647 = vmatmul.mubr.bf16.gmra.mrb[100].mxu1 %v7647_v51  ;;  %v1129_v51 = vmul.f32 %v1001_v7, %v7777_v15  ;;  %v1130_v34 = vmul.f32 %v1002_v16, %v7780_v5  ;;  %6090 = vtanh.f32 %v7824_v63 }
 0x1b1   :  { %2270 = vmatprep.mubr.bf16.mxu0 %v7658_v26  ;;  %2656 = vmatprep.mubr.bf16.mxu1 %v7658_v26  ;;  %v7833_v26 = vmul.f32 0.5, %v625_v36  ;;  %6092 = vtanh.f32 %v7828_v50  ;;  %v7836_v43 = vmul.f32 0.5, %v627_v38  ;;  %v5777_v38 = vld [vmem:[#allocation4 + $0x74] ss:$8 sps:$4 sm:$0xff]  }
 0x1b2   :  { %3774 = vmatpush1.bf16.msra.mxu0 %v5760_v2  ;;  %v7838_v32 = vpack.c.bf16 %v1129_v51, %v1125_v61  ;;  %v6083_v15 = vpop.eup %6082  ;;  %v7841_v45 = vpack.c.bf16 %v1130_v34, %v1126_v39  ;;  %v5772_v39 = vld [vmem:[#allocation4 + $0x60] ss:$8 sps:$4 sm:$0xff]  }
 0x1b3   :  { %3775 = vmatprep.subr.bf16.mxu0 %v5765_v35  ;;  %6094 = vtanh.f32 %v7833_v26  ;;  %v6085_v37 = vpop.eup %6084  ;;  %v1005_v58 = vadd.f32 1.0, %v6083_v15  ;;  %v630_v5 = vpop.f32.mrb[84].mxu1 }
 0x1b4   :  { %6096 = vtanh.f32 %v7836_v43  ;;  %v1006_v10 = vadd.f32 1.0, %v6085_v37  ;;  %v631_v55 = vadd.f32 %v630_v5, %v9741_v31  ;;  %v632_v28 = vpop.f32.mrb[85].mxu1 }
 0x1b5   :  { %v6087_v53 = vpop.eup %6086  ;;  %v1133_v3 = vmul.f32 %v1005_v58, %v7796_v17  ;;  %v633_v4 = vadd.f32 %v632_v28, %v9742_v21  ;;  %v634_v9 = vpop.f32.mrb[86].mxu1  ;;  %v5775_v28 = vld [vmem:[#allocation4 + $0x70] ss:$8 sps:$4 sm:$0xff]  }
 0x1b6   :  { %3776 = vmatpush1.bf16.msra.mxu0 %v5763_v56  ;;  %v6089_v22 = vpop.eup %6088  ;;  %v1009_v24 = vadd.f32 1.0, %v6087_v53  ;;  %v1134_v14 = vmul.f32 %v1006_v10, %v7800_v42  ;;  %v7852_v2 = vmul.f32 0.5, %v631_v55  ;;  %v635_v0 = vadd.f32 %v634_v9, %v9741_v31  ;;  %v636_v48 = vpop.f32.mrb[87].mxu1  ;;  %v5774_v42 = vld [vmem:[#allocation4 + $0x64] ss:$8 sps:$4 sm:$0xff]  }
 0x1b7   :  { %3777 = vmatprep.subr.bf16.mxu0 %v5768_v49  ;;  %v1010_v27 = vadd.f32 1.0, %v6089_v22  ;;  %v7856_v13 = vmul.f32 0.5, %v633_v4  ;;  %v637_v17 = vadd.f32 %v636_v48, %v9742_v21 }
 0x1b8   :  { %2271 = vmatmul.mubr.bf16.gmra.mrb[40].mxu0 %v7675_v62  ;;  %2657 = vmatmul.mubr.bf16.gmra.mrb[104].mxu1 %v7675_v62  ;;  %v1137_v62 = vmul.f32 %v1009_v24, %v7805_v11  ;;  %6098 = vtanh.f32 %v7852_v2 }
 0x1b9   :  { %2280 = vmatprep.mubr.bf16.mxu0 %v7682_v29  ;;  %2666 = vmatprep.mubr.bf16.mxu1 %v7682_v29  ;;  %v1138_v35 = vmul.f32 %v1010_v27, %v7808_v8  ;;  %v7861_v29 = vmul.f32 0.5, %v635_v0  ;;  %6100 = vtanh.f32 %v7856_v13  ;;  %v7864_v19 = vmul.f32 0.5, %v637_v17  ;;  %v5783_v17 = vld [vmem:[#allocation4 + $0x94] ss:$8 sps:$4 sm:$0xff]  }
 0x1ba   :  { %3778 = vmatpush1.bf16.msra.mxu0 %v5766_v23  ;;  %v7866_v61 = vpack.c.bf16 %v1137_v62, %v1133_v3  ;;  %v6091_v11 = vpop.eup %6090 }
 0x1bb   :  { %3779 = vmatprep.subr.bf16.mxu0 %v5771_v52  ;;  %6102 = vtanh.f32 %v7861_v29  ;;  %v7869_v7 = vpack.c.bf16 %v1138_v35, %v1134_v14  ;;  %v6093_v41 = vpop.eup %6092  ;;  %v1013_v20 = vadd.f32 1.0, %v6091_v11  ;;  %v640_v8 = vpop.f32.mrb[88].mxu1  ;;  %v5778_v14 = vld [vmem:[#allocation4 + $0x80] ss:$8 sps:$4 sm:$0xff]  }
 0x1bc   :  { %6104 = vtanh.f32 %v7864_v19  ;;  %v1014_v36 = vadd.f32 1.0, %v6093_v41  ;;  %v641_v12 = vadd.f32 %v640_v8, %v9741_v31  ;;  %v642_v51 = vpop.f32.mrb[89].mxu1 }
 0x1bd   :  { %v6095_v16 = vpop.eup %6094  ;;  %v1141_v34 = vmul.f32 %v1013_v20, %v7824_v63  ;;  %v643_v15 = vadd.f32 %v642_v51, %v9742_v21  ;;  %v644_v37 = vpop.f32.mrb[90].mxu1  ;;  %v5781_v51 = vld [vmem:[#allocation4 + $0x90] ss:$8 sps:$4 sm:$0xff]  }
 0x1be   :  { %3780 = vmatpush1.bf16.msra.mxu0 %v5769_v47  ;;  %v6097_v56 = vpop.eup %6096  ;;  %v1017_v49 = vadd.f32 1.0, %v6095_v16  ;;  %v1142_v58 = vmul.f32 %v1014_v36, %v7828_v50  ;;  %v7880_v23 = vmul.f32 0.5, %v641_v12  ;;  %v645_v53 = vadd.f32 %v644_v37, %v9741_v31  ;;  %v646_v10 = vpop.f32.mrb[91].mxu1  ;;  %v5780_v50 = vld [vmem:[#allocation4 + $0x84] ss:$8 sps:$4 sm:$0xff]  }
 0x1bf   :  { %3781 = vmatprep.subr.bf16.mxu0 %v5774_v42  ;;  %v1018_v5 = vadd.f32 1.0, %v6097_v56  ;;  %v7884_v55 = vmul.f32 0.5, %v643_v15  ;;  %v647_v63 = vadd.f32 %v646_v10, %v9742_v21 }
 0x1c0   :  { %2281 = vmatmul.mubr.bf16.gmra.mrb[44].mxu0 %v7687_v54  ;;  %2667 = vmatmul.mubr.bf16.gmra.mrb[108].mxu1 %v7687_v54  ;;  %v1145_v54 = vmul.f32 %v1017_v49, %v7833_v26  ;;  %6106 = vtanh.f32 %v7880_v23 }
 0x1c1   :  { %2290 = vmatprep.mubr.bf16.mxu0 %v7717_v57  ;;  %2676 = vmatprep.mubr.bf16.mxu1 %v7717_v57  ;;  %v1146_v52 = vmul.f32 %v1018_v5, %v7836_v43  ;;  %v7889_v57 = vmul.f32 0.5, %v645_v53  ;;  %6108 = vtanh.f32 %v7884_v55  ;;  %v7892_v22 = vmul.f32 0.5, %v647_v63 }
 0x1c2   :  { %3782 = vmatpush1.bf16.msra.mxu0 %v5772_v39  ;;  %v7894_v3 = vpack.c.bf16 %v1145_v54, %v1141_v34  ;;  %v6099_v26 = vpop.eup %6098 }
 0x1c3   :  { %3783 = vmatprep.subr.bf16.mxu0 %v5777_v38  ;;  %6110 = vtanh.f32 %v7889_v57  ;;  %v7897_v24 = vpack.c.bf16 %v1146_v52, %v1142_v58  ;;  %v6101_v4 = vpop.eup %6100  ;;  %v1021_v9 = vadd.f32 1.0, %v6099_v26  ;;  %v650_v43 = vpop.f32.mrb[92].mxu1  ;;  %v5787_v52 = vld [vmem:[#allocation4 + $0xb0] ss:$8 sps:$4 sm:$0xff]   ;;  %v5792_v26 = vld [vmem:[#allocation4 + $0xc4] ss:$8 sps:$4 sm:$0xff]  }
 0x1c4   :  { %6112 = vtanh.f32 %v7892_v22  ;;  %v1022_v0 = vadd.f32 1.0, %v6101_v4  ;;  %v651_v48 = vadd.f32 %v650_v43, %v9741_v31  ;;  %v652_v62 = vpop.f32.mrb[93].mxu1 }
 0x1c5   :  { %v6103_v27 = vpop.eup %6102  ;;  %v1149_v35 = vmul.f32 %v1021_v9, %v7852_v2  ;;  %v653_v11 = vadd.f32 %v652_v62, %v9742_v21  ;;  %v654_v41 = vpop.f32.mrb[94].mxu1 }
 0x1c6   :  { %3784 = vmatpush1.bf16.msra.mxu0 %v5775_v28  ;;  %v6105_v47 = vpop.eup %6104  ;;  %v1025_v42 = vadd.f32 1.0, %v6103_v27  ;;  %v1150_v20 = vmul.f32 %v1022_v0, %v7856_v13  ;;  %v781_v39 = vmul.f32 0.5, %v651_v48  ;;  %v655_v16 = vadd.f32 %v654_v41, %v9741_v31  ;;  %v656_v36 = vpop.f32.mrb[95].mxu1 }
 0x1c7   :  { %3785 = vmatprep.subr.bf16.mxu0 %v5780_v50  ;;  %v1026_v8 = vadd.f32 1.0, %v6105_v47  ;;  %v657_v2 = vadd.f32 %v656_v36, %v9742_v21  ;;  %v5784_v21 = vld [vmem:[#allocation4 + $0xa0] ss:$8 sps:$4 sm:$0xff]  }
 0x1c8   :  { %2291 = vmatmul.mubr.bf16.gmra.mrb[48].mxu0 %v7691_v18  ;;  %2677 = vmatmul.mubr.bf16.gmra.mrb[112].mxu1 %v7691_v18  ;;  %v1153_v12 = vmul.f32 %v1025_v42, %v7861_v29  ;;  %v782_v18 = vmul.f32 0.5, %v653_v11  ;;  %6114 = vtanh.f32 %v781_v39  ;;  %v785_v56 = vmul.f32 0.5, %v655_v16  ;;  %v9746_v42 = vld [vmem:[#allocation10_spill] sm:$0xff] }
 0x1c9   :  { %2300 = vmatprep.mubr.bf16.mxu0 %v7720_v44  ;;  %2686 = vmatprep.mubr.bf16.mxu1 %v7720_v44  ;;  %v1154_v38 = vmul.f32 %v1026_v8, %v7864_v19  ;;  %v5786_v44 = vld [vmem:[#allocation4 + $0xa4] ss:$8 sps:$4 sm:$0xff]   ;;  %v786_v13 = vmul.f32 0.5, %v657_v2  ;;  %v5789_v19 = vld [vmem:[#allocation4 + $0xb4] ss:$8 sps:$4 sm:$0xff]  }
 0x1ca   :  { %3786 = vmatpush1.bf16.msra.mxu0 %v5778_v14  ;;  %6116 = vtanh.f32 %v782_v18  ;;  %v7912_v34 = vpack.c.bf16 %v1153_v12, %v1149_v35  ;;  %v6107_v49 = vpop.eup %6106  ;;  %v5790_v14 = vld [vmem:[#allocation4 + $0xc0] ss:$8 sps:$4 sm:$0xff]  }
 0x1cb   :  { %3787 = vmatprep.subr.bf16.mxu0 %v5783_v17  ;;  %6118 = vtanh.f32 %v785_v56  ;;  %v7914_v31 = vpack.c.bf16 %v1154_v38, %v1150_v20  ;;  %v6109_v29 = vpop.eup %6108  ;;  %v1029_v15 = vadd.f32 1.0, %v6107_v49 }
 0x1cc   :  { %6120 = vtanh.f32 %v786_v13  ;;  %v1030_v58 = vadd.f32 1.0, %v6109_v29 }
 0x1cd   :  { %v6111_v37 = vpop.eup %6110  ;;  %v1157_v53 = vmul.f32 %v1029_v15, %v7880_v23 }
 0x1ce   :  { %3788 = vmatpush1.bf16.msra.mxu0 %v5781_v51  ;;  %v6113_v5 = vpop.eup %6112  ;;  %v1033_v10 = vadd.f32 1.0, %v6111_v37  ;;  %v1158_v54 = vmul.f32 %v1030_v58, %v7884_v55 }
 0x1cf   :  { %3789 = vmatprep.subr.bf16.mxu0 %v5786_v44  ;;  %v1034_v63 = vadd.f32 1.0, %v6113_v5 }
 0x1d0   :  { %2301 = vmatmul.mubr.bf16.gmra.mrb[52].mxu0 %v7722_v60  ;;  %2687 = vmatmul.mubr.bf16.gmra.mrb[116].mxu1 %v7722_v60  ;;  %v1161_v28 = vmul.f32 %v1033_v10, %v7889_v57 }
 0x1d1   :  { %2310 = vmatprep.mubr.bf16.mxu0 %v7749_v59  ;;  %2696 = vmatprep.mubr.bf16.mxu1 %v7749_v59  ;;  %v1162_v50 = vmul.f32 %v1034_v63, %v7892_v22 }
 0x1d2   :  { %3790 = vmatpush1.bf16.msra.mxu0 %v5784_v21  ;;  %v7924_v4 = vpack.c.bf16 %v1161_v28, %v1157_v53  ;;  %v6115_v60 = vpop.eup %6114 }
 0x1d3   :  { %3791 = vmatprep.subr.bf16.mxu0 %v5789_v19  ;;  %v1230_v23 = vpack.c.bf16 %v1162_v50, %v1158_v54  ;;  %v1037_v43 = vadd.f32 1.0, %v6115_v60 }
 0x1d4   :  { %v6117_v9 = vpop.eup %6116 }
 0x1d5   :  { %v6119_v59 = vpop.eup %6118  ;;  %v1038_v27 = vadd.f32 1.0, %v6117_v9  ;;  %v1165_v57 = vmul.f32 %v1037_v43, %v781_v39 }
 0x1d6   :  { %3792 = vmatpush1.bf16.msra.mxu0 %v5787_v52  ;;  %v6121_v55 = vpop.eup %6120  ;;  %v1041_v22 = vadd.f32 1.0, %v6119_v59 }
 0x1d7   :  { %3793 = vmatprep.subr.bf16.mxu0 %v5792_v26  ;;  %v1166_v0 = vmul.f32 %v1038_v27, %v782_v18  ;;  %v1042_v48 = vadd.f32 1.0, %v6121_v55 }
 0x1d8   :  { %2311 = vmatmul.mubr.bf16.gmra.mrb[56].mxu0 %v7753_v46  ;;  %2697 = vmatmul.mubr.bf16.gmra.mrb[120].mxu1 %v7753_v46  ;;  %v1169_v62 = vmul.f32 %v1041_v22, %v785_v56  ;;  %v5795_v46 = vld [vmem:[#allocation4 + $0xd4] ss:$8 sps:$4 sm:$0xff]  }
 0x1d9   :  { %2320 = vmatprep.mubr.bf16.mxu0 %v7759_v30  ;;  %2706 = vmatprep.mubr.bf16.mxu1 %v7759_v30  ;;  %v1170_v17 = vmul.f32 %v1042_v48, %v786_v13  ;;  %v5798_v30 = vld [vmem:[#allocation4 + $0xe4] ss:$8 sps:$4 sm:$0xff]  }
 0x1da   :  { %3794 = vmatpush1.bf16.msra.mxu0 %v5790_v14  ;;  %v1233_v47 = vpack.c.bf16 %v1169_v62, %v1165_v57 }
 0x1db   :  { %v1234_v35 = vpack.c.bf16 %v1170_v17, %v1166_v0  ;;  %3795 = vmatprep.subr.bf16.mxu0 %v5795_v46 }
 0x1e0   :  { %2321 = vmatmul.mubr.bf16.gmra.mrb[60].mxu0 %v7756_v25  ;;  %2707 = vmatmul.mubr.bf16.gmra.mrb[124].mxu1 %v7756_v25  ;;  %v5793_v25 = vld [vmem:[#allocation4 + $0xd0] ss:$8 sps:$4 sm:$0xff]  }
 0x1e1   :  { %2330 = vmatprep.mubr.bf16.mxu0 %v7785_v1  ;;  %2716 = vmatprep.mubr.bf16.mxu1 %v7785_v1  ;;  %v5801_v1 = vld [vmem:[#allocation4 + $0xf4] ss:$8 sps:$4 sm:$0xff]  }
 0x1e2   :  { %3796 = vmatpush1.bf16.msra.mxu0 %v5793_v25 }
 0x1e3   :  { %3797 = vmatprep.subr.bf16.mxu0 %v5798_v30 }
 0x1e8   :  { %2331 = vmatmul.mubr.bf16.gmra.mrb[64].mxu0 %v7782_v33  ;;  %2717 = vmatmul.mubr.bf16.gmra.mrb[128].mxu1 %v7782_v33  ;;  %v5796_v33 = vld [vmem:[#allocation4 + $0xe0] ss:$8 sps:$4 sm:$0xff]  }
 0x1e9   :  { %2340 = vmatprep.mubr.bf16.mxu0 %v7813_v40  ;;  %2726 = vmatprep.mubr.bf16.mxu1 %v7813_v40  ;;  %v5804_v40 = vld [vmem:[#allocation4 + $0x104] ss:$8 sps:$4 sm:$0xff]  }
 0x1ea   :  { %3798 = vmatpush1.bf16.msra.mxu0 %v5796_v33 }
 0x1eb   :  { %3799 = vmatprep.subr.bf16.mxu0 %v5801_v1 }
 0x1f0   :  { %2341 = vmatmul.mubr.bf16.gmra.mrb[68].mxu0 %v7810_v6  ;;  %2727 = vmatmul.mubr.bf16.gmra.mrb[132].mxu1 %v7810_v6  ;;  %v5799_v6 = vld [vmem:[#allocation4 + $0xf0] ss:$8 sps:$4 sm:$0xff]  }
 0x1f1   :  { %2350 = vmatprep.mubr.bf16.mxu0 %v7841_v45  ;;  %2736 = vmatprep.mubr.bf16.mxu1 %v7841_v45  ;;  %v9743_v45 = vld [vmem:[#allocation9_spill] sm:$0xff] }
 0x1f2   :  { %3800 = vmatpush1.bf16.msra.mxu0 %v5799_v6 }
 0x1f3   :  { %3962 = vmatprep.subr.bf16.mxu0 %v5804_v40 }
 0x1f8   :  { %2351 = vmatmul.mubr.bf16.gmra.mrb[72].mxu0 %v7838_v32  ;;  %2737 = vmatmul.mubr.bf16.gmra.mrb[136].mxu1 %v7838_v32  ;;  %v1363_v32 = vld [vmem:[%s9678_s4] sm:$0xf] }
 0x1f9   :  { %2360 = vmatprep.mubr.bf16.mxu0 %v7869_v7  ;;  %2746 = vmatprep.mubr.bf16.mxu1 %v7869_v7  ;;  %v9744_v7 = vld [vmem:[#allocation8_spill] sm:$0xff]  ;;  %v7969_v11 = vrot.slane %v1363_v32, %v9746_v42 }
 0x1fa   :  { %v9747_v41 = vsub.s32 3, %v9744_v7 }
 0x1fc   :  { %v7973_v20 = vrot.slane %v1363_v32, %v9747_v41 }
 0x200   :  { %2361 = vmatmul.mubr.bf16.gmra.mrb[76].mxu0 %v7866_v61  ;;  %2747 = vmatmul.mubr.bf16.gmra.mrb[140].mxu1 %v7866_v61  ;;  %v7962_v61 = vrot.slane %v1363_v32, %v9743_v45 }
 0x201   :  { %2370 = vmatprep.mubr.bf16.mxu0 %v7897_v24  ;;  %2756 = vmatprep.mubr.bf16.mxu1 %v7897_v24 }
 0x208   :  { %2371 = vmatmul.mubr.bf16.gmra.mrb[80].mxu0 %v7894_v3  ;;  %2757 = vmatmul.mubr.bf16.gmra.mrb[144].mxu1 %v7894_v3  ;;  %v9745_v3 = vsub.s32 2, %v9744_v7 }
 0x209   :  { %2380 = vmatprep.mubr.bf16.mxu0 %v7914_v31  ;;  %2766 = vmatprep.mubr.bf16.mxu1 %v7914_v31 }
 0x20a   :  { %v7966_v24 = vrot.slane %v1363_v32, %v9745_v3 }
 0x210   :  { %2381 = vmatmul.mubr.bf16.gmra.mrb[84].mxu0 %v7912_v34  ;;  %2767 = vmatmul.mubr.bf16.gmra.mrb[148].mxu1 %v7912_v34 }
 0x211   :  { %2390 = vmatprep.mubr.bf16.mxu0 %v1230_v23  ;;  %2776 = vmatprep.mubr.bf16.mxu1 %v1230_v23 }
 0x218   :  { %2391 = vmatmul.mubr.bf16.gmra.mrb[88].mxu0 %v7924_v4  ;;  %2777 = vmatmul.mubr.bf16.gmra.mrb[152].mxu1 %v7924_v4 }
 0x219   :  { %2400 = vmatprep.mubr.bf16.mxu0 %v1234_v35  ;;  %2786 = vmatprep.mubr.bf16.mxu1 %v1234_v35 }
 0x220   :  { %2401 = vmatmul.mubr.bf16.gmra.mrb[92].mxu0 %v1233_v47  ;;  %2787 = vmatmul.mubr.bf16.gmra.mrb[156].mxu1 %v1233_v47 }
 0x27b   :  { %v2252_v8 = vpop.f32.mrb[32].mxu0  ;;  %v2638_v39 = vpop.f32.mrb[96].mxu1 }
 0x27c   :  { %v5147_v16 = vadd.f32 %v2252_v8, %v7962_v61  ;;  %v5211_v36 = vadd.f32 %v2638_v39, %v7966_v24  ;;  %v2254_v12 = vpop.f32.mrb[33].mxu0  ;;  %v2640_v18 = vpop.f32.mrb[97].mxu1 }
 0x27d   :  { %v5148_v2 = vadd.f32 %v2254_v12, %v7969_v11  ;;  %v5212_v51 = vadd.f32 %v2640_v18, %v7973_v20  ;;  %v2256_v38 = vpop.f32.mrb[34].mxu0  ;;  %v2642_v56 = vpop.f32.mrb[98].mxu1 }
 0x27e   :  { %v7979_v44 = vmul.f32 0.5, %v5147_v16  ;;  %v7981_v13 = vmul.f32 0.5, %v5211_v36  ;;  %v5149_v34 = vadd.f32 %v2256_v38, %v7962_v61  ;;  %v5213_v49 = vadd.f32 %v2642_v56, %v7966_v24  ;;  %v2258_v31 = vpop.f32.mrb[35].mxu0  ;;  %v2644_v29 = vpop.f32.mrb[99].mxu1 }
 0x27f   :  { %v7985_v15 = vmul.f32 0.5, %v5148_v2  ;;  %v7987_v21 = vmul.f32 0.5, %v5212_v51  ;;  %v5150_v37 = vadd.f32 %v2258_v31, %v7969_v11  ;;  %v5214_v58 = vadd.f32 %v2644_v29, %v7973_v20 }
 0x280   :  { %6122 = vtanh.f32 %v7979_v44  ;;  %v7992_v19 = vmul.f32 0.5, %v5149_v34  ;;  %v7995_v5 = vmul.f32 0.5, %v5213_v49 }
 0x281   :  { %6124 = vtanh.f32 %v7981_v13  ;;  %v7998_v53 = vmul.f32 0.5, %v5150_v37  ;;  %v8001_v10 = vmul.f32 0.5, %v5214_v58 }
 0x282   :  { %6126 = vtanh.f32 %v7985_v15 }
 0x283   :  { %6128 = vtanh.f32 %v7987_v21  ;;  %v2262_v54 = vpop.f32.mrb[36].mxu0  ;;  %v2648_v63 = vpop.f32.mrb[100].mxu1 }
 0x284   :  { %6130 = vtanh.f32 %v7992_v19  ;;  %v5151_v28 = vadd.f32 %v2262_v54, %v7962_v61  ;;  %v5215_v52 = vadd.f32 %v2648_v63, %v7966_v24  ;;  %v2264_v50 = vpop.f32.mrb[37].mxu0  ;;  %v2650_v26 = vpop.f32.mrb[101].mxu1 }
 0x285   :  { %6132 = vtanh.f32 %v7995_v5  ;;  %v5152_v4 = vadd.f32 %v2264_v50, %v7969_v11  ;;  %v5216_v60 = vadd.f32 %v2650_v26, %v7973_v20  ;;  %v2266_v23 = vpop.f32.mrb[38].mxu0  ;;  %v2652_v9 = vpop.f32.mrb[102].mxu1 }
 0x286   :  { %6134 = vtanh.f32 %v7998_v53  ;;  %v8010_v43 = vmul.f32 0.5, %v5151_v28  ;;  %v8012_v14 = vmul.f32 0.5, %v5215_v52  ;;  %v5153_v59 = vadd.f32 %v2266_v23, %v7962_v61  ;;  %v2268_v27 = vpop.f32.mrb[39].mxu0  ;;  %v2654_v55 = vpop.f32.mrb[103].mxu1 }
 0x287   :  { %6136 = vtanh.f32 %v8001_v10  ;;  %v8016_v57 = vmul.f32 0.5, %v5152_v4  ;;  %v8018_v22 = vmul.f32 0.5, %v5216_v60  ;;  %v5217_v0 = vadd.f32 %v2652_v9, %v7966_v24 }
 0x288   :  { %6138 = vtanh.f32 %v8010_v43  ;;  %v8022_v48 = vmul.f32 0.5, %v5153_v59  ;;  %v5154_v62 = vadd.f32 %v2268_v27, %v7969_v11  ;;  %v5218_v17 = vadd.f32 %v2654_v55, %v7973_v20 }
 0x289   :  { %6140 = vtanh.f32 %v8012_v14  ;;  %v8027_v47 = vmul.f32 0.5, %v5217_v0 }
 0x28a   :  { %v6123_v35 = vpop.eup %6122  ;;  %6142 = vtanh.f32 %v8016_v57  ;;  %v8030_v46 = vmul.f32 0.5, %v5154_v62  ;;  %v8033_v33 = vmul.f32 0.5, %v5218_v17 }
 0x28b   :  { %v6125_v25 = vpop.eup %6124  ;;  %v3053_v30 = vadd.f32 1.0, %v6123_v35  ;;  %6144 = vtanh.f32 %v8018_v22  ;;  %v2272_v1 = vpop.f32.mrb[40].mxu0 }
 0x28c   :  { %v2658_v6 = vpop.f32.mrb[104].mxu1  ;;  %v6127_v40 = vpop.eup %6126  ;;  %v3055_v32 = vadd.f32 1.0, %v6125_v25  ;;  %6146 = vtanh.f32 %v8022_v48  ;;  %v5155_v7 = vadd.f32 %v2272_v1, %v7962_v61 }
 0x28d   :  { %v5219_v3 = vadd.f32 %v2658_v6, %v7966_v24  ;;  %v2274_v41 = vpop.f32.mrb[41].mxu0  ;;  %v2660_v8 = vpop.f32.mrb[105].mxu1  ;;  %6148 = vtanh.f32 %v8027_v47  ;;  %v8041_v2 = vmul.f32 %v3053_v30, %v7979_v44  ;;  %v3054_v51 = vadd.f32 1.0, %v6127_v40 }
 0x28e   :  { %v6129_v39 = vpop.eup %6128  ;;  %v5156_v16 = vadd.f32 %v2274_v41, %v7969_v11  ;;  %v2276_v36 = vpop.f32.mrb[42].mxu0  ;;  %6150 = vtanh.f32 %v8030_v46  ;;  %v8044_v38 = vmul.f32 0.5, %v5155_v7  ;;  %v8047_v31 = vmul.f32 %v3055_v32, %v7981_v13 }
 0x28f   :  { %v2662_v12 = vpop.f32.mrb[106].mxu1  ;;  %v6131_v18 = vpop.eup %6130  ;;  %6152 = vtanh.f32 %v8033_v33  ;;  %v8050_v37 = vmul.f32 0.5, %v5219_v3  ;;  %v3056_v54 = vadd.f32 1.0, %v6129_v39  ;;  %v5220_v13 = vadd.f32 %v2660_v8, %v7973_v20 }
 0x290   :  { %v2278_v56 = vpop.f32.mrb[43].mxu0  ;;  %v2664_v34 = vpop.f32.mrb[107].mxu1  ;;  %9748 = vst [vmem:[#allocation13_spill] sm:$0xff] %v8047_v31  ;;  %v3057_v29 = vadd.f32 1.0, %v6131_v18  ;;  %6154 = vtanh.f32 %v8044_v38  ;;  %v8053_v63 = vmul.f32 0.5, %v5156_v16  ;;  %v5157_v23 = vadd.f32 %v2276_v36, %v7962_v61 }
 0x291   :  { %v6133_v49 = vpop.eup %6132  ;;  %6156 = vtanh.f32 %v8050_v37  ;;  %v8066_v59 = vmul.f32 %v3054_v51, %v7985_v15  ;;  %v8070_v55 = vmul.f32 0.5, %v5220_v13  ;;  %v5221_v7 = vadd.f32 %v2662_v12, %v7966_v24 }
 0x292   :  { %v6135_v58 = vpop.eup %6134  ;;  %v3059_v44 = vadd.f32 1.0, %v6133_v49  ;;  %v8056_v52 = vmul.f32 %v3057_v29, %v7992_v19  ;;  %6158 = vtanh.f32 %v8053_v63  ;;  %v8077_v30 = vmul.f32 0.5, %v5157_v23 }
 0x293   :  { %v6137_v28 = vpop.eup %6136  ;;  %v3058_v50 = vadd.f32 1.0, %v6135_v58  ;;  %v2282_v0 = vpop.f32.mrb[44].mxu0  ;;  %6160 = vtanh.f32 %v8070_v55  ;;  %v5158_v16 = vadd.f32 %v2278_v56, %v7969_v11  ;;  %v8094_v12 = vmul.f32 0.5, %v5221_v7 }
 0x294   :  { %v6139_v26 = vpop.eup %6138  ;;  %v8061_v4 = vmul.f32 %v3059_v44, %v7995_v5  ;;  %v3060_v60 = vadd.f32 1.0, %v6137_v28  ;;  %v3309_v19 = vpack.c.bf16 %v8056_v52, %v8041_v2  ;;  %v2668_v62 = vpop.f32.mrb[108].mxu1  ;;  %v8073_v5 = vmul.f32 %v3056_v54, %v7987_v21 }
 0x295   :  { %v6141_v9 = vpop.eup %6140  ;;  %v3061_v27 = vadd.f32 1.0, %v6139_v26  ;;  %v2284_v15 = vpop.f32.mrb[45].mxu0  ;;  %v8080_v40 = vmul.f32 %v3058_v50, %v7998_v53  ;;  %6162 = vtanh.f32 %v8077_v30  ;;  %v5222_v29 = vadd.f32 %v2664_v34, %v7973_v20 }
 0x296   :  { %9749 = vst [vmem:[#allocation11_spill] sm:$0xff] %v8061_v4  ;;  %v6143_v17 = vpop.eup %6142  ;;  %9750 = vst [vmem:[#allocation12_spill] sm:$0xff] %v8073_v5  ;;  %v3063_v25 = vadd.f32 1.0, %v6141_v9  ;;  %v2670_v1 = vpop.f32.mrb[109].mxu1  ;;  %v8085_v8 = vmul.f32 %v3060_v60, %v8001_v10  ;;  %v8100_v44 = vmul.f32 0.5, %v5158_v16  ;;  %v5159_v56 = vadd.f32 %v2282_v0, %v7962_v61 }
 0x297   :  { %v6145_v6 = vpop.eup %6144  ;;  %v3062_v32 = vadd.f32 1.0, %v6143_v17  ;;  %v2286_v3 = vpop.f32.mrb[46].mxu0  ;;  %v8092_v51 = vmul.f32 %v3061_v27, %v8010_v43  ;;  %6164 = vtanh.f32 %v8094_v12  ;;  %v8107_v13 = vmul.f32 0.5, %v5222_v29  ;;  %v5802_v29 = vld [vmem:[#allocation4 + $0x100] ss:$8 sps:$4 sm:$0xff]  }
 0x298   :  { %v2672_v21 = vpop.f32.mrb[110].mxu1  ;;  %v6147_v41 = vpop.eup %6146  ;;  %9751 = vst [vmem:[#allocation8_spill] sm:$0xff] %v8085_v8  ;;  %v3064_v39 = vadd.f32 1.0, %v6145_v6  ;;  %v8098_v10 = vmul.f32 %v3063_v25, %v8012_v14  ;;  %6166 = vtanh.f32 %v8100_v44  ;;  %v8113_v60 = vmul.f32 0.5, %v5159_v56 }
 0x299   :  { %v2288_v36 = vpop.f32.mrb[47].mxu0  ;;  %v8089_v18 = vpop.f32.mrb[111].mxu1  ;;  %v3065_v49 = vadd.f32 1.0, %v6147_v41  ;;  %v8104_v50 = vmul.f32 %v3062_v32, %v8016_v57  ;;  %6168 = vtanh.f32 %v8107_v13  ;;  %v5223_v27 = vadd.f32 %v2668_v62, %v7966_v24 }
 0x29a   :  { %v6149_v53 = vpop.eup %6148  ;;  %9752 = vst [vmem:[#allocation14_spill] sm:$0xff] %v8098_v10  ;;  %v8110_v34 = vmul.f32 %v3064_v39, %v8018_v22  ;;  %6170 = vtanh.f32 %v8113_v60  ;;  %v5160_v32 = vadd.f32 %v2284_v15, %v7969_v11  ;;  %v5224_v16 = vadd.f32 %v2670_v1, %v7973_v20 }
 0x29b   :  { %v6151_v58 = vpop.eup %6150  ;;  %v3067_v54 = vadd.f32 1.0, %v6149_v53  ;;  %v8116_v9 = vmul.f32 %v3065_v49, %v8022_v48  ;;  %v2292_v0 = vpop.f32.mrb[48].mxu0  ;;  %v8131_v62 = vmul.f32 0.5, %v5223_v27  ;;  %v5805_v27 = vld [vmem:[#allocation4 + $0x110] ss:$8 sps:$4 sm:$0xff]  }
 0x29c   :  { %v6153_v28 = vpop.eup %6152  ;;  %v3066_v43 = vadd.f32 1.0, %v6151_v58  ;;  %9753 = vst [vmem:[#allocation15_spill] sm:$0xff] %v8110_v34  ;;  %v2678_v17 = vpop.f32.mrb[112].mxu1  ;;  %v8141_v15 = vmul.f32 0.5, %v5160_v32  ;;  %v5810_v32 = vld [vmem:[#allocation4 + $0x124] ss:$8 sps:$4 sm:$0xff]  }
 0x29d   :  { %v6155_v26 = vpop.eup %6154  ;;  %v3068_v14 = vadd.f32 1.0, %v6153_v28  ;;  %v8121_v22 = vmul.f32 %v3067_v54, %v8027_v47  ;;  %v2294_v7 = vpop.f32.mrb[49].mxu0  ;;  %6172 = vtanh.f32 %v8131_v62  ;;  %v8151_v28 = vmul.f32 0.5, %v5224_v16 }
 0x29e   :  { %v6157_v23 = vpop.eup %6156  ;;  %v3069_v57 = vadd.f32 1.0, %v6155_v26  ;;  %v2680_v41 = vpop.f32.mrb[113].mxu1  ;;  %v8126_v48 = vmul.f32 %v3066_v43, %v8030_v46  ;;  %v3310_v46 = vpack.c.bf16 %v8080_v40, %v8066_v59  ;;  %v5807_v43 = vld [vmem:[#allocation4 + $0x114] ss:$8 sps:$4 sm:$0xff]   ;;  %6174 = vtanh.f32 %v8141_v15 }
 0x29f   :  { %v6159_v25 = vpop.eup %6158  ;;  %9754 = vst [vmem:[#allocation16_spill] sm:$0xff] %v8121_v22  ;;  %v3071_v6 = vadd.f32 1.0, %v6157_v23  ;;  %v8129_v39 = vmul.f32 %v3068_v14, %v8033_v33  ;;  %v8134_v53 = vpop.f32.mrb[50].mxu0  ;;  %v5161_v33 = vadd.f32 %v2286_v3, %v7962_v61  ;;  %v5162_v40 = vadd.f32 %v2288_v36, %v7969_v11 }
 0x2a0   :  { %v8136_v47 = vpop.f32.mrb[114].mxu1  ;;  %v8139_v49 = vmul.f32 %v3069_v57, %v8044_v38  ;;  %v8146_v58 = vpop.f32.mrb[51].mxu0  ;;  %v3070_v56 = vadd.f32 1.0, %v6159_v25  ;;  %v5225_v38 = vadd.f32 %v2672_v21, %v7966_v24  ;;  %3801 = vmatprep.mubr.bf16.mxu0 %v3310_v46  ;;  %6176 = vtanh.f32 %v8151_v28 }
 0x2a1   :  { %9755 = vst [vmem:[#allocation17_spill] sm:$0xff] %v8129_v39  ;;  %v8148_v54 = vpop.f32.mrb[115].mxu1  ;;  %v6161_v1 = vpop.eup %6160  ;;  %v8155_v14 = vmul.f32 %v3071_v6, %v8050_v37  ;;  %v8158_v59 = vmul.f32 0.5, %v5161_v33  ;;  %3802 = vmatmul.mubr.bf16.vlgmr.msra.gmra.mrb[96].mxu0 %v3309_v19  ;;  %v5226_v37 = vadd.f32 %v8089_v18, %v7973_v20  ;;  %v8170_v57 = vmul.f32 0.5, %v5162_v40 }
 0x2a2   :  { %v6163_v26 = vpop.eup %6162  ;;  %v3072_v3 = vadd.f32 1.0, %v6161_v1  ;;  %v8162_v23 = vmul.f32 0.5, %v5225_v38  ;;  %3963 = vmatpush1.bf16.msra.mxu0 %v5802_v29  ;;  %v5163_v36 = vadd.f32 %v2292_v0, %v7962_v61  ;;  %v8174_v6 = vmul.f32 %v3070_v56, %v8053_v63 }
 0x2a3   :  { %9756 = vst [vmem:[#allocation18_spill] sm:$0xff] %v8155_v14  ;;  %v3073_v21 = vadd.f32 1.0, %v6163_v26  ;;  %6178 = vtanh.f32 %v8158_v59  ;;  %v6165_v25 = vpop.eup %6164  ;;  %v8177_v2 = vmul.f32 0.5, %v5226_v37  ;;  %v5227_v52 = vadd.f32 %v2678_v17, %v7966_v24  ;;  %3964 = vmatprep.subr.bf16.mxu0 %v5807_v43  ;;  %v2302_v19 = vpop.f32.mrb[52].mxu0 }
 0x2a4   :  { %6180 = vtanh.f32 %v8162_v23  ;;  %v2688_v18 = vpop.f32.mrb[116].mxu1  ;;  %v6167_v16 = vpop.eup %6166  ;;  %v3075_v46 = vadd.f32 1.0, %v6165_v25  ;;  %v8181_v0 = vmul.f32 0.5, %v5163_v36  ;;  %v5164_v29 = vadd.f32 %v2294_v7, %v7969_v11  ;;  %v5808_v25 = vld [vmem:[#allocation4 + $0x120] ss:$8 sps:$4 sm:$0xff]  }
 0x2a5   :  { %6182 = vtanh.f32 %v8170_v57  ;;  %v8184_v63 = vpop.f32.mrb[53].mxu0  ;;  %v8186_v33 = vpop.f32.mrb[117].mxu1  ;;  %v3074_v56 = vadd.f32 1.0, %v6167_v16  ;;  %v8189_v17 = vmul.f32 0.5, %v5227_v52  ;;  %v5228_v38 = vadd.f32 %v2680_v41, %v7973_v20 }
 0x2a6   :  { %v6169_v1 = vpop.eup %6168  ;;  %6184 = vtanh.f32 %v8177_v2  ;;  %v8192_v43 = vpop.f32.mrb[54].mxu0  ;;  %v8197_v37 = vmul.f32 %v3072_v3, %v8070_v55  ;;  %v8200_v7 = vmul.f32 %v3073_v21, %v8077_v30  ;;  %v8203_v36 = vmul.f32 0.5, %v5164_v29  ;;  %3965 = vmatpush1.bf16.msra.mxu0 %v5805_v27  ;;  %v5813_v30 = vld [vmem:[#allocation4 + $0x134] ss:$8 sps:$4 sm:$0xff]  }
 0x2a7   :  { %v8194_v26 = vpop.f32.mrb[118].mxu1  ;;  %v6171_v40 = vpop.eup %6170  ;;  %6186 = vtanh.f32 %v8181_v0  ;;  %v8210_v16 = vmul.f32 %v3075_v46, %v8094_v12  ;;  %v3076_v35 = vadd.f32 1.0, %v6169_v1  ;;  %v8213_v55 = vmul.f32 0.5, %v5228_v38  ;;  %3966 = vmatprep.subr.bf16.mxu0 %v5810_v32 }
 0x2a8   :  { %9757 = vst [vmem:[#allocation19_spill] sm:$0xff] %v8197_v37  ;;  %v8205_v52 = vpop.f32.mrb[55].mxu0  ;;  %v8207_v41 = vpop.f32.mrb[119].mxu1  ;;  %6188 = vtanh.f32 %v8189_v17  ;;  %v8216_v3 = vmul.f32 %v3074_v56, %v8100_v44  ;;  %v3314_v21 = vpack.c.bf16 %v8126_v48, %v8104_v50  ;;  %v5165_v27 = vadd.f32 %v8134_v53, %v7962_v61  ;;  %v5811_v53 = vld [vmem:[#allocation4 + $0x130] ss:$8 sps:$4 sm:$0xff]  }
 0x2a9   :  { %9758 = vst [vmem:[#allocation20_spill] sm:$0xff] %v8210_v16  ;;  %6190 = vtanh.f32 %v8203_v36  ;;  %v6173_v12 = vpop.eup %6172  ;;  %v3077_v46 = vadd.f32 1.0, %v6171_v40  ;;  %v5229_v29 = vadd.f32 %v8136_v47, %v7966_v24  ;;  %v3313_v32 = vpack.c.bf16 %v8116_v9, %v8092_v51 }
 0x2aa   :  { %6192 = vtanh.f32 %v8213_v55  ;;  %v6175_v44 = vpop.eup %6174  ;;  %v3079_v1 = vadd.f32 1.0, %v6173_v12  ;;  %3811 = vmatprep.mubr.bf16.mxu0 %v3314_v21  ;;  %v8228_v56 = vmul.f32 0.5, %v5165_v27  ;;  %v5166_v50 = vadd.f32 %v8146_v58, %v7969_v11  ;;  %3967 = vmatpush1.bf16.msra.mxu0 %v5808_v25  ;;  %v5816_v58 = vld [vmem:[#allocation4 + $0x144] ss:$8 sps:$4 sm:$0xff]  }
 0x2ab   :  { %v5230_v48 = vadd.f32 %v8148_v54, %v7973_v20  ;;  %v6177_v38 = vpop.eup %6176  ;;  %v3078_v40 = vadd.f32 1.0, %v6175_v44  ;;  %v8234_v42 = vmul.f32 0.5, %v5229_v29  ;;  %3812 = vmatmul.mubr.bf16.gmra.mrb[100].mxu0 %v3313_v32  ;;  %v5167_v51 = vadd.f32 %v2302_v19, %v7962_v61  ;;  %v8238_v47 = vpop.f32.mrb[56].mxu0  ;;  %3968 = vmatprep.subr.bf16.mxu0 %v5813_v30 }
 0x2ac   :  { %v5231_v9 = vadd.f32 %v2688_v18, %v7966_v24  ;;  %v8240_v21 = vpop.f32.mrb[120].mxu1  ;;  %v8243_v54 = vmul.f32 %v3076_v35, %v8107_v13  ;;  %v3080_v25 = vadd.f32 1.0, %v6177_v38  ;;  %6194 = vtanh.f32 %v8228_v56  ;;  %v8248_v29 = vpop.f32.mrb[57].mxu0 }
 0x2ad   :  { %v6179_v27 = vpop.eup %6178  ;;  %v8246_v12 = vmul.f32 0.5, %v5166_v50  ;;  %v8250_v19 = vpop.f32.mrb[121].mxu1  ;;  %v8253_v32 = vmul.f32 %v3077_v46, %v8113_v60  ;;  %6196 = vtanh.f32 %v8234_v42  ;;  %v8256_v30 = vmul.f32 0.5, %v5230_v48  ;;  %v5814_v48 = vld [vmem:[#allocation4 + $0x140] ss:$8 sps:$4 sm:$0xff]  }
 0x2ae   :  { %9759 = vst [vmem:[#allocation21_spill] sm:$0xff] %v8243_v54  ;;  %v6181_v18 = vpop.eup %6180  ;;  %v3081_v44 = vadd.f32 1.0, %v6179_v27  ;;  %v8258_v35 = vpop.f32.mrb[58].mxu0  ;;  %v8263_v50 = vmul.f32 %v3079_v1, %v8131_v62  ;;  %v8266_v31 = vmul.f32 0.5, %v5167_v51  ;;  %3969 = vmatpush1.bf16.msra.mxu0 %v5811_v53  ;;  %v8273_v4 = vmul.f32 %v3078_v40, %v8141_v15  ;;  %v5819_v1 = vld [vmem:[#allocation4 + $0x154] ss:$8 sps:$4 sm:$0xff]  }
 0x2af   :  { %v8260_v13 = vpop.f32.mrb[122].mxu1  ;;  %v6183_v38 = vpop.eup %6182  ;;  %v3083_v45 = vadd.f32 1.0, %v6181_v18  ;;  %6198 = vtanh.f32 %v8246_v12  ;;  %v8276_v62 = vmul.f32 0.5, %v5231_v9  ;;  %3970 = vmatprep.subr.bf16.mxu0 %v5816_v58  ;;  %v8279_v51 = vmul.f32 %v3080_v25, %v8151_v28 }
 0x2b0   :  { %9760 = vst [vmem:[#allocation22_spill] sm:$0xff] %v8263_v50  ;;  %v8268_v60 = vpop.f32.mrb[59].mxu0  ;;  %v8270_v46 = vpop.f32.mrb[123].mxu1  ;;  %v3082_v16 = vadd.f32 1.0, %v6183_v38  ;;  %6200 = vtanh.f32 %v8256_v30  ;;  %v5168_v50 = vadd.f32 %v8184_v63, %v7969_v11  ;;  %v8285_v15 = vmul.f32 %v3081_v44, %v8158_v59 }
 0x2b1   :  { %v6185_v27 = vpop.eup %6184  ;;  %9761 = vst [vmem:[#allocation23_spill] sm:$0xff] %v8279_v51  ;;  %6202 = vtanh.f32 %v8266_v31  ;;  %v5232_v9 = vadd.f32 %v8186_v33, %v7973_v20  ;;  %v8291_v28 = vmul.f32 %v3083_v45, %v8162_v23  ;;  %v3318_v63 = vpack.c.bf16 %v8216_v3, %v8174_v6  ;;  %v5822_v6 = vld [vmem:[#allocation4 + $0x164] ss:$8 sps:$4 sm:$0xff]  }
 0x2b2   :  { %v6187_v18 = vpop.eup %6186  ;;  %v3084_v53 = vadd.f32 1.0, %v6185_v27  ;;  %6204 = vtanh.f32 %v8276_v62  ;;  %v8293_v38 = vmul.f32 0.5, %v5168_v50  ;;  %3971 = vmatpush1.bf16.msra.mxu0 %v5814_v48  ;;  %v5817_v27 = vld [vmem:[#allocation4 + $0x150] ss:$8 sps:$4 sm:$0xff]   ;;  %v8298_v44 = vmul.f32 %v3082_v16, %v8170_v57 }
 0x2b3   :  { %v6189_v14 = vpop.eup %6188  ;;  %v3085_v40 = vadd.f32 1.0, %v6187_v18  ;;  %9762 = vst [vmem:[#allocation24_spill] sm:$0xff] %v8291_v28  ;;  %v8303_v33 = vmul.f32 0.5, %v5232_v9  ;;  %v5169_v45 = vadd.f32 %v8192_v43, %v7962_v61  ;;  %v8309_v23 = vpop.f32.mrb[124].mxu1  ;;  %3972 = vmatprep.subr.bf16.mxu0 %v5819_v1  ;;  %3821 = vmatprep.mubr.bf16.mxu0 %v3318_v63  ;;  %v5233_v57 = vadd.f32 %v8194_v26, %v7966_v24 }
 0x2b4   :  { %v6191_v58 = vpop.eup %6190  ;;  %v3087_v25 = vadd.f32 1.0, %v6189_v14  ;;  %v8301_v18 = vmul.f32 %v3084_v53, %v8177_v2  ;;  %v8307_v14 = vpop.f32.mrb[60].mxu0  ;;  %6206 = vtanh.f32 %v8293_v38 }
 0x2b5   :  { %v6193_v59 = vpop.eup %6192  ;;  %v8312_v3 = vmul.f32 %v3085_v40, %v8181_v0  ;;  %v3086_v50 = vadd.f32 1.0, %v6191_v58  ;;  %v8317_v2 = vpop.f32.mrb[61].mxu0  ;;  %6208 = vtanh.f32 %v8303_v33  ;;  %v8325_v48 = vmul.f32 0.5, %v5169_v45 }
 0x2b6   :  { %9763 = vst [vmem:[#allocation25_spill] sm:$0xff] %v8301_v18  ;;  %v8319_v16 = vpop.f32.mrb[125].mxu1  ;;  %v8322_v43 = vmul.f32 %v3087_v25, %v8189_v17  ;;  %v3317_v0 = vpack.c.bf16 %v8200_v7, %v8139_v49  ;;  %v8329_v1 = vpop.f32.mrb[62].mxu0  ;;  %v3088_v26 = vadd.f32 1.0, %v6193_v59  ;;  %v8333_v9 = vmul.f32 0.5, %v5233_v57  ;;  %3973 = vmatpush1.bf16.msra.mxu0 %v5817_v27 }
 0x2b7   :  { %v8331_v53 = vpop.f32.mrb[126].mxu1  ;;  %v6195_v40 = vpop.eup %6194  ;;  %v5170_v58 = vadd.f32 %v8205_v52, %v7969_v11  ;;  %v5234_v17 = vadd.f32 %v8207_v41, %v7973_v20  ;;  %v5820_v49 = vld [vmem:[#allocation4 + $0x160] ss:$8 sps:$4 sm:$0xff]   ;;  %6210 = vtanh.f32 %v8325_v48  ;;  %v5171_v59 = vadd.f32 %v8238_v47, %v7962_v61  ;;  %3974 = vmatprep.subr.bf16.mxu0 %v5822_v6  ;;  %v5825_v57 = vld [vmem:[#allocation4 + $0x174] ss:$8 sps:$4 sm:$0xff]  }
 0x2b8   :  { %9764 = vst [vmem:[#allocation26_spill] sm:$0xff] %v8322_v43  ;;  %v8339_v25 = vpop.f32.mrb[63].mxu0  ;;  %v8341_v63 = vpop.f32.mrb[127].mxu1  ;;  %v3089_v45 = vadd.f32 1.0, %v6195_v40  ;;  %3822 = vmatmul.mubr.bf16.gmra.mrb[104].mxu0 %v3317_v0  ;;  %v5235_v52 = vadd.f32 %v8240_v21, %v7966_v24  ;;  %6212 = vtanh.f32 %v8333_v9  ;;  %v8354_v18 = vmul.f32 %v3086_v50, %v8203_v36 }
 0x2b9   :  { %v6197_v7 = vpop.eup %6196  ;;  %v8349_v28 = vmul.f32 0.5, %v5170_v58  ;;  %v8351_v27 = vmul.f32 0.5, %v5234_v17  ;;  %v8356_v51 = vmul.f32 0.5, %v5171_v59  ;;  %v8361_v6 = vmul.f32 %v3088_v26, %v8213_v55  ;;  %v5823_v17 = vld [vmem:[#allocation4 + $0x170] ss:$8 sps:$4 sm:$0xff]  }
 0x2ba   :  { %v6199_v41 = vpop.eup %6198  ;;  %v3091_v43 = vadd.f32 1.0, %v6197_v7  ;;  %v8358_v47 = vmul.f32 0.5, %v5235_v52  ;;  %v5172_v58 = vadd.f32 %v8248_v29, %v7969_v11  ;;  %3975 = vmatpush1.bf16.msra.mxu0 %v5820_v49  ;;  %v8367_v36 = vmul.f32 %v3089_v45, %v8228_v56  ;;  %v5828_v29 = vld [vmem:[#allocation4 + $0x184] ss:$8 sps:$4 sm:$0xff]  }
 0x2bb   :  { %v6201_v40 = vpop.eup %6200  ;;  %v3090_v0 = vadd.f32 1.0, %v6199_v41  ;;  %9765 = vst [vmem:[#allocation27_spill] sm:$0xff] %v8361_v6  ;;  %6214 = vtanh.f32 %v8349_v28  ;;  %v5236_v55 = vadd.f32 %v8250_v19, %v7973_v20  ;;  %v8375_v26 = vpop.f32.mrb[64].mxu0  ;;  %3976 = vmatprep.subr.bf16.mxu0 %v5825_v57 }
 0x2bc   :  { %v6203_v21 = vpop.eup %6202  ;;  %v3092_v7 = vadd.f32 1.0, %v6201_v40  ;;  %v8370_v50 = vmul.f32 %v3091_v43, %v8234_v42  ;;  %6216 = vtanh.f32 %v8351_v27  ;;  %v8377_v59 = vpop.f32.mrb[128].mxu1  ;;  %v8383_v56 = vmul.f32 0.5, %v5172_v58 }
 0x2bd   :  { %v6205_v54 = vpop.eup %6204  ;;  %v8380_v49 = vmul.f32 %v3090_v0, %v8246_v12  ;;  %v3093_v52 = vadd.f32 1.0, %v6203_v21  ;;  %6218 = vtanh.f32 %v8356_v51  ;;  %v8385_v42 = vpop.f32.mrb[65].mxu0  ;;  %v8393_v45 = vmul.f32 0.5, %v5236_v55 }
 0x2be   :  { %9766 = vst [vmem:[#allocation28_spill] sm:$0xff] %v8370_v50  ;;  %v8387_v43 = vpop.f32.mrb[129].mxu1  ;;  %v8390_v19 = vmul.f32 %v3092_v7, %v8256_v30  ;;  %6220 = vtanh.f32 %v8358_v47  ;;  %v3322_v12 = vpack.c.bf16 %v8298_v44, %v8273_v4  ;;  %v8397_v57 = vpop.f32.mrb[66].mxu0  ;;  %v3095_v0 = vadd.f32 1.0, %v6205_v54  ;;  %3977 = vmatpush1.bf16.msra.mxu0 %v5823_v17  ;;  %v5826_v4 = vld [vmem:[#allocation4 + $0x180] ss:$8 sps:$4 sm:$0xff]  }
 0x2bf   :  { %v8399_v41 = vpop.f32.mrb[130].mxu1  ;;  %v6207_v40 = vpop.eup %6206  ;;  %6222 = vtanh.f32 %v8383_v56  ;;  %v5173_v21 = vadd.f32 %v8258_v35, %v7962_v61  ;;  %v5237_v30 = vadd.f32 %v8260_v13, %v7966_v24  ;;  %v3321_v54 = vpack.c.bf16 %v8285_v15, %v8253_v32  ;;  %3978 = vmatprep.subr.bf16.mxu0 %v5828_v29  ;;  %v5831_v50 = vld [vmem:[#allocation4 + $0x194] ss:$8 sps:$4 sm:$0xff]  }
 0x2c0   :  { %9767 = vst [vmem:[#allocation29_spill] sm:$0xff] %v8390_v19  ;;  %v8406_v7 = vpop.f32.mrb[67].mxu0  ;;  %v8408_v58 = vpop.f32.mrb[131].mxu1  ;;  %v3094_v55 = vadd.f32 1.0, %v6207_v40  ;;  %6224 = vtanh.f32 %v8393_v45  ;;  %3831 = vmatprep.mubr.bf16.mxu0 %v3322_v12  ;;  %v5174_v35 = vadd.f32 %v8268_v60, %v7969_v11  ;;  %v8416_v13 = vmul.f32 %v3093_v52, %v8266_v31  ;;  %v5829_v52 = vld [vmem:[#allocation4 + $0x190] ss:$8 sps:$4 sm:$0xff]  }
 0x2c1   :  { %v6209_v44 = vpop.eup %6208  ;;  %v8418_v19 = vmul.f32 0.5, %v5173_v21  ;;  %v8420_v17 = vmul.f32 0.5, %v5237_v30  ;;  %v5238_v40 = vadd.f32 %v8270_v46, %v7973_v20  ;;  %3832 = vmatmul.mubr.bf16.gmra.mrb[108].mxu0 %v3321_v54  ;;  %v5175_v32 = vadd.f32 %v8307_v14, %v7962_v61  ;;  %v5834_v21 = vld [vmem:[#allocation4 + $0x1a4] ss:$8 sps:$4 sm:$0xff]  }
 0x2c2   :  { %v6211_v6 = vpop.eup %6210  ;;  %v3096_v12 = vadd.f32 1.0, %v6209_v44  ;;  %v8424_v37 = vmul.f32 0.5, %v5174_v35  ;;  %v5239_v60 = vadd.f32 %v8309_v23, %v7966_v24  ;;  %v8431_v15 = vmul.f32 %v3095_v0, %v8276_v62  ;;  %3979 = vmatpush1.bf16.msra.mxu0 %v5826_v4 }
 0x2c3   :  { %v6213_v31 = vpop.eup %6212  ;;  %v8434_v29 = vmul.f32 %v3094_v55, %v8293_v38  ;;  %6226 = vtanh.f32 %v8418_v19  ;;  %v8437_v46 = vmul.f32 0.5, %v5238_v40  ;;  %v3097_v30 = vadd.f32 1.0, %v6211_v6  ;;  %v8444_v44 = vpop.f32.mrb[68].mxu0  ;;  %3980 = vmatprep.subr.bf16.mxu0 %v5831_v50 }
 0x2c4   :  { %9768 = vst [vmem:[#allocation30_spill] sm:$0xff] %v8431_v15  ;;  %6228 = vtanh.f32 %v8420_v17  ;;  %v8440_v14 = vmul.f32 0.5, %v5175_v32  ;;  %v8442_v23 = vmul.f32 0.5, %v5239_v60  ;;  %v8446_v62 = vpop.f32.mrb[132].mxu1  ;;  %v3099_v0 = vadd.f32 1.0, %v6213_v31  ;;  %v8453_v55 = vpop.f32.mrb[69].mxu0 }
 0x2c5   :  { %v6215_v38 = vpop.eup %6214  ;;  %6230 = vtanh.f32 %v8424_v37  ;;  %v5176_v4 = vadd.f32 %v8317_v2, %v7969_v11  ;;  %v5240_v6 = vadd.f32 %v8319_v16, %v7973_v20  ;;  %v8455_v54 = vpop.f32.mrb[133].mxu1  ;;  %v8458_v40 = vmul.f32 %v3096_v12, %v8303_v33  ;;  %v5832_v31 = vld [vmem:[#allocation4 + $0x1a0] ss:$8 sps:$4 sm:$0xff]  }
 0x2c6   :  { %v6217_v35 = vpop.eup %6216  ;;  %v3098_v32 = vadd.f32 1.0, %v6215_v38  ;;  %6232 = vtanh.f32 %v8437_v46  ;;  %v3326_v50 = vpack.c.bf16 %v8380_v49, %v8354_v18  ;;  %v8463_v60 = vpop.f32.mrb[70].mxu0  ;;  %3981 = vmatpush1.bf16.msra.mxu0 %v5829_v52  ;;  %v8477_v18 = vmul.f32 %v3097_v30, %v8325_v48 }
 0x2c7   :  { %9769 = vst [vmem:[#allocation31_spill] sm:$0xff] %v8458_v40  ;;  %v8465_v2 = vpop.f32.mrb[134].mxu1  ;;  %v6219_v16 = vpop.eup %6218  ;;  %v3100_v15 = vadd.f32 1.0, %v6217_v35  ;;  %6234 = vtanh.f32 %v8440_v14  ;;  %v8468_v22 = vmul.f32 0.5, %v5176_v4  ;;  %v8470_v10 = vmul.f32 0.5, %v5240_v6  ;;  %3982 = vmatprep.subr.bf16.mxu0 %v5834_v21 }
 0x2c8   :  { %v8472_v33 = vpop.f32.mrb[71].mxu0  ;;  %v8474_v12 = vpop.f32.mrb[135].mxu1  ;;  %v3101_v49 = vadd.f32 1.0, %v6219_v16  ;;  %6236 = vtanh.f32 %v8442_v23  ;;  %3841 = vmatprep.mubr.bf16.mxu0 %v3326_v50  ;;  %v5177_v35 = vadd.f32 %v8329_v1, %v7962_v61  ;;  %v5837_v4 = vld [vmem:[#allocation4 + $0x1b4] ss:$8 sps:$4 sm:$0xff]   ;;  %v8483_v40 = vmul.f32 %v3099_v0, %v8333_v9 }
 0x2c9   :  { %v6221_v38 = vpop.eup %6220  ;;  %6238 = vtanh.f32 %v8468_v22  ;;  %v5241_v48 = vadd.f32 %v8331_v53, %v7966_v24  ;;  %v8489_v30 = vmul.f32 %v3098_v32, %v8349_v28  ;;  %v8492_v50 = vmul.f32 %v3100_v15, %v8351_v27  ;;  %v5835_v16 = vld [vmem:[#allocation4 + $0x1b0] ss:$8 sps:$4 sm:$0xff]  }
 0x2ca   :  { %v6223_v6 = vpop.eup %6222  ;;  %9770 = vst [vmem:[#allocation32_spill] sm:$0xff] %v8483_v40  ;;  %v3103_v39 = vadd.f32 1.0, %v6221_v38  ;;  %6240 = vtanh.f32 %v8470_v10  ;;  %v8495_v1 = vmul.f32 0.5, %v5177_v35  ;;  %v8498_v9 = vmul.f32 %v3101_v49, %v8356_v51  ;;  %3983 = vmatpush1.bf16.msra.mxu0 %v5832_v31  ;;  %v5840_v38 = vld [vmem:[#allocation4 + $0x1c4] ss:$8 sps:$4 sm:$0xff]  }
 0x2cb   :  { %v6225_v52 = vpop.eup %6224  ;;  %9771 = vst [vmem:[#allocation33_spill] sm:$0xff] %v8492_v50  ;;  %v3102_v21 = vadd.f32 1.0, %v6223_v6  ;;  %v8500_v0 = vmul.f32 0.5, %v5241_v48  ;;  %v3325_v53 = vpack.c.bf16 %v8367_v36, %v8312_v3  ;;  %v5178_v27 = vadd.f32 %v8339_v25, %v7969_v11  ;;  %v8512_v15 = vpop.f32.mrb[72].mxu0  ;;  %3984 = vmatprep.subr.bf16.mxu0 %v5837_v4  ;;  %v5838_v31 = vld [vmem:[#allocation4 + $0x1c0] ss:$8 sps:$4 sm:$0xff]  }
 0x2cc   :  { %v8505_v28 = vmul.f32 %v3103_v39, %v8358_v47  ;;  %6242 = vtanh.f32 %v8495_v1  ;;  %v5242_v51 = vadd.f32 %v8341_v63, %v7973_v20  ;;  %v8514_v32 = vpop.f32.mrb[136].mxu1  ;;  %v3104_v36 = vadd.f32 1.0, %v6225_v52  ;;  %v8521_v47 = vpop.f32.mrb[73].mxu0 }
 0x2cd   :  { %v6227_v3 = vpop.eup %6226  ;;  %6244 = vtanh.f32 %v8500_v0  ;;  %3842 = vmatmul.mubr.bf16.gmra.mrb[112].mxu0 %v3325_v53  ;;  %v5179_v39 = vadd.f32 %v8375_v26, %v7962_v61  ;;  %v5243_v25 = vadd.f32 %v8377_v59, %v7966_v24  ;;  %v8523_v63 = vpop.f32.mrb[137].mxu1  ;;  %v8525_v4 = vmul.f32 0.5, %v5178_v27 }
 0x2ce   :  { %9772 = vst [vmem:[#allocation34_spill] sm:$0xff] %v8505_v28  ;;  %v6229_v49 = vpop.eup %6228  ;;  %v3105_v35 = vadd.f32 1.0, %v6227_v3  ;;  %v8527_v6 = vmul.f32 0.5, %v5242_v51  ;;  %v5180_v48 = vadd.f32 %v8385_v42, %v7969_v11  ;;  %v8531_v52 = vpop.f32.mrb[74].mxu0  ;;  %v5244_v3 = vadd.f32 %v8387_v43, %v7973_v20  ;;  %3985 = vmatpush1.bf16.msra.mxu0 %v5835_v16 }
 0x2cf   :  { %v8533_v26 = vpop.f32.mrb[138].mxu1  ;;  %v6231_v53 = vpop.eup %6230  ;;  %v3107_v59 = vadd.f32 1.0, %v6229_v49  ;;  %v8535_v28 = vmul.f32 0.5, %v5179_v39  ;;  %v8537_v40 = vmul.f32 0.5, %v5243_v25  ;;  %v8546_v42 = vmul.f32 %v3102_v21, %v8383_v56  ;;  %3986 = vmatprep.subr.bf16.mxu0 %v5840_v38  ;;  %v5843_v39 = vld [vmem:[#allocation4 + $0x1d4] ss:$8 sps:$4 sm:$0xff]  }
 0x2d0   :  { %v8541_v27 = vpop.f32.mrb[75].mxu0  ;;  %v8543_v51 = vpop.f32.mrb[139].mxu1  ;;  %v3106_v34 = vadd.f32 1.0, %v6231_v53  ;;  %6246 = vtanh.f32 %v8525_v4  ;;  %v8549_v49 = vmul.f32 0.5, %v5180_v48  ;;  %v8552_v8 = vmul.f32 %v3104_v36, %v8393_v45  ;;  %v5841_v36 = vld [vmem:[#allocation4 + $0x1d0] ss:$8 sps:$4 sm:$0xff]  }
 0x2d1   :  { %v6233_v50 = vpop.eup %6232  ;;  %6248 = vtanh.f32 %v8527_v6  ;;  %v8555_v5 = vmul.f32 0.5, %v5244_v3  ;;  %v8558_v56 = vmul.f32 %v3105_v35, %v8418_v19  ;;  %v3330_v38 = vpack.c.bf16 %v8489_v30, %v8434_v29 }
 0x2d2   :  { %v6235_v25 = vpop.eup %6234  ;;  %9773 = vst [vmem:[#allocation35_spill] sm:$0xff] %v8552_v8  ;;  %v3108_v43 = vadd.f32 1.0, %v6233_v50  ;;  %6250 = vtanh.f32 %v8535_v28  ;;  %v8564_v53 = vmul.f32 %v3107_v59, %v8420_v17  ;;  %v5181_v50 = vadd.f32 %v8397_v57, %v7962_v61  ;;  %3987 = vmatpush1.bf16.msra.mxu0 %v5838_v31  ;;  %v5846_v59 = vld [vmem:[#allocation4 + $0x1e4] ss:$8 sps:$4 sm:$0xff]  }
 0x2d3   :  { %v6237_v16 = vpop.eup %6236  ;;  %v3109_v21 = vadd.f32 1.0, %v6235_v25  ;;  %6252 = vtanh.f32 %v8537_v40  ;;  %v8570_v35 = vmul.f32 %v3106_v34, %v8424_v37  ;;  %3851 = vmatprep.mubr.bf16.mxu0 %v3330_v38  ;;  %v5245_v17 = vadd.f32 %v8399_v41, %v7966_v24  ;;  %v8575_v29 = vpop.f32.mrb[76].mxu0  ;;  %3988 = vmatprep.subr.bf16.mxu0 %v5843_v39 }
 0x2d4   :  { %v6239_v48 = vpop.eup %6238  ;;  %9774 = vst [vmem:[#allocation36_spill] sm:$0xff] %v8564_v53  ;;  %v3111_v45 = vadd.f32 1.0, %v6237_v16  ;;  %6254 = vtanh.f32 %v8549_v49  ;;  %v8577_v30 = vpop.f32.mrb[140].mxu1  ;;  %v8580_v57 = vmul.f32 %v3108_v43, %v8437_v46  ;;  %v8583_v34 = vmul.f32 0.5, %v5181_v50 }
 0x2d5   :  { %v6241_v19 = vpop.eup %6240  ;;  %v3110_v3 = vadd.f32 1.0, %v6239_v48  ;;  %6256 = vtanh.f32 %v8555_v5  ;;  %v8585_v37 = vpop.f32.mrb[77].mxu0  ;;  %v8590_v41 = vmul.f32 %v3109_v21, %v8440_v14  ;;  %v8592_v38 = vmul.f32 0.5, %v5245_v17 }
 0x2d6   :  { %9775 = vst [vmem:[#allocation37_spill] sm:$0xff] %v8580_v57  ;;  %v3112_v31 = vadd.f32 1.0, %v6241_v19  ;;  %v8587_v25 = vpop.f32.mrb[141].mxu1  ;;  %v6243_v16 = vpop.eup %6242  ;;  %v3329_v39 = vpack.c.bf16 %v8477_v18, %v8416_v13  ;;  %v5182_v46 = vadd.f32 %v8406_v7, %v7969_v11  ;;  %v8603_v19 = vmul.f32 %v3111_v45, %v8442_v23  ;;  %3989 = vmatpush1.bf16.msra.mxu0 %v5841_v36  ;;  %v5844_v7 = vld [vmem:[#allocation4 + $0x1e0] ss:$8 sps:$4 sm:$0xff]  }
 0x2d7   :  { %v8598_v43 = vpop.f32.mrb[78].mxu0  ;;  %v8600_v48 = vpop.f32.mrb[142].mxu1  ;;  %v8606_v53 = vmul.f32 %v3110_v3, %v8468_v22  ;;  %6258 = vtanh.f32 %v8583_v34  ;;  %v5246_v14 = vadd.f32 %v8408_v58, %v7973_v20  ;;  %v5183_v22 = vadd.f32 %v8444_v44, %v7962_v61  ;;  %3990 = vmatprep.subr.bf16.mxu0 %v5846_v59  ;;  %v5849_v45 = vld [vmem:[#allocation4 + $0x1f4] ss:$8 sps:$4 sm:$0xff]  }
 0x2d8   :  { %v6245_v50 = vpop.eup %6244  ;;  %9776 = vst [vmem:[#allocation38_spill] sm:$0xff] %v8603_v19  ;;  %v8611_v13 = vpop.f32.mrb[79].mxu0  ;;  %v8616_v21 = vmul.f32 %v3112_v31, %v8470_v10  ;;  %6260 = vtanh.f32 %v8592_v38  ;;  %3852 = vmatmul.mubr.bf16.gmra.mrb[116].mxu0 %v3329_v39  ;;  %v8619_v23 = vmul.f32 0.5, %v5182_v46  ;;  %v3113_v58 = vadd.f32 1.0, %v6243_v16 }
 0x2d9   :  { %v8613_v18 = vpop.f32.mrb[143].mxu1  ;;  %v8623_v3 = vmul.f32 0.5, %v5246_v14  ;;  %v5247_v36 = vadd.f32 %v8446_v62, %v7966_v24  ;;  %v5184_v10 = vadd.f32 %v8453_v55, %v7969_v11  ;;  %v3115_v31 = vadd.f32 1.0, %v6245_v50  ;;  %v5847_v62 = vld [vmem:[#allocation4 + $0x1f0] ss:$8 sps:$4 sm:$0xff]  }
 0x2da   :  { %9777 = vst [vmem:[#allocation39_spill] sm:$0xff] %v8616_v21  ;;  %v6247_v17 = vpop.eup %6246  ;;  %6262 = vtanh.f32 %v8619_v23  ;;  %v8630_v39 = vmul.f32 0.5, %v5183_v22  ;;  %v5248_v44 = vadd.f32 %v8455_v54, %v7973_v20  ;;  %3991 = vmatpush1.bf16.msra.mxu0 %v5844_v7  ;;  %v3334_v22 = vpack.c.bf16 %v8570_v35, %v8546_v42 }
 0x2db   :  { %v6249_v59 = vpop.eup %6248  ;;  %v3114_v46 = vadd.f32 1.0, %v6247_v17  ;;  %6264 = vtanh.f32 %v8623_v3  ;;  %v8635_v16 = vmul.f32 0.5, %v5247_v36  ;;  %v8637_v14 = vmul.f32 0.5, %v5184_v10  ;;  %v8644_v54 = vpop.f32.mrb[80].mxu0  ;;  %3992 = vmatprep.subr.bf16.mxu0 %v5849_v45 }
 0x2dc   :  { %v6251_v55 = vpop.eup %6250  ;;  %v3116_v19 = vadd.f32 1.0, %v6249_v59  ;;  %6266 = vtanh.f32 %v8630_v39  ;;  %v8640_v50 = vmul.f32 0.5, %v5248_v44  ;;  %v8646_v17 = vpop.f32.mrb[144].mxu1  ;;  %v8649_v10 = vmul.f32 %v3113_v58, %v8495_v1  ;;  %3861 = vmatprep.mubr.bf16.mxu0 %v3334_v22 }
 0x2dd   :  { %v6253_v36 = vpop.eup %6252  ;;  %v3117_v7 = vadd.f32 1.0, %v6251_v55  ;;  %6268 = vtanh.f32 %v8635_v16  ;;  %v5185_v59 = vadd.f32 %v8463_v60, %v7962_v61  ;;  %v8654_v44 = vpop.f32.mrb[81].mxu0  ;;  %v8659_v35 = vmul.f32 %v3115_v31, %v8500_v0 }
 0x2de   :  { %v8656_v21 = vpop.f32.mrb[145].mxu1  ;;  %v6255_v42 = vpop.eup %6254  ;;  %v3119_v57 = vadd.f32 1.0, %v6253_v36  ;;  %6270 = vtanh.f32 %v8637_v14  ;;  %v5249_v1 = vadd.f32 %v8465_v2, %v7966_v24  ;;  %v8669_v55 = vmul.f32 %v3114_v46, %v8525_v4  ;;  %3993 = vmatpush1.bf16.msra.mxu0 %v5847_v62 }
 0x2df   :  { %9778 = vst [vmem:[#allocation40_spill] sm:$0xff] %v8659_v35  ;;  %v8664_v45 = vpop.f32.mrb[82].mxu0  ;;  %v8666_v58 = vpop.f32.mrb[146].mxu1  ;;  %v3118_v8 = vadd.f32 1.0, %v6255_v42  ;;  %6272 = vtanh.f32 %v8640_v50  ;;  %v8672_v0 = vmul.f32 0.5, %v5185_v59  ;;  %v8679_v2 = vmul.f32 %v3116_v19, %v8527_v6 }
 0x2e0   :  { %v6257_v60 = vpop.eup %6256  ;;  %v8674_v31 = vpop.f32.mrb[83].mxu0  ;;  %v8682_v22 = vmul.f32 %v3117_v7, %v8535_v28  ;;  %v8684_v35 = vmul.f32 0.5, %v5249_v1  ;;  %v3333_v4 = vpack.c.bf16 %v8558_v56, %v8498_v9  ;;  %v5186_v59 = vadd.f32 %v8472_v33, %v7969_v11 }
 0x2e1   :  { %v8676_v36 = vpop.f32.mrb[147].mxu1  ;;  %9779 = vst [vmem:[#allocation41_spill] sm:$0xff] %v8679_v2  ;;  %v6259_v46 = vpop.eup %6258  ;;  %v3120_v42 = vadd.f32 1.0, %v6257_v60  ;;  %6274 = vtanh.f32 %v8672_v0  ;;  %v5250_v62 = vadd.f32 %v8474_v12, %v7973_v20  ;;  %v8694_v19 = vmul.f32 %v3119_v57, %v8537_v40 }
 0x2e2   :  { %v6261_v6 = vpop.eup %6260  ;;  %v8697_v28 = vmul.f32 %v3118_v8, %v8549_v49  ;;  %6276 = vtanh.f32 %v8684_v35  ;;  %3862 = vmatmul.mubr.bf16.gmra.mrb[120].mxu0 %v3333_v4  ;;  %v5187_v9 = vadd.f32 %v8512_v15, %v7962_v61  ;;  %v3121_v56 = vadd.f32 1.0, %v6259_v46 }
 0x2e3   :  { %9780 = vst [vmem:[#allocation42_spill] sm:$0xff] %v8694_v19  ;;  %v8702_v7 = vmul.f32 0.5, %v5186_v59  ;;  %v8704_v33 = vmul.f32 0.5, %v5250_v62  ;;  %v5251_v12 = vadd.f32 %v8514_v32, %v7966_v24  ;;  %v3123_v40 = vadd.f32 1.0, %v6261_v6  ;;  %v8714_v60 = vpop.f32.mrb[84].mxu0  ;;  %v8716_v15 = vpop.f32.mrb[148].mxu1 }
 0x2e4   :  { %v6263_v1 = vpop.eup %6262  ;;  %v8708_v57 = vmul.f32 0.5, %v5187_v9  ;;  %v5188_v8 = vadd.f32 %v8521_v47, %v7969_v11  ;;  %v5252_v49 = vadd.f32 %v8523_v63, %v7973_v20  ;;  %v8719_v46 = vmul.f32 %v3120_v42, %v8555_v5  ;;  %v8724_v62 = vpop.f32.mrb[85].mxu0 }
 0x2e5   :  { %v6265_v4 = vpop.eup %6264  ;;  %v3122_v59 = vadd.f32 1.0, %v6263_v1  ;;  %6278 = vtanh.f32 %v8702_v7  ;;  %v8722_v32 = vmul.f32 0.5, %v5251_v12  ;;  %v8726_v6 = vpop.f32.mrb[149].mxu1  ;;  %v8738_v12 = vmul.f32 %v3121_v56, %v8583_v34 }
 0x2e6   :  { %9781 = vst [vmem:[#allocation43_spill] sm:$0xff] %v8719_v46  ;;  %9782 = vst [vmem:[#allocation44_spill] sm:$0xff] %v8726_v6  ;;  %v6267_v47 = vpop.eup %6266  ;;  %v3124_v9 = vadd.f32 1.0, %v6265_v4  ;;  %6280 = vtanh.f32 %v8704_v33  ;;  %v8729_v63 = vmul.f32 0.5, %v5188_v8  ;;  %v8731_v19 = vmul.f32 0.5, %v5252_v49  ;;  %v8733_v2 = vpop.f32.mrb[86].mxu0 }
 0x2e7   :  { %9783 = vst [vmem:[#allocation45_spill] sm:$0xff] %v8733_v2  ;;  %v8735_v5 = vpop.f32.mrb[150].mxu1  ;;  %v6269_v42 = vpop.eup %6268  ;;  %v3125_v1 = vadd.f32 1.0, %v6267_v47  ;;  %6282 = vtanh.f32 %v8708_v57  ;;  %v3338_v4 = vpack.c.bf16 %v8669_v55, %v8606_v53  ;;  %v8748_v6 = vmul.f32 %v3123_v40, %v8592_v38 }
 0x2e8   :  { %9784 = vst [vmem:[#allocation46_spill] sm:$0xff] %v8735_v5  ;;  %v8743_v46 = vpop.f32.mrb[87].mxu0  ;;  %v8745_v8 = vpop.f32.mrb[151].mxu1  ;;  %v3127_v2 = vadd.f32 1.0, %v6269_v42  ;;  %6284 = vtanh.f32 %v8722_v32  ;;  %v5189_v34 = vadd.f32 %v8531_v52, %v7962_v61  ;;  %v3250_v47 = vmul.f32 %v3122_v59, %v8619_v23 }
 0x2e9   :  { %v6271_v49 = vpop.eup %6270  ;;  %9785 = vst [vmem:[#allocation47_spill] sm:$0xff] %v8748_v6  ;;  %6286 = vtanh.f32 %v8729_v63  ;;  %3871 = vmatprep.mubr.bf16.mxu0 %v3338_v4  ;;  %v5253_v53 = vadd.f32 %v8533_v26, %v7966_v24  ;;  %v8758_v55 = vmul.f32 %v3124_v9, %v8623_v3  ;;  %v8764_v52 = vmul.f32 %v3125_v1, %v8630_v39 }
 0x2ea   :  { %v6273_v56 = vpop.eup %6272  ;;  %v3126_v5 = vadd.f32 1.0, %v6271_v49  ;;  %6288 = vtanh.f32 %v8731_v19  ;;  %v8761_v40 = vmul.f32 0.5, %v5189_v34  ;;  %v3337_v59 = vpack.c.bf16 %v8649_v10, %v8590_v41 }
 0x2eb   :  { %9786 = vst [vmem:[#allocation48_spill] sm:$0xff] %v8758_v55  ;;  %v3128_v38 = vadd.f32 1.0, %v6273_v56  ;;  %v6275_v42 = vpop.eup %6274  ;;  %v8766_v23 = vmul.f32 0.5, %v5253_v53  ;;  %v5190_v26 = vadd.f32 %v8541_v27, %v7969_v11  ;;  %v8773_v3 = vmul.f32 %v3127_v2, %v8635_v16  ;;  %v8781_v1 = vpop.f32.mrb[88].mxu0 }
 0x2ec   :  { %v6277_v4 = vpop.eup %6276  ;;  %v8776_v9 = vmul.f32 %v3126_v5, %v8637_v14  ;;  %6290 = vtanh.f32 %v8761_v40  ;;  %v5254_v39 = vadd.f32 %v8543_v51, %v7973_v20  ;;  %v8783_v49 = vpop.f32.mrb[152].mxu1  ;;  %3872 = vmatmul.mubr.bf16.gmra.mrb[124].mxu0 %v3337_v59  ;;  %v5191_v16 = vadd.f32 %v8575_v29, %v7962_v61 }
 0x2ed   :  { %9787 = vst [vmem:[#allocation49_spill] sm:$0xff] %v8773_v3  ;;  %v8786_v41 = vmul.f32 %v3128_v38, %v8640_v50  ;;  %6292 = vtanh.f32 %v8766_v23  ;;  %v8789_v27 = vmul.f32 0.5, %v5190_v26  ;;  %v8793_v14 = vpop.f32.mrb[89].mxu0  ;;  %v8795_v10 = vpop.f32.mrb[153].mxu1  ;;  %v3129_v51 = vadd.f32 1.0, %v6275_v42 }
 0x2ee   :  { %v8797_v2 = vmul.f32 0.5, %v5254_v39  ;;  %v5255_v5 = vadd.f32 %v8577_v30, %v7966_v24  ;;  %v5192_v50 = vadd.f32 %v8585_v37, %v7969_v11  ;;  %v8803_v34 = vpop.f32.mrb[90].mxu0  ;;  %v8805_v56 = vpop.f32.mrb[154].mxu1  ;;  %v3131_v38 = vadd.f32 1.0, %v6277_v4 }
 0x2ef   :  { %9788 = vst [vmem:[#allocation50_spill] sm:$0xff] %v8786_v41  ;;  %v6279_v53 = vpop.eup %6278  ;;  %6294 = vtanh.f32 %v8789_v27  ;;  %v8808_v29 = vmul.f32 0.5, %v5191_v16  ;;  %v5256_v42 = vadd.f32 %v8587_v25, %v7973_v20  ;;  %v8812_v59 = vpop.f32.mrb[91].mxu0  ;;  %v3342_v25 = vpack.c.bf16 %v3250_v47, %v8697_v28 }
 0x2f0   :  { %v8814_v26 = vpop.f32.mrb[155].mxu1  ;;  %v6281_v30 = vpop.eup %6280  ;;  %v3130_v39 = vadd.f32 1.0, %v6279_v53  ;;  %6296 = vtanh.f32 %v8797_v2  ;;  %v8817_v37 = vmul.f32 0.5, %v5255_v5  ;;  %v8819_v3 = vmul.f32 0.5, %v5192_v50 }
 0x2f1   :  { %9789 = vst [vmem:[#allocation51_spill] sm:$0xff] %v8814_v26  ;;  %v6283_v4 = vpop.eup %6282  ;;  %v3132_v41 = vadd.f32 1.0, %v6281_v30  ;;  %6298 = vtanh.f32 %v8808_v29  ;;  %v8822_v16 = vmul.f32 0.5, %v5256_v42  ;;  %v8826_v55 = vmul.f32 %v3129_v51, %v8672_v0  ;;  %3881 = vmatprep.mubr.bf16.mxu0 %v3342_v25 }
 0x2f2   :  { %v6285_v6 = vpop.eup %6284  ;;  %v3133_v26 = vadd.f32 1.0, %v6283_v4  ;;  %6300 = vtanh.f32 %v8817_v37  ;;  %v5193_v5 = vadd.f32 %v8598_v43, %v7962_v61  ;;  %v8832_v53 = vmul.f32 %v3131_v38, %v8684_v35 }
 0x2f3   :  { %v6287_v50 = vpop.eup %6286  ;;  %v3135_v30 = vadd.f32 1.0, %v6285_v6  ;;  %6302 = vtanh.f32 %v8819_v3  ;;  %v5257_v28 = vadd.f32 %v8600_v48, %v7966_v24  ;;  %v3258_v0 = vmul.f32 %v3130_v39, %v8702_v7  ;;  %v8841_v43 = vpop.f32.mrb[92].mxu0 }
 0x2f4   :  { %9790 = vst [vmem:[#allocation52_spill] sm:$0xff] %v8832_v53  ;;  %v6289_v47 = vpop.eup %6288  ;;  %v3134_v51 = vadd.f32 1.0, %v6287_v50  ;;  %6304 = vtanh.f32 %v8822_v16  ;;  %v8839_v42 = vmul.f32 0.5, %v5193_v5  ;;  %v8843_v4 = vpop.f32.mrb[156].mxu1  ;;  %v8846_v35 = vmul.f32 %v3132_v41, %v8704_v33 }
 0x2f5   :  { %v8849_v6 = vmul.f32 %v3133_v26, %v8708_v57  ;;  %v8851_v38 = vmul.f32 0.5, %v5257_v28  ;;  %v3341_v48 = vpack.c.bf16 %v8738_v12, %v8682_v22  ;;  %v8855_v7 = vpop.f32.mrb[93].mxu0  ;;  %v8857_v39 = vpop.f32.mrb[157].mxu1  ;;  %v3136_v5 = vadd.f32 1.0, %v6289_v47 }
 0x2f6   :  { %9791 = vst [vmem:[#allocation53_spill] sm:$0xff] %v8846_v35  ;;  %v6291_v25 = vpop.eup %6290  ;;  %6306 = vtanh.f32 %v8839_v42  ;;  %v5194_v33 = vadd.f32 %v8611_v13, %v7969_v11  ;;  %v5258_v57 = vadd.f32 %v8613_v18, %v7973_v20  ;;  %v8864_v41 = vpop.f32.mrb[94].mxu0  ;;  %v8869_v22 = vmul.f32 %v3135_v30, %v8722_v32 }
 0x2f7   :  { %v8866_v26 = vpop.f32.mrb[158].mxu1  ;;  %v6293_v50 = vpop.eup %6292  ;;  %v8872_v12 = vmul.f32 %v3134_v51, %v8729_v63  ;;  %6308 = vtanh.f32 %v8851_v38  ;;  %3882 = vmatmul.mubr.bf16.gmra.mrb[128].mxu0 %v3341_v48  ;;  %v5195_v13 = vadd.f32 %v8644_v54, %v7962_v61  ;;  %v3137_v47 = vadd.f32 1.0, %v6291_v25 }
 0x2f8   :  { %9792 = vst [vmem:[#allocation54_spill] sm:$0xff] %v8869_v22  ;;  %v8877_v28 = vpop.f32.mrb[95].mxu0  ;;  %v8879_v18 = vpop.f32.mrb[159].mxu1  ;;  %v8881_v53 = vmul.f32 0.5, %v5194_v33  ;;  %v8883_v35 = vmul.f32 0.5, %v5258_v57  ;;  %v5259_v32 = vadd.f32 %v8646_v17, %v7966_v24  ;;  %v3139_v30 = vadd.f32 1.0, %v6293_v50 }
 0x2f9   :  { %9793 = vst [vmem:[#allocation55_spill] sm:$0xff] %v8877_v28  ;;  %9794 = vst [vmem:[#allocation56_spill] sm:$0xff] %v8879_v18  ;;  %v6295_v63 = vpop.eup %6294  ;;  %v8887_v51 = vmul.f32 0.5, %v5195_v13  ;;  %v5196_v48 = vadd.f32 %v8654_v44, %v7969_v11  ;;  %v5260_v54 = vadd.f32 %v8656_v21, %v7973_v20  ;;  %v8894_v25 = vmul.f32 %v3136_v5, %v8731_v19 }
 0x2fa   :  { %v6297_v22 = vpop.eup %6296  ;;  %v3138_v33 = vadd.f32 1.0, %v6295_v63  ;;  %6310 = vtanh.f32 %v8881_v53  ;;  %v8897_v57 = vmul.f32 0.5, %v5259_v32  ;;  %v8905_v21 = vmul.f32 %v3137_v47, %v8761_v40 }
 0x2fb   :  { %v6299_v17 = vpop.eup %6298  ;;  %v3140_v18 = vadd.f32 1.0, %v6297_v22  ;;  %6312 = vtanh.f32 %v8883_v35  ;;  %v8900_v50 = vmul.f32 0.5, %v5196_v48  ;;  %v8902_v13 = vmul.f32 0.5, %v5260_v54 }
 0x2fc   :  { %v6301_v44 = vpop.eup %6300  ;;  %v3141_v28 = vadd.f32 1.0, %v6299_v17  ;;  %6314 = vtanh.f32 %v8887_v51  ;;  %v3346_v19 = vpack.c.bf16 %v3258_v0, %v8776_v9  ;;  %v8910_v32 = vmul.f32 %v3139_v30, %v8766_v23 }
 0x2fd   :  { %v6303_v5 = vpop.eup %6302  ;;  %v3143_v22 = vadd.f32 1.0, %v6301_v44  ;;  %6316 = vtanh.f32 %v8897_v57  ;;  %v5197_v63 = vadd.f32 %v8664_v45, %v7962_v61  ;;  %v3266_v54 = vmul.f32 %v3138_v33, %v8789_v27 }
 0x2fe   :  { %v6305_v48 = vpop.eup %6304  ;;  %v3142_v40 = vadd.f32 1.0, %v6303_v5  ;;  %6318 = vtanh.f32 %v8900_v50  ;;  %3891 = vmatprep.mubr.bf16.mxu0 %v3346_v19  ;;  %v5261_v9 = vadd.f32 %v8666_v58, %v7966_v24  ;;  %v8920_v0 = vmul.f32 %v3140_v18, %v8797_v2  ;;  %v9795_v5 = vld [vmem:[#allocation44_spill] sm:$0xff] }
 0x2ff   :  { %v3144_v23 = vadd.f32 1.0, %v6305_v48  ;;  %6320 = vtanh.f32 %v8902_v13  ;;  %v8923_v47 = vmul.f32 0.5, %v5197_v63  ;;  %v8926_v45 = vmul.f32 %v3141_v28, %v8808_v29 }
 0x300   :  { %v6307_v30 = vpop.eup %6306  ;;  %v8928_v27 = vmul.f32 0.5, %v5261_v9  ;;  %v3345_v33 = vpack.c.bf16 %v8826_v55, %v8764_v52  ;;  %v5198_v58 = vadd.f32 %v8674_v31, %v7969_v11  ;;  %v8935_v2 = vmul.f32 %v3143_v22, %v8817_v37 }
 0x301   :  { %v6309_v17 = vpop.eup %6308  ;;  %v8938_v18 = vmul.f32 %v3142_v40, %v8819_v3  ;;  %6322 = vtanh.f32 %v8923_v47  ;;  %v5262_v29 = vadd.f32 %v8676_v36, %v7973_v20  ;;  %v8944_v28 = vmul.f32 %v3144_v23, %v8822_v16 }
 0x302   :  { %6324 = vtanh.f32 %v8928_v27  ;;  %3892 = vmatmul.mubr.bf16.gmra.mrb[132].mxu0 %v3345_v33  ;;  %v8947_v55 = vmul.f32 0.5, %v5198_v58  ;;  %v5199_v31 = vadd.f32 %v8714_v60, %v7962_v61  ;;  %v3145_v52 = vadd.f32 1.0, %v6307_v30 }
 0x303   :  { %v8951_v37 = vmul.f32 0.5, %v5262_v29  ;;  %v5263_v3 = vadd.f32 %v8716_v15, %v7966_v24  ;;  %v5200_v36 = vadd.f32 %v8724_v62, %v7969_v11  ;;  %v3147_v16 = vadd.f32 1.0, %v6309_v17  ;;  %v9796_v17 = vld [vmem:[#allocation45_spill] sm:$0xff] }
 0x304   :  { %v6311_v44 = vpop.eup %6310  ;;  %6326 = vtanh.f32 %v8947_v55  ;;  %v8958_v19 = vmul.f32 0.5, %v5199_v31  ;;  %v5264_v22 = vadd.f32 %v9795_v5, %v7973_v20  ;;  %v3350_v23 = vpack.c.bf16 %v3266_v54, %v8872_v12  ;;  %v9797_v12 = vld [vmem:[#allocation46_spill] sm:$0xff] }
 0x305   :  { %v6313_v63 = vpop.eup %6312  ;;  %v3146_v60 = vadd.f32 1.0, %v6311_v44  ;;  %6328 = vtanh.f32 %v8951_v37  ;;  %v8963_v48 = vmul.f32 0.5, %v5263_v3  ;;  %v8965_v40 = vmul.f32 0.5, %v5200_v36 }
 0x306   :  { %v6315_v15 = vpop.eup %6314  ;;  %v3148_v9 = vadd.f32 1.0, %v6313_v63  ;;  %6330 = vtanh.f32 %v8958_v19  ;;  %v8968_v62 = vmul.f32 0.5, %v5264_v22  ;;  %v8972_v33 = vmul.f32 %v3145_v52, %v8839_v42  ;;  %3901 = vmatprep.mubr.bf16.mxu0 %v3350_v23 }
 0x307   :  { %v6317_v30 = vpop.eup %6316  ;;  %v3149_v58 = vadd.f32 1.0, %v6315_v15  ;;  %6332 = vtanh.f32 %v8963_v48  ;;  %v5201_v29 = vadd.f32 %v9796_v17, %v7962_v61  ;;  %v8978_v3 = vmul.f32 %v3147_v16, %v8851_v38 }
 0x308   :  { %v6319_v31 = vpop.eup %6318  ;;  %v3151_v36 = vadd.f32 1.0, %v6317_v30  ;;  %6334 = vtanh.f32 %v8965_v40  ;;  %v5265_v54 = vadd.f32 %v9797_v12, %v7966_v24  ;;  %v3274_v42 = vmul.f32 %v3146_v60, %v8881_v53 }
 0x309   :  { %v6321_v44 = vpop.eup %6320  ;;  %v3150_v52 = vadd.f32 1.0, %v6319_v31  ;;  %6336 = vtanh.f32 %v8968_v62  ;;  %v8985_v5 = vmul.f32 0.5, %v5201_v29  ;;  %v8988_v22 = vmul.f32 %v3148_v9, %v8883_v35 }
 0x30a   :  { %v8991_v38 = vmul.f32 %v3149_v58, %v8887_v51  ;;  %v8993_v16 = vmul.f32 0.5, %v5265_v54  ;;  %v3349_v63 = vpack.c.bf16 %v8905_v21, %v8849_v6  ;;  %v3152_v23 = vadd.f32 1.0, %v6321_v44 }
 0x30b   :  { %v6323_v15 = vpop.eup %6322  ;;  %6338 = vtanh.f32 %v8985_v5  ;;  %v5202_v53 = vadd.f32 %v8743_v46, %v7969_v11  ;;  %v5266_v60 = vadd.f32 %v8745_v8, %v7973_v20  ;;  %v9003_v9 = vmul.f32 %v3151_v36, %v8897_v57 }
 0x30c   :  { %v6325_v35 = vpop.eup %6324  ;;  %v9006_v51 = vmul.f32 %v3150_v52, %v8900_v50  ;;  %6340 = vtanh.f32 %v8993_v16  ;;  %3902 = vmatmul.mubr.bf16.gmra.mrb[136].mxu0 %v3349_v63  ;;  %v5203_v6 = vadd.f32 %v8781_v1, %v7962_v61  ;;  %v3153_v21 = vadd.f32 1.0, %v6323_v15 }
 0x30d   :  { %v9011_v30 = vmul.f32 0.5, %v5202_v53  ;;  %v9013_v46 = vmul.f32 0.5, %v5266_v60  ;;  %v5267_v8 = vadd.f32 %v8783_v49, %v7966_v24  ;;  %v3155_v57 = vadd.f32 1.0, %v6325_v35 }
 0x30e   :  { %v6327_v58 = vpop.eup %6326  ;;  %v9017_v17 = vmul.f32 0.5, %v5203_v6  ;;  %v5204_v50 = vadd.f32 %v8793_v14, %v7969_v11  ;;  %v5268_v29 = vadd.f32 %v8795_v10, %v7973_v20  ;;  %v9024_v1 = vmul.f32 %v3152_v23, %v8902_v13 }
 0x30f   :  { %v6329_v31 = vpop.eup %6328  ;;  %v3154_v36 = vadd.f32 1.0, %v6327_v58  ;;  %6342 = vtanh.f32 %v9011_v30  ;;  %v9027_v12 = vmul.f32 0.5, %v5267_v8  ;;  %v9035_v10 = vmul.f32 %v3153_v21, %v8923_v47 }
 0x310   :  { %v6331_v49 = vpop.eup %6330  ;;  %v3156_v54 = vadd.f32 1.0, %v6329_v31  ;;  %6344 = vtanh.f32 %v9013_v46  ;;  %v9030_v44 = vmul.f32 0.5, %v5204_v50  ;;  %v9032_v52 = vmul.f32 0.5, %v5268_v29 }
 0x311   :  { %v6333_v14 = vpop.eup %6332  ;;  %v3157_v63 = vadd.f32 1.0, %v6331_v49  ;;  %6346 = vtanh.f32 %v9017_v17  ;;  %v3354_v13 = vpack.c.bf16 %v3274_v42, %v8938_v18  ;;  %v9040_v23 = vmul.f32 %v3155_v57, %v8928_v27 }
 0x312   :  { %v6335_v15 = vpop.eup %6334  ;;  %v3159_v53 = vadd.f32 1.0, %v6333_v14  ;;  %6348 = vtanh.f32 %v9027_v12  ;;  %v5205_v60 = vadd.f32 %v8803_v34, %v7962_v61  ;;  %v3282_v6 = vmul.f32 %v3154_v36, %v8947_v55 }
 0x313   :  { %v6337_v35 = vpop.eup %6336  ;;  %v3158_v47 = vadd.f32 1.0, %v6335_v15  ;;  %6350 = vtanh.f32 %v9030_v44  ;;  %3911 = vmatprep.mubr.bf16.mxu0 %v3354_v13  ;;  %v5269_v18 = vadd.f32 %v8805_v56, %v7966_v24  ;;  %v9050_v42 = vmul.f32 %v3156_v54, %v8951_v37 }
 0x314   :  { %v3160_v27 = vadd.f32 1.0, %v6337_v35  ;;  %6352 = vtanh.f32 %v9032_v52  ;;  %v9053_v21 = vmul.f32 0.5, %v5205_v60  ;;  %v9056_v34 = vmul.f32 %v3157_v63, %v8958_v19  ;;  %v9798_v19 = vld [vmem:[#allocation51_spill] sm:$0xff] }
 0x315   :  { %v6339_v8 = vpop.eup %6338  ;;  %v9058_v55 = vmul.f32 0.5, %v5269_v18  ;;  %v3353_v58 = vpack.c.bf16 %v8972_v33, %v8926_v45  ;;  %v5206_v56 = vadd.f32 %v8812_v59, %v7969_v11  ;;  %v9065_v37 = vmul.f32 %v3159_v53, %v8963_v48 }
 0x316   :  { %v6341_v57 = vpop.eup %6340  ;;  %v9068_v50 = vmul.f32 %v3158_v47, %v8965_v40  ;;  %6354 = vtanh.f32 %v9053_v21  ;;  %v5270_v29 = vadd.f32 %v9798_v19, %v7973_v20  ;;  %v9074_v31 = vmul.f32 %v3160_v27, %v8968_v62  ;;  %v9799_v19 = vld [vmem:[#allocation55_spill] sm:$0xff] }
 0x317   :  { %6356 = vtanh.f32 %v9058_v55  ;;  %3912 = vmatmul.mubr.bf16.gmra.mrb[140].mxu0 %v3353_v58  ;;  %v9077_v45 = vmul.f32 0.5, %v5206_v56  ;;  %v5207_v59 = vadd.f32 %v8841_v43, %v7962_v61  ;;  %v3161_v48 = vadd.f32 1.0, %v6339_v8 }
 0x318   :  { %v9081_v33 = vmul.f32 0.5, %v5270_v29  ;;  %v5271_v40 = vadd.f32 %v8843_v4, %v7966_v24  ;;  %v5208_v36 = vadd.f32 %v8855_v7, %v7969_v11  ;;  %v3163_v62 = vadd.f32 1.0, %v6341_v57 }
 0x319   :  { %v6343_v49 = vpop.eup %6342  ;;  %6358 = vtanh.f32 %v9077_v45  ;;  %v9088_v54 = vmul.f32 0.5, %v5207_v59  ;;  %v5272_v14 = vadd.f32 %v8857_v39, %v7973_v20  ;;  %v3358_v60 = vpack.c.bf16 %v3282_v6, %v9006_v51 }
 0x31a   :  { %v6345_v63 = vpop.eup %6344  ;;  %v3162_v43 = vadd.f32 1.0, %v6343_v49  ;;  %6360 = vtanh.f32 %v9081_v33  ;;  %v9093_v13 = vmul.f32 0.5, %v5271_v40  ;;  %v9095_v15 = vmul.f32 0.5, %v5208_v36 }
 0x31b   :  { %v6347_v4 = vpop.eup %6346  ;;  %v3164_v53 = vadd.f32 1.0, %v6345_v63  ;;  %6362 = vtanh.f32 %v9088_v54  ;;  %v9098_v7 = vmul.f32 0.5, %v5272_v14  ;;  %v9102_v47 = vmul.f32 %v3161_v48, %v8985_v5  ;;  %3921 = vmatprep.mubr.bf16.mxu0 %v3358_v60  ;;  %v9802_v14 = vld [vmem:[#allocation8_spill] sm:$0xff]  ;;  %v9831_v60 = vld [vmem:[#allocation43_spill] sm:$0xff] }
 0x31c   :  { %v6349_v35 = vpop.eup %6348  ;;  %v3165_v39 = vadd.f32 1.0, %v6347_v4  ;;  %6364 = vtanh.f32 %v9093_v13  ;;  %v5209_v18 = vadd.f32 %v8864_v41, %v7962_v61  ;;  %v3290_v8 = vmul.f32 %v3162_v43, %v9011_v30  ;;  %v9803_v43 = vld [vmem:[#allocation15_spill] sm:$0xff]  ;;  %v9804_v4 = vld [vmem:[#allocation17_spill] sm:$0xff]  ;;  %v9838_v63 = vld [vmem:[#allocation52_spill] sm:$0xff] }
 0x31d   :  { %v6351_v27 = vpop.eup %6350  ;;  %v3167_v58 = vadd.f32 1.0, %v6349_v35  ;;  %6366 = vtanh.f32 %v9095_v15  ;;  %v5273_v51 = vadd.f32 %v8866_v26, %v7966_v24  ;;  %v9112_v5 = vmul.f32 %v3163_v62, %v8993_v16  ;;  %v9801_v62 = vld [vmem:[#allocation12_spill] sm:$0xff] }
 0x31e   :  { %v6353_v6 = vpop.eup %6352  ;;  %v3166_v56 = vadd.f32 1.0, %v6351_v27  ;;  %6368 = vtanh.f32 %v9098_v7  ;;  %v9115_v57 = vmul.f32 0.5, %v5209_v18  ;;  %v9118_v61 = vmul.f32 %v3164_v53, %v9013_v46  ;;  %v9800_v46 = vld [vmem:[#allocation56_spill] sm:$0xff]  ;;  %v9805_v53 = vld [vmem:[#allocation14_spill] sm:$0xff] }
 0x31f   :  { %v9121_v41 = vmul.f32 %v3165_v39, %v9017_v17  ;;  %v9123_v30 = vmul.f32 0.5, %v5273_v51  ;;  %v3357_v24 = vpack.c.bf16 %v9035_v10, %v8991_v38  ;;  %v9128_v16 = vmul.f32 %v3167_v58, %v9027_v12 }
 0x320   :  { %v6355_v26 = vpop.eup %6354  ;;  %6370 = vtanh.f32 %v9115_v57  ;;  %v5210_v29 = vadd.f32 %v9799_v19, %v7969_v11  ;;  %v5274_v59 = vadd.f32 %v9800_v46, %v7973_v20  ;;  %v3168_v17 = vadd.f32 1.0, %v6353_v6  ;;  %v9810_v6 = vld [vmem:[#allocation20_spill] sm:$0xff]  ;;  %v9812_v46 = vld [vmem:[#allocation25_spill] sm:$0xff] }
 0x321   :  { %v6357_v48 = vpop.eup %6356  ;;  %v3169_v40 = vadd.f32 1.0, %v6355_v26  ;;  %6372 = vtanh.f32 %v9123_v30  ;;  %3922 = vmatmul.mubr.bf16.gmra.mrb[144].mxu0 %v3357_v24  ;;  %v3362_v38 = vpack.c.bf16 %v3290_v8, %v9068_v50  ;;  %v3294_v10 = vmul.f32 %v3166_v56, %v9030_v44  ;;  %v9806_v44 = vld [vmem:[#allocation16_spill] sm:$0xff] }
 0x322   :  { %v9138_v12 = vmul.f32 0.5, %v5210_v29  ;;  %v9140_v36 = vmul.f32 0.5, %v5274_v59  ;;  %v3361_v11 = vpack.c.bf16 %v9102_v47, %v9056_v34  ;;  %v3171_v39 = vadd.f32 1.0, %v6357_v48  ;;  %v9807_v34 = vld [vmem:[#allocation19_spill] sm:$0xff]  ;;  %v9808_v47 = vld [vmem:[#allocation21_spill] sm:$0xff]  ;;  %v5851_v50 = vld [vmem:[%s9681_s7] sm:$0xff]  }
 0x323   :  { %v6359_v49 = vpop.eup %6358  ;;  %v9145_v20 = vmul.f32 %v3169_v40, %v9053_v21  ;;  %3931 = vmatprep.mubr.bf16.mxu0 %v3362_v38  ;;  %v9811_v29 = vld [vmem:[#allocation23_spill] sm:$0xff]  ;;  %v9814_v40 = vld [vmem:[#allocation24_spill] sm:$0xff]  ;;  %v9820_v59 = vld [vmem:[#allocation33_spill] sm:$0xff] }
 0x324   :  { %v6361_v35 = vpop.eup %6360  ;;  %v3170_v18 = vadd.f32 1.0, %v6359_v49  ;;  %6374 = vtanh.f32 %v9138_v12 }
 0x325   :  { %v6363_v21 = vpop.eup %6362  ;;  %v3172_v8 = vadd.f32 1.0, %v6361_v35  ;;  %6376 = vtanh.f32 %v9140_v36  ;;  %v3365_v58 = vpack.c.bf16 %v9145_v20, %v9121_v41  ;;  %v9167_v35 = vmul.f32 %v3168_v17, %v9032_v52  ;;  %v9832_v41 = vld [vmem:[#allocation48_spill] sm:$0xff] }
 0x326   :  { %v6365_v24 = vpop.eup %6364  ;;  %v3298_v26 = vmul.f32 %v3170_v18, %v9077_v45  ;;  %v3173_v19 = vadd.f32 1.0, %v6363_v21  ;;  %v9174_v45 = vmul.f32 %v3171_v39, %v9058_v55 }
 0x327   :  { %v6367_v49 = vpop.eup %6366  ;;  %v3175_v27 = vadd.f32 1.0, %v6365_v24  ;;  %v9177_v18 = vmul.f32 %v3172_v8, %v9081_v33  ;;  %v9833_v33 = vld [vmem:[#allocation42_spill] sm:$0xff] }
 0x328   :  { %v6369_v51 = vpop.eup %6368  ;;  %v3366_v21 = vpack.c.bf16 %v3298_v26, %v3294_v10  ;;  %v3301_v52 = vmul.f32 %v3173_v19, %v9088_v54  ;;  %v3174_v17 = vadd.f32 1.0, %v6367_v49  ;;  %v5850_v49 = vld [vmem:[%s9681_s7 + $0x40] sm:$0xff]   ;;  %v9834_v10 = vld [vmem:[#allocation47_spill] sm:$0xff]  ;;  %v9835_v26 = vld [vmem:[#allocation50_spill] sm:$0xff] }
 0x329   :  { %3932 = vmatmul.mubr.bf16.gmra.mrb[148].mxu0 %v3361_v11  ;;  %v9187_v55 = vmul.f32 %v3175_v27, %v9093_v13  ;;  %v3176_v27 = vadd.f32 1.0, %v6369_v51  ;;  %v9836_v11 = vld [vmem:[#allocation53_spill] sm:$0xff]  ;;  %5027 = vmatprep.subr.bf16.mxu1 %v5850_v49 }
 0x32a   :  { %v6371_v56 = vpop.eup %6370  ;;  %3941 = vmatprep.mubr.bf16.mxu0 %v3366_v21  ;;  %v9837_v19 = vld [vmem:[#allocation49_spill] sm:$0xff]  ;;  %5028 = vmatpush3.bf16.msra.mxu1 %v5851_v50 }
 0x32b   :  { %v6373_v13 = vpop.eup %6372  ;;  %v3177_v21 = vadd.f32 1.0, %v6371_v56  ;;  %v3347_v24 = vpack.c.bf16 %v9838_v63, %v9837_v19  ;;  %v9839_v56 = vld [vmem:[#allocation54_spill] sm:$0xff]  ;;  %v9882_v63 = vpack.c.bf16 %v9050_v42, %v9024_v1 }
 0x32c   :  { %v3179_v8 = vadd.f32 1.0, %v6373_v13  ;;  %v3363_v13 = vpack.c.bf16 %v9112_v5, %v9065_v37  ;;  %v9887_v1 = vld [vmem:[#allocation10_spill] sm:$0xff] }
 0x32d   :  { %v3305_v51 = vmul.f32 %v3177_v21, %v9115_v57  ;;  %v3302_v57 = vmul.f32 %v3174_v17, %v9095_v15  ;;  %v5853_v15 = vld [vmem:[%s9681_s7 + $0x8] sm:$0xff]   ;;  %v9841_v17 = vld [vmem:[#allocation11_spill] sm:$0xff] }
 0x32e   :  { %v6375_v54 = vpop.eup %6374  ;;  %v9219_v48 = vmul.f32 %v3179_v8, %v9123_v30  ;;  %v3367_v8 = vpack.c.bf16 %v9174_v45, %v9128_v16 }
 0x32f   :  { %v6377_v21 = vpop.eup %6376  ;;  %v3178_v38 = vadd.f32 1.0, %v6375_v54  ;;  %v3369_v39 = vpack.c.bf16 %v3305_v51, %v3301_v52  ;;  %v9238_v52 = vmul.f32 %v3176_v27, %v9098_v7  ;;  %v5854_v7 = vld [vmem:[%s9681_s7 + $0x50] sm:$0xff]   ;;  %v9844_v27 = vpack.c.bf16 %v9804_v4, %v9803_v43 }
 0x330   :  { %v3180_v30 = vadd.f32 1.0, %v6377_v21  ;;  %v3371_v20 = vpack.c.bf16 %v9219_v48, %v9187_v55  ;;  %v5852_v21 = vld [vmem:[%s9681_s7 + $0x48] sm:$0xff]   ;;  %v5862_v43 = vld [vmem:[%s9681_s7 + $0x70] sm:$0xff]   ;;  %v9846_v4 = vpack.c.bf16 %v9808_v47, %v9807_v34  ;;  %v9853_v47 = vld [vmem:[#allocation27_spill] sm:$0xff] }
 0x331   :  { %v3306_v49 = vmul.f32 %v3178_v38, %v9138_v12  ;;  %3942 = vmatmul.mubr.bf16.gmra.mrb[152].mxu0 %v3365_v58  ;;  %v9840_v12 = vpack.c.bf16 %v9802_v14, %v9801_v62  ;;  %5029 = vmatprep.subr.bf16.mxu1 %v5852_v21  ;;  %v5856_v58 = vld [vmem:[%s9681_s7 + $0x58] sm:$0xff]   ;;  %v5858_v14 = vld [vmem:[%s9681_s7 + $0x60] sm:$0xff]   ;;  %v9850_v21 = vld [vmem:[#allocation22_spill] sm:$0xff] }
 0x332   :  { %v3308_v54 = vmul.f32 %v3180_v30, %v9140_v36  ;;  %5030 = vmatpush3.bf16.msra.mxu1 %v5853_v15  ;;  %v5855_v36 = vld [vmem:[%s9681_s7 + $0x10] sm:$0xff]   ;;  %v5857_v38 = vld [vmem:[%s9681_s7 + $0x18] sm:$0xff]   ;;  %v5861_v30 = vld [vmem:[%s9681_s7 + $0x28] sm:$0xff]   ;;  %v9851_v15 = vpack.c.bf16 %v9814_v40, %v9850_v21 }
 0x333   :  { %v3370_v51 = vpack.c.bf16 %v3306_v49, %v3302_v57  ;;  %5031 = vmatprep.subr.bf16.mxu1 %v5854_v7  ;;  %v5859_v57 = vld [vmem:[%s9681_s7 + $0x20] sm:$0xff]   ;;  %v5860_v49 = vld [vmem:[%s9681_s7 + $0x68] sm:$0xff]  }
 0x334   :  { %v3372_v50 = vpack.c.bf16 %v3308_v54, %v9238_v52  ;;  %v9845_v52 = vpack.c.bf16 %v9806_v44, %v9805_v53  ;;  %v5863_v54 = vld [vmem:[%s9681_s7 + $0x30] sm:$0xff]   ;;  %v9849_v44 = vpack.c.bf16 %v9812_v46, %v9811_v29  ;;  %v9852_v34 = vld [vmem:[#allocation29_spill] sm:$0xff] }
 0x335   :  { %3951 = vmatprep.mubr.bf16.mxu0 %v3370_v51  ;;  %v9847_v51 = vld [vmem:[#allocation18_spill] sm:$0xff]  ;;  %v9854_v7 = vpack.c.bf16 %v9852_v34, %v9853_v47  ;;  %v9863_v46 = vld [vmem:[#allocation37_spill] sm:$0xff] }
 0x336   :  { %5032 = vmatpush3.bf16.msra.mxu1 %v5855_v36  ;;  %v9848_v53 = vpack.c.bf16 %v9810_v6, %v9847_v51  ;;  %v9856_v36 = vld [vmem:[#allocation26_spill] sm:$0xff]  ;;  %v9876_v51 = vpack.c.bf16 %v9834_v10, %v9833_v33  ;;  %v9881_v33 = vpack.c.bf16 %v8978_v3, %v8935_v2  ;;  %v5864_v2 = vld [vmem:[%s9681_s7 + $0x78] sm:$0xff]   ;;  %v3437_v3 = vld [vmem:[%s9680_s6] sm:$0x3] }
 0x337   :  { %5033 = vmatprep.subr.bf16.mxu1 %v5856_v58 }
 0x339   :  { %3952 = vmatmul.mubr.bf16.gmra.mrb[156].mxu0 %v3369_v39  ;;  %v9842_v39 = vld [vmem:[#allocation13_spill] sm:$0xff] }
 0x33a   :  { %3994 = vmatprep.mubr.bf16.mxu0 %v9840_v12  ;;  %v9843_v62 = vpack.c.bf16 %v9841_v17, %v9842_v39  ;;  %5034 = vmatpush3.bf16.msra.mxu1 %v5857_v38  ;;  %v9855_v12 = vld [vmem:[#allocation28_spill] sm:$0xff]  ;;  %v9858_v38 = vld [vmem:[#allocation31_spill] sm:$0xff]  ;;  %v9861_v39 = vld [vmem:[#allocation30_spill] sm:$0xff] }
 0x33b   :  { %5035 = vmatprep.subr.bf16.mxu1 %v5858_v14  ;;  %v9857_v58 = vpack.c.bf16 %v9855_v12, %v9856_v36  ;;  %v9859_v6 = vpack.c.bf16 %v9820_v59, %v9858_v38  ;;  %v9860_v17 = vld [vmem:[#allocation32_spill] sm:$0xff] }
 0x33c   :  { %v9862_v29 = vpack.c.bf16 %v9860_v17, %v9861_v39  ;;  %v9866_v14 = vld [vmem:[#allocation36_spill] sm:$0xff] }
 0x33e   :  { %5036 = vmatpush3.bf16.msra.mxu1 %v5859_v57 }
 0x33f   :  { %5037 = vmatprep.subr.bf16.mxu1 %v5860_v49  ;;  %v9869_v49 = vld [vmem:[#allocation41_spill] sm:$0xff] }
 0x341   :  { %3995 = vmatmul.mubr.bf16.vlgmr.msra.gmra.mrb[96].mxu0 %v9843_v62  ;;  %v9864_v62 = vld [vmem:[#allocation35_spill] sm:$0xff] }
 0x342   :  { %4004 = vmatprep.mubr.bf16.mxu0 %v9844_v27  ;;  %5038 = vmatpush3.bf16.msra.mxu1 %v5861_v30  ;;  %v9865_v40 = vpack.c.bf16 %v9863_v46, %v9864_v62  ;;  %v9867_v27 = vld [vmem:[#allocation34_spill] sm:$0xff]  ;;  %v9870_v30 = vld [vmem:[#allocation39_spill] sm:$0xff] }
 0x343   :  { %5039 = vmatprep.subr.bf16.mxu1 %v5862_v43  ;;  %v9868_v57 = vpack.c.bf16 %v9866_v14, %v9867_v27  ;;  %v9872_v43 = vld [vmem:[#allocation40_spill] sm:$0xff] }
 0x346   :  { %5040 = vmatpush3.bf16.msra.mxu1 %v5863_v54  ;;  %v9875_v54 = vpack.c.bf16 %v9832_v41, %v9831_v60  ;;  %v9879_v60 = vpack.c.bf16 %v8910_v32, %v9839_v56  ;;  %v9880_v41 = vpack.c.bf16 %v8988_v22, %v8944_v28  ;;  %v9884_v32 = vpack.c.bf16 %v9118_v61, %v9074_v31  ;;  %v5865_v28 = vld [vmem:[%s9681_s7 + $0x38] sm:$0xff]   ;;  %v9886_v22 = vld [vmem:[#allocation9_spill] sm:$0xff] }
 0x347   :  { %5041 = vmatprep.subr.bf16.mxu1 %v5864_v2 }
 0x349   :  { %4005 = vmatmul.mubr.bf16.gmra.mrb[100].mxu0 %v9845_v52  ;;  %v9871_v52 = vpack.c.bf16 %v9869_v49, %v9870_v30 }
 0x34a   :  { %4014 = vmatprep.mubr.bf16.mxu0 %v9846_v4  ;;  %v9873_v4 = vld [vmem:[#allocation38_spill] sm:$0xff]  ;;  %5042 = vmatpush3.bf16.msra.mxu1 %v5865_v28 }
 0x34b   :  { %v9874_v59 = vpack.c.bf16 %v9872_v43, %v9873_v4 }
 0x351   :  { %4015 = vmatmul.mubr.bf16.gmra.mrb[104].mxu0 %v9848_v53  ;;  %v9877_v53 = vpack.c.bf16 %v9836_v11, %v9835_v26 }
 0x352   :  { %4024 = vmatprep.mubr.bf16.mxu0 %v9849_v44  ;;  %v9878_v44 = vpack.c.bf16 %v8920_v0, %v8894_v25  ;;  %v9883_v25 = vpack.c.bf16 %v9040_v23, %v9003_v9  ;;  %v9885_v0 = vpack.c.bf16 %v9177_v18, %v9167_v35  ;;  %v9381_v9 = vrot.slane %v3437_v3, %v9886_v22 }
 0x353   :  { %v9384_v23 = vrot.slane %v3437_v3, %v9887_v1 }
 0x359   :  { %4025 = vmatmul.mubr.bf16.gmra.mrb[108].mxu0 %v9851_v15 }
 0x35a   :  { %4034 = vmatprep.mubr.bf16.mxu0 %v9854_v7 }
 0x361   :  { %4035 = vmatmul.mubr.bf16.gmra.mrb[112].mxu0 %v9857_v58 }
 0x362   :  { %4044 = vmatprep.mubr.bf16.mxu0 %v9859_v6 }
 0x369   :  { %4045 = vmatmul.mubr.bf16.gmra.mrb[116].mxu0 %v9862_v29 }
 0x36a   :  { %4054 = vmatprep.mubr.bf16.mxu0 %v9865_v40 }
 0x371   :  { %4055 = vmatmul.mubr.bf16.gmra.mrb[120].mxu0 %v9868_v57 }
 0x372   :  { %4064 = vmatprep.mubr.bf16.mxu0 %v9871_v52 }
 0x379   :  { %4065 = vmatmul.mubr.bf16.gmra.mrb[124].mxu0 %v9874_v59 }
 0x37a   :  { %4074 = vmatprep.mubr.bf16.mxu0 %v9875_v54 }
 0x381   :  { %4075 = vmatmul.mubr.bf16.gmra.mrb[128].mxu0 %v9876_v51 }
 0x382   :  { %4084 = vmatprep.mubr.bf16.mxu0 %v9877_v53 }
 0x389   :  { %4085 = vmatmul.mubr.bf16.gmra.mrb[132].mxu0 %v3347_v24 }
 0x38a   :  { %4094 = vmatprep.mubr.bf16.mxu0 %v9878_v44 }
 0x391   :  { %4095 = vmatmul.mubr.bf16.gmra.mrb[136].mxu0 %v9879_v60 }
 0x392   :  { %4104 = vmatprep.mubr.bf16.mxu0 %v9880_v41 }
 0x399   :  { %4105 = vmatmul.mubr.bf16.gmra.mrb[140].mxu0 %v9881_v33 }
 0x39a   :  { %4114 = vmatprep.mubr.bf16.mxu0 %v9882_v63 }
 0x3a1   :  { %4115 = vmatmul.mubr.bf16.gmra.mrb[144].mxu0 %v9883_v25 }
 0x3a2   :  { %4124 = vmatprep.mubr.bf16.mxu0 %v9884_v32 }
 0x3a9   :  { %4125 = vmatmul.mubr.bf16.gmra.mrb[148].mxu0 %v3363_v13 }
 0x3aa   :  { %4134 = vmatprep.mubr.bf16.mxu0 %v9885_v0 }
 0x3b1   :  { %4135 = vmatmul.mubr.bf16.gmra.mrb[152].mxu0 %v3367_v8 }
 0x3b2   :  { %4144 = vmatprep.mubr.bf16.mxu0 %v3372_v50 }
 0x3b9   :  { %4145 = vmatmul.mubr.bf16.gmra.mrb[156].mxu0 %v3371_v20 }
 0x414   :  { %v3996_v42 = vpop.f32.mrb[96].mxu0 }
 0x415   :  { %v5275_v37 = vadd.f32 %v3996_v42, %v9381_v9  ;;  %v3998_v31 = vpop.f32.mrb[97].mxu0 }
 0x416   :  { %v5276_v5 = vadd.f32 %v3998_v31, %v9384_v23  ;;  %v4000_v61 = vpop.f32.mrb[98].mxu0 }
 0x417   :  { %v4155_v16 = vmul.f32 0.5, %v5275_v37  ;;  %v5277_v48 = vadd.f32 %v4000_v61, %v9381_v9  ;;  %v4002_v35 = vpop.f32.mrb[99].mxu0 }
 0x418   :  { %v4156_v20 = vmul.f32 0.5, %v5276_v5  ;;  %v5278_v45 = vadd.f32 %v4002_v35, %v9384_v23 }
 0x419   :  { %6378 = vtanh.f32 %v4155_v16  ;;  %v4157_v18 = vmul.f32 0.5, %v5277_v48 }
 0x41a   :  { %6380 = vtanh.f32 %v4156_v20  ;;  %v4158_v24 = vmul.f32 0.5, %v5278_v45 }
 0x41b   :  { %6382 = vtanh.f32 %v4157_v18 }
 0x41c   :  { %6384 = vtanh.f32 %v4158_v24  ;;  %v4006_v55 = vpop.f32.mrb[100].mxu0 }
 0x41d   :  { %v5279_v10 = vadd.f32 %v4006_v55, %v9381_v9  ;;  %v4008_v26 = vpop.f32.mrb[101].mxu0 }
 0x41e   :  { %v5280_v19 = vadd.f32 %v4008_v26, %v9384_v23  ;;  %v4010_v11 = vpop.f32.mrb[102].mxu0 }
 0x41f   :  { %v4159_v56 = vmul.f32 0.5, %v5279_v10  ;;  %v5281_v13 = vadd.f32 %v4010_v11, %v9381_v9  ;;  %v4012_v50 = vpop.f32.mrb[103].mxu0 }
 0x420   :  { %v4160_v8 = vmul.f32 0.5, %v5280_v19  ;;  %v5282_v21 = vadd.f32 %v4012_v50, %v9384_v23 }
 0x421   :  { %6386 = vtanh.f32 %v4159_v56  ;;  %v4161_v15 = vmul.f32 0.5, %v5281_v13 }
 0x422   :  { %6388 = vtanh.f32 %v4160_v8  ;;  %v4162_v34 = vmul.f32 0.5, %v5282_v21 }
 0x423   :  { %v6379_v47 = vpop.eup %6378  ;;  %6390 = vtanh.f32 %v4161_v15 }
 0x424   :  { %v6381_v7 = vpop.eup %6380  ;;  %v4283_v12 = vadd.f32 1.0, %v6379_v47  ;;  %6392 = vtanh.f32 %v4162_v34  ;;  %v4016_v36 = vpop.f32.mrb[104].mxu0 }
 0x425   :  { %v6383_v58 = vpop.eup %6382  ;;  %v4284_v38 = vadd.f32 1.0, %v6381_v7  ;;  %v5283_v6 = vadd.f32 %v4016_v36, %v9381_v9  ;;  %v4018_v17 = vpop.f32.mrb[105].mxu0 }
 0x426   :  { %v6385_v39 = vpop.eup %6384  ;;  %v4285_v29 = vadd.f32 1.0, %v6383_v58  ;;  %v5284_v46 = vadd.f32 %v4018_v17, %v9384_v23  ;;  %v4020_v62 = vpop.f32.mrb[106].mxu0  ;;  %v4347_v49 = vmul.f32 %v4283_v12, %v4155_v16 }
 0x427   :  { %v4286_v40 = vadd.f32 1.0, %v6385_v39  ;;  %v9396_v14 = vmul.f32 0.5, %v5283_v6  ;;  %v5285_v27 = vadd.f32 %v4020_v62, %v9381_v9  ;;  %v4022_v57 = vpop.f32.mrb[107].mxu0  ;;  %v4348_v4 = vmul.f32 %v4284_v38, %v4156_v20 }
 0x428   :  { %v4349_v30 = vmul.f32 %v4285_v29, %v4157_v18  ;;  %v9399_v52 = vmul.f32 0.5, %v5284_v46  ;;  %v5286_v43 = vadd.f32 %v4022_v57, %v9384_v23 }
 0x429   :  { %v4350_v59 = vmul.f32 %v4286_v40, %v4158_v24  ;;  %6394 = vtanh.f32 %v9396_v14  ;;  %v4165_v54 = vmul.f32 0.5, %v5285_v27 }
 0x42a   :  { %v4411_v51 = vpack.c.bf16 %v4349_v30, %v4347_v49  ;;  %6396 = vtanh.f32 %v9399_v52  ;;  %v4166_v53 = vmul.f32 0.5, %v5286_v43 }
 0x42b   :  { %v6387_v44 = vpop.eup %6386  ;;  %6398 = vtanh.f32 %v4165_v54  ;;  %v4412_v60 = vpack.c.bf16 %v4350_v59, %v4348_v4 }
 0x42c   :  { %v6389_v41 = vpop.eup %6388  ;;  %v4287_v33 = vadd.f32 1.0, %v6387_v44  ;;  %6400 = vtanh.f32 %v4166_v53  ;;  %v4026_v63 = vpop.f32.mrb[108].mxu0 }
 0x42d   :  { %v6391_v25 = vpop.eup %6390  ;;  %v4288_v32 = vadd.f32 1.0, %v6389_v41  ;;  %v5287_v0 = vadd.f32 %v4026_v63, %v9381_v9  ;;  %v4028_v2 = vpop.f32.mrb[109].mxu0  ;;  %4603 = vmatprep.mubr.bf16.mxu1 %v4412_v60 }
 0x42e   :  { %v6393_v28 = vpop.eup %6392  ;;  %v4289_v3 = vadd.f32 1.0, %v6391_v25  ;;  %v5288_v22 = vadd.f32 %v4028_v2, %v9384_v23  ;;  %v4030_v1 = vpop.f32.mrb[110].mxu0  ;;  %4604 = vmatmul.mubr.bf16.vlgmr.msra.gmra.mrb[160].mxu1 %v4411_v51  ;;  %v4351_v61 = vmul.f32 %v4287_v33, %v4159_v56 }
 0x42f   :  { %v4290_v42 = vadd.f32 1.0, %v6393_v28  ;;  %v9406_v37 = vmul.f32 0.5, %v5287_v0  ;;  %v5289_v31 = vadd.f32 %v4030_v1, %v9381_v9  ;;  %v4032_v5 = vpop.f32.mrb[111].mxu0  ;;  %v4352_v20 = vmul.f32 %v4288_v32, %v4160_v8 }
 0x430   :  { %v4353_v16 = vmul.f32 %v4289_v3, %v4161_v15  ;;  %v9409_v48 = vmul.f32 0.5, %v5288_v22  ;;  %v5290_v35 = vadd.f32 %v4032_v5, %v9384_v23 }
 0x431   :  { %v4354_v45 = vmul.f32 %v4290_v42, %v4162_v34  ;;  %6402 = vtanh.f32 %v9406_v37  ;;  %v4169_v18 = vmul.f32 0.5, %v5289_v31 }
 0x432   :  { %6404 = vtanh.f32 %v9409_v48  ;;  %v4170_v24 = vmul.f32 0.5, %v5290_v35  ;;  %v4413_v55 = vpack.c.bf16 %v4353_v16, %v4351_v61 }
 0x433   :  { %v6395_v10 = vpop.eup %6394  ;;  %6406 = vtanh.f32 %v4169_v18  ;;  %v4414_v26 = vpack.c.bf16 %v4354_v45, %v4352_v20 }
 0x434   :  { %v6397_v19 = vpop.eup %6396  ;;  %v4291_v11 = vadd.f32 1.0, %v6395_v10  ;;  %6408 = vtanh.f32 %v4170_v24  ;;  %v4036_v56 = vpop.f32.mrb[112].mxu0 }
 0x435   :  { %v6399_v13 = vpop.eup %6398  ;;  %v4292_v50 = vadd.f32 1.0, %v6397_v19  ;;  %v5291_v21 = vadd.f32 %v4036_v56, %v9381_v9  ;;  %v4038_v8 = vpop.f32.mrb[113].mxu0  ;;  %4611 = vmatprep.mubr.bf16.mxu1 %v4414_v26 }
 0x436   :  { %v6401_v15 = vpop.eup %6400  ;;  %v4293_v34 = vadd.f32 1.0, %v6399_v13  ;;  %v5292_v47 = vadd.f32 %v4038_v8, %v9384_v23  ;;  %v4040_v7 = vpop.f32.mrb[114].mxu0  ;;  %4612 = vmatmul.mubr.bf16.gmra.mrb[164].mxu1 %v4413_v55  ;;  %v4355_v6 = vmul.f32 %v4291_v11, %v9396_v14 }
 0x437   :  { %v4294_v12 = vadd.f32 1.0, %v6401_v15  ;;  %v9416_v36 = vmul.f32 0.5, %v5291_v21  ;;  %v5293_v58 = vadd.f32 %v4040_v7, %v9381_v9  ;;  %v4042_v38 = vpop.f32.mrb[115].mxu0  ;;  %v4356_v46 = vmul.f32 %v4292_v50, %v9399_v52 }
 0x438   :  { %v4357_v17 = vmul.f32 %v4293_v34, %v4165_v54  ;;  %v9420_v39 = vmul.f32 0.5, %v5292_v47  ;;  %v5294_v29 = vadd.f32 %v4042_v38, %v9384_v23 }
 0x439   :  { %v4358_v62 = vmul.f32 %v4294_v12, %v4166_v53  ;;  %6410 = vtanh.f32 %v9416_v36  ;;  %v4173_v40 = vmul.f32 0.5, %v5293_v58 }
 0x43a   :  { %6412 = vtanh.f32 %v9420_v39  ;;  %v4174_v27 = vmul.f32 0.5, %v5294_v29  ;;  %v4415_v57 = vpack.c.bf16 %v4357_v17, %v4355_v6 }
 0x43b   :  { %v6403_v49 = vpop.eup %6402  ;;  %6414 = vtanh.f32 %v4173_v40  ;;  %v4416_v30 = vpack.c.bf16 %v4358_v62, %v4356_v46 }
 0x43c   :  { %v6405_v43 = vpop.eup %6404  ;;  %v4295_v14 = vadd.f32 1.0, %v6403_v49  ;;  %6416 = vtanh.f32 %v4174_v27  ;;  %v4046_v4 = vpop.f32.mrb[116].mxu0 }
 0x43d   :  { %v6407_v59 = vpop.eup %6406  ;;  %v4296_v54 = vadd.f32 1.0, %v6405_v43  ;;  %v5295_v51 = vadd.f32 %v4046_v4, %v9381_v9  ;;  %v4048_v52 = vpop.f32.mrb[117].mxu0  ;;  %4619 = vmatprep.mubr.bf16.mxu1 %v4416_v30 }
 0x43e   :  { %v6409_v53 = vpop.eup %6408  ;;  %v4297_v44 = vadd.f32 1.0, %v6407_v59  ;;  %v5296_v60 = vadd.f32 %v4048_v52, %v9384_v23  ;;  %v4050_v41 = vpop.f32.mrb[118].mxu0  ;;  %4620 = vmatmul.mubr.bf16.gmra.mrb[168].mxu1 %v4415_v57  ;;  %v4359_v0 = vmul.f32 %v4295_v14, %v9406_v37 }
 0x43f   :  { %v4298_v33 = vadd.f32 1.0, %v6409_v53  ;;  %v9428_v63 = vmul.f32 0.5, %v5295_v51  ;;  %v5297_v25 = vadd.f32 %v4050_v41, %v9381_v9  ;;  %v4052_v32 = vpop.f32.mrb[119].mxu0  ;;  %v4360_v22 = vmul.f32 %v4296_v54, %v9409_v48 }
 0x440   :  { %v4361_v2 = vmul.f32 %v4297_v44, %v4169_v18  ;;  %v9432_v28 = vmul.f32 0.5, %v5296_v60  ;;  %v5298_v3 = vadd.f32 %v4052_v32, %v9384_v23 }
 0x441   :  { %v4362_v1 = vmul.f32 %v4298_v33, %v4170_v24  ;;  %6418 = vtanh.f32 %v9428_v63  ;;  %v4177_v42 = vmul.f32 0.5, %v5297_v25 }
 0x442   :  { %6420 = vtanh.f32 %v9432_v28  ;;  %v4178_v31 = vmul.f32 0.5, %v5298_v3  ;;  %v4417_v5 = vpack.c.bf16 %v4361_v2, %v4359_v0 }
 0x443   :  { %v6411_v61 = vpop.eup %6410  ;;  %6422 = vtanh.f32 %v4177_v42  ;;  %v4418_v16 = vpack.c.bf16 %v4362_v1, %v4360_v22 }
 0x444   :  { %v6413_v35 = vpop.eup %6412  ;;  %v4299_v37 = vadd.f32 1.0, %v6411_v61  ;;  %6424 = vtanh.f32 %v4178_v31  ;;  %v4056_v20 = vpop.f32.mrb[120].mxu0 }
 0x445   :  { %v6415_v45 = vpop.eup %6414  ;;  %v4300_v18 = vadd.f32 1.0, %v6413_v35  ;;  %v5299_v55 = vadd.f32 %v4056_v20, %v9381_v9  ;;  %v4058_v48 = vpop.f32.mrb[121].mxu0  ;;  %4627 = vmatprep.mubr.bf16.mxu1 %v4418_v16 }
 0x446   :  { %v6417_v24 = vpop.eup %6416  ;;  %v4301_v10 = vadd.f32 1.0, %v6415_v45  ;;  %v5300_v26 = vadd.f32 %v4058_v48, %v9384_v23  ;;  %v4060_v19 = vpop.f32.mrb[122].mxu0  ;;  %4628 = vmatmul.mubr.bf16.gmra.mrb[172].mxu1 %v4417_v5  ;;  %v4363_v21 = vmul.f32 %v4299_v37, %v9416_v36 }
 0x447   :  { %v4302_v11 = vadd.f32 1.0, %v6417_v24  ;;  %v9440_v56 = vmul.f32 0.5, %v5299_v55  ;;  %v5301_v13 = vadd.f32 %v4060_v19, %v9381_v9  ;;  %v4062_v50 = vpop.f32.mrb[123].mxu0  ;;  %v4364_v47 = vmul.f32 %v4300_v18, %v9420_v39 }
 0x448   :  { %v4365_v8 = vmul.f32 %v4301_v10, %v4173_v40  ;;  %v9444_v15 = vmul.f32 0.5, %v5300_v26  ;;  %v5302_v34 = vadd.f32 %v4062_v50, %v9384_v23 }
 0x449   :  { %v4366_v7 = vmul.f32 %v4302_v11, %v4174_v27  ;;  %6426 = vtanh.f32 %v9440_v56  ;;  %v4181_v12 = vmul.f32 0.5, %v5301_v13 }
 0x44a   :  { %6428 = vtanh.f32 %v9444_v15  ;;  %v4182_v58 = vmul.f32 0.5, %v5302_v34  ;;  %v4419_v38 = vpack.c.bf16 %v4365_v8, %v4363_v21 }
 0x44b   :  { %v6419_v6 = vpop.eup %6418  ;;  %6430 = vtanh.f32 %v4181_v12  ;;  %v4420_v17 = vpack.c.bf16 %v4366_v7, %v4364_v47 }
 0x44c   :  { %v6421_v29 = vpop.eup %6420  ;;  %v4303_v36 = vadd.f32 1.0, %v6419_v6  ;;  %6432 = vtanh.f32 %v4182_v58  ;;  %v4066_v46 = vpop.f32.mrb[124].mxu0 }
 0x44d   :  { %v6423_v62 = vpop.eup %6422  ;;  %v4304_v40 = vadd.f32 1.0, %v6421_v29  ;;  %v5303_v57 = vadd.f32 %v4066_v46, %v9381_v9  ;;  %v4068_v39 = vpop.f32.mrb[125].mxu0  ;;  %4635 = vmatprep.mubr.bf16.mxu1 %v4420_v17 }
 0x44e   :  { %v6425_v27 = vpop.eup %6424  ;;  %v4305_v49 = vadd.f32 1.0, %v6423_v62  ;;  %v5304_v30 = vadd.f32 %v4068_v39, %v9384_v23  ;;  %v4070_v43 = vpop.f32.mrb[126].mxu0  ;;  %4636 = vmatmul.mubr.bf16.gmra.mrb[176].mxu1 %v4419_v38  ;;  %v4367_v51 = vmul.f32 %v4303_v36, %v9428_v63 }
 0x44f   :  { %v4306_v14 = vadd.f32 1.0, %v6425_v27  ;;  %v9452_v4 = vmul.f32 0.5, %v5303_v57  ;;  %v5305_v59 = vadd.f32 %v4070_v43, %v9381_v9  ;;  %v4072_v54 = vpop.f32.mrb[127].mxu0  ;;  %v4368_v60 = vmul.f32 %v4304_v40, %v9432_v28 }
 0x450   :  { %v4369_v52 = vmul.f32 %v4305_v49, %v4177_v42  ;;  %v9456_v53 = vmul.f32 0.5, %v5304_v30  ;;  %v5306_v44 = vadd.f32 %v4072_v54, %v9384_v23 }
 0x451   :  { %v4370_v41 = vmul.f32 %v4306_v14, %v4178_v31  ;;  %6434 = vtanh.f32 %v9452_v4  ;;  %v4185_v33 = vmul.f32 0.5, %v5305_v59 }
 0x452   :  { %6436 = vtanh.f32 %v9456_v53  ;;  %v4186_v25 = vmul.f32 0.5, %v5306_v44  ;;  %v4421_v32 = vpack.c.bf16 %v4369_v52, %v4367_v51 }
 0x453   :  { %v6427_v0 = vpop.eup %6426  ;;  %6438 = vtanh.f32 %v4185_v33  ;;  %v4422_v2 = vpack.c.bf16 %v4370_v41, %v4368_v60 }
 0x454   :  { %v6429_v3 = vpop.eup %6428  ;;  %v4307_v63 = vadd.f32 1.0, %v6427_v0  ;;  %6440 = vtanh.f32 %v4186_v25  ;;  %v4076_v22 = vpop.f32.mrb[128].mxu0 }
 0x455   :  { %v6431_v1 = vpop.eup %6430  ;;  %v4308_v42 = vadd.f32 1.0, %v6429_v3  ;;  %v5307_v5 = vadd.f32 %v4076_v22, %v9381_v9  ;;  %v4078_v28 = vpop.f32.mrb[129].mxu0  ;;  %4643 = vmatprep.mubr.bf16.mxu1 %v4422_v2 }
 0x456   :  { %v6433_v31 = vpop.eup %6432  ;;  %v4309_v61 = vadd.f32 1.0, %v6431_v1  ;;  %v5308_v16 = vadd.f32 %v4078_v28, %v9384_v23  ;;  %v4080_v35 = vpop.f32.mrb[130].mxu0  ;;  %4644 = vmatmul.mubr.bf16.gmra.mrb[180].mxu1 %v4421_v32  ;;  %v4371_v55 = vmul.f32 %v4307_v63, %v9440_v56 }
 0x457   :  { %v4310_v37 = vadd.f32 1.0, %v6433_v31  ;;  %v9464_v20 = vmul.f32 0.5, %v5307_v5  ;;  %v5309_v45 = vadd.f32 %v4080_v35, %v9381_v9  ;;  %v4082_v18 = vpop.f32.mrb[131].mxu0  ;;  %v4372_v26 = vmul.f32 %v4308_v42, %v9444_v15 }
 0x458   :  { %v4373_v48 = vmul.f32 %v4309_v61, %v4181_v12  ;;  %v9468_v24 = vmul.f32 0.5, %v5308_v16  ;;  %v5310_v10 = vadd.f32 %v4082_v18, %v9384_v23 }
 0x459   :  { %v4374_v19 = vmul.f32 %v4310_v37, %v4182_v58  ;;  %6442 = vtanh.f32 %v9464_v20  ;;  %v4189_v11 = vmul.f32 0.5, %v5309_v45 }
 0x45a   :  { %6444 = vtanh.f32 %v9468_v24  ;;  %v4190_v13 = vmul.f32 0.5, %v5310_v10  ;;  %v4423_v50 = vpack.c.bf16 %v4373_v48, %v4371_v55 }
 0x45b   :  { %v6435_v21 = vpop.eup %6434  ;;  %6446 = vtanh.f32 %v4189_v11  ;;  %v4424_v8 = vpack.c.bf16 %v4374_v19, %v4372_v26 }
 0x45c   :  { %v6437_v34 = vpop.eup %6436  ;;  %v4311_v56 = vadd.f32 1.0, %v6435_v21  ;;  %6448 = vtanh.f32 %v4190_v13  ;;  %v4086_v47 = vpop.f32.mrb[132].mxu0 }
 0x45d   :  { %v6439_v7 = vpop.eup %6438  ;;  %v4312_v12 = vadd.f32 1.0, %v6437_v34  ;;  %v5311_v38 = vadd.f32 %v4086_v47, %v9381_v9  ;;  %v4088_v15 = vpop.f32.mrb[133].mxu0  ;;  %4651 = vmatprep.mubr.bf16.mxu1 %v4424_v8 }
 0x45e   :  { %v6441_v58 = vpop.eup %6440  ;;  %v4313_v6 = vadd.f32 1.0, %v6439_v7  ;;  %v5312_v17 = vadd.f32 %v4088_v15, %v9384_v23  ;;  %v4090_v29 = vpop.f32.mrb[134].mxu0  ;;  %4652 = vmatmul.mubr.bf16.gmra.mrb[184].mxu1 %v4423_v50  ;;  %v4375_v57 = vmul.f32 %v4311_v56, %v9452_v4 }
 0x45f   :  { %v4314_v36 = vadd.f32 1.0, %v6441_v58  ;;  %v9476_v46 = vmul.f32 0.5, %v5311_v38  ;;  %v5313_v62 = vadd.f32 %v4090_v29, %v9381_v9  ;;  %v4092_v40 = vpop.f32.mrb[135].mxu0  ;;  %v4376_v30 = vmul.f32 %v4312_v12, %v9456_v53 }
 0x460   :  { %v4377_v39 = vmul.f32 %v4313_v6, %v4185_v33  ;;  %v9480_v27 = vmul.f32 0.5, %v5312_v17  ;;  %v5314_v49 = vadd.f32 %v4092_v40, %v9384_v23 }
 0x461   :  { %v4378_v43 = vmul.f32 %v4314_v36, %v4186_v25  ;;  %6450 = vtanh.f32 %v9476_v46  ;;  %v4193_v14 = vmul.f32 0.5, %v5313_v62 }
 0x462   :  { %6452 = vtanh.f32 %v9480_v27  ;;  %v4194_v59 = vmul.f32 0.5, %v5314_v49  ;;  %v4425_v54 = vpack.c.bf16 %v4377_v39, %v4375_v57 }
 0x463   :  { %v6443_v51 = vpop.eup %6442  ;;  %6454 = vtanh.f32 %v4193_v14  ;;  %v4426_v52 = vpack.c.bf16 %v4378_v43, %v4376_v30 }
 0x464   :  { %v6445_v44 = vpop.eup %6444  ;;  %v4315_v4 = vadd.f32 1.0, %v6443_v51  ;;  %6456 = vtanh.f32 %v4194_v59  ;;  %v4096_v60 = vpop.f32.mrb[136].mxu0 }
 0x465   :  { %v6447_v41 = vpop.eup %6446  ;;  %v4316_v33 = vadd.f32 1.0, %v6445_v44  ;;  %v5315_v32 = vadd.f32 %v4096_v60, %v9381_v9  ;;  %v4098_v53 = vpop.f32.mrb[137].mxu0  ;;  %4659 = vmatprep.mubr.bf16.mxu1 %v4426_v52 }
 0x466   :  { %v6449_v25 = vpop.eup %6448  ;;  %v4317_v0 = vadd.f32 1.0, %v6447_v41  ;;  %v5316_v2 = vadd.f32 %v4098_v53, %v9384_v23  ;;  %v4100_v3 = vpop.f32.mrb[138].mxu0  ;;  %4660 = vmatmul.mubr.bf16.gmra.mrb[188].mxu1 %v4425_v54  ;;  %v4379_v5 = vmul.f32 %v4315_v4, %v9464_v20 }
 0x467   :  { %v4318_v63 = vadd.f32 1.0, %v6449_v25  ;;  %v9488_v22 = vmul.f32 0.5, %v5315_v32  ;;  %v5317_v1 = vadd.f32 %v4100_v3, %v9381_v9  ;;  %v4102_v42 = vpop.f32.mrb[139].mxu0  ;;  %v4380_v16 = vmul.f32 %v4316_v33, %v9468_v24 }
 0x468   :  { %v4381_v28 = vmul.f32 %v4317_v0, %v4189_v11  ;;  %v9492_v31 = vmul.f32 0.5, %v5316_v2  ;;  %v5318_v61 = vadd.f32 %v4102_v42, %v9384_v23 }
 0x469   :  { %v4382_v35 = vmul.f32 %v4318_v63, %v4190_v13  ;;  %6458 = vtanh.f32 %v9488_v22  ;;  %v4197_v37 = vmul.f32 0.5, %v5317_v1 }
 0x46a   :  { %6460 = vtanh.f32 %v9492_v31  ;;  %v4198_v45 = vmul.f32 0.5, %v5318_v61  ;;  %v4427_v18 = vpack.c.bf16 %v4381_v28, %v4379_v5 }
 0x46b   :  { %v6451_v55 = vpop.eup %6450  ;;  %6462 = vtanh.f32 %v4197_v37  ;;  %v4428_v48 = vpack.c.bf16 %v4382_v35, %v4380_v16 }
 0x46c   :  { %v6453_v10 = vpop.eup %6452  ;;  %v4319_v20 = vadd.f32 1.0, %v6451_v55  ;;  %6464 = vtanh.f32 %v4198_v45  ;;  %v4106_v26 = vpop.f32.mrb[140].mxu0 }
 0x46d   :  { %v6455_v19 = vpop.eup %6454  ;;  %v4320_v11 = vadd.f32 1.0, %v6453_v10  ;;  %v5319_v50 = vadd.f32 %v4106_v26, %v9381_v9  ;;  %v4108_v24 = vpop.f32.mrb[141].mxu0  ;;  %4667 = vmatprep.mubr.bf16.mxu1 %v4428_v48 }
 0x46e   :  { %v6457_v13 = vpop.eup %6456  ;;  %v4321_v21 = vadd.f32 1.0, %v6455_v19  ;;  %v5320_v8 = vadd.f32 %v4108_v24, %v9384_v23  ;;  %v4110_v34 = vpop.f32.mrb[142].mxu0  ;;  %4668 = vmatmul.mubr.bf16.gmra.mrb[192].mxu1 %v4427_v18  ;;  %v4383_v38 = vmul.f32 %v4319_v20, %v9476_v46 }
 0x46f   :  { %v4322_v56 = vadd.f32 1.0, %v6457_v13  ;;  %v9500_v47 = vmul.f32 0.5, %v5319_v50  ;;  %v5321_v7 = vadd.f32 %v4110_v34, %v9381_v9  ;;  %v4112_v12 = vpop.f32.mrb[143].mxu0  ;;  %v4384_v17 = vmul.f32 %v4320_v11, %v9480_v27 }
 0x470   :  { %v4385_v15 = vmul.f32 %v4321_v21, %v4193_v14  ;;  %v9504_v58 = vmul.f32 0.5, %v5320_v8  ;;  %v5322_v6 = vadd.f32 %v4112_v12, %v9384_v23 }
 0x471   :  { %v4386_v29 = vmul.f32 %v4322_v56, %v4194_v59  ;;  %6466 = vtanh.f32 %v9500_v47  ;;  %v4201_v36 = vmul.f32 0.5, %v5321_v7 }
 0x472   :  { %6468 = vtanh.f32 %v9504_v58  ;;  %v4202_v62 = vmul.f32 0.5, %v5322_v6  ;;  %v4429_v40 = vpack.c.bf16 %v4385_v15, %v4383_v38 }
 0x473   :  { %v6459_v57 = vpop.eup %6458  ;;  %6470 = vtanh.f32 %v4201_v36  ;;  %v4430_v39 = vpack.c.bf16 %v4386_v29, %v4384_v17 }
 0x474   :  { %v6461_v49 = vpop.eup %6460  ;;  %v4323_v46 = vadd.f32 1.0, %v6459_v57  ;;  %6472 = vtanh.f32 %v4202_v62  ;;  %v4116_v30 = vpop.f32.mrb[144].mxu0 }
 0x475   :  { %v6463_v43 = vpop.eup %6462  ;;  %v4324_v14 = vadd.f32 1.0, %v6461_v49  ;;  %v5323_v54 = vadd.f32 %v4116_v30, %v9381_v9  ;;  %v4118_v27 = vpop.f32.mrb[145].mxu0  ;;  %4675 = vmatprep.mubr.bf16.mxu1 %v4430_v39 }
 0x476   :  { %v6465_v59 = vpop.eup %6464  ;;  %v4325_v51 = vadd.f32 1.0, %v6463_v43  ;;  %v5324_v52 = vadd.f32 %v4118_v27, %v9384_v23  ;;  %v4120_v44 = vpop.f32.mrb[146].mxu0  ;;  %4676 = vmatmul.mubr.bf16.gmra.mrb[196].mxu1 %v4429_v40  ;;  %v4387_v32 = vmul.f32 %v4323_v46, %v9488_v22 }
 0x477   :  { %v4326_v4 = vadd.f32 1.0, %v6465_v59  ;;  %v9512_v60 = vmul.f32 0.5, %v5323_v54  ;;  %v5325_v41 = vadd.f32 %v4120_v44, %v9381_v9  ;;  %v4122_v33 = vpop.f32.mrb[147].mxu0  ;;  %v4388_v2 = vmul.f32 %v4324_v14, %v9492_v31 }
 0x478   :  { %v4389_v53 = vmul.f32 %v4325_v51, %v4197_v37  ;;  %v9516_v25 = vmul.f32 0.5, %v5324_v52  ;;  %v5326_v0 = vadd.f32 %v4122_v33, %v9384_v23 }
 0x479   :  { %v4390_v3 = vmul.f32 %v4326_v4, %v4198_v45  ;;  %6474 = vtanh.f32 %v9512_v60  ;;  %v4205_v63 = vmul.f32 0.5, %v5325_v41 }
 0x47a   :  { %6476 = vtanh.f32 %v9516_v25  ;;  %v4206_v1 = vmul.f32 0.5, %v5326_v0  ;;  %v4431_v42 = vpack.c.bf16 %v4389_v53, %v4387_v32 }
 0x47b   :  { %v6467_v5 = vpop.eup %6466  ;;  %6478 = vtanh.f32 %v4205_v63  ;;  %v4432_v28 = vpack.c.bf16 %v4390_v3, %v4388_v2 }
 0x47c   :  { %v6469_v61 = vpop.eup %6468  ;;  %v4327_v22 = vadd.f32 1.0, %v6467_v5  ;;  %6480 = vtanh.f32 %v4206_v1  ;;  %v4126_v16 = vpop.f32.mrb[148].mxu0 }
 0x47d   :  { %v6471_v35 = vpop.eup %6470  ;;  %v4328_v37 = vadd.f32 1.0, %v6469_v61  ;;  %v5327_v18 = vadd.f32 %v4126_v16, %v9381_v9  ;;  %v4128_v31 = vpop.f32.mrb[149].mxu0  ;;  %4683 = vmatprep.mubr.bf16.mxu1 %v4432_v28 }
 0x47e   :  { %v6473_v45 = vpop.eup %6472  ;;  %v4329_v55 = vadd.f32 1.0, %v6471_v35  ;;  %v5328_v48 = vadd.f32 %v4128_v31, %v9384_v23  ;;  %v4130_v10 = vpop.f32.mrb[150].mxu0  ;;  %4684 = vmatmul.mubr.bf16.gmra.mrb[200].mxu1 %v4431_v42  ;;  %v4391_v50 = vmul.f32 %v4327_v22, %v9500_v47 }
 0x47f   :  { %v4330_v20 = vadd.f32 1.0, %v6473_v45  ;;  %v9524_v26 = vmul.f32 0.5, %v5327_v18  ;;  %v5329_v19 = vadd.f32 %v4130_v10, %v9381_v9  ;;  %v4132_v11 = vpop.f32.mrb[151].mxu0  ;;  %v4392_v8 = vmul.f32 %v4328_v37, %v9504_v58 }
 0x480   :  { %v4393_v24 = vmul.f32 %v4329_v55, %v4201_v36  ;;  %v9528_v13 = vmul.f32 0.5, %v5328_v48  ;;  %v5330_v21 = vadd.f32 %v4132_v11, %v9384_v23 }
 0x481   :  { %v4394_v34 = vmul.f32 %v4330_v20, %v4202_v62  ;;  %6482 = vtanh.f32 %v9524_v26  ;;  %v4209_v56 = vmul.f32 0.5, %v5329_v19 }
 0x482   :  { %6484 = vtanh.f32 %v9528_v13  ;;  %v4210_v7 = vmul.f32 0.5, %v5330_v21  ;;  %v4433_v12 = vpack.c.bf16 %v4393_v24, %v4391_v50 }
 0x483   :  { %v6475_v38 = vpop.eup %6474  ;;  %6486 = vtanh.f32 %v4209_v56  ;;  %v4434_v15 = vpack.c.bf16 %v4394_v34, %v4392_v8 }
 0x484   :  { %v6477_v6 = vpop.eup %6476  ;;  %v4331_v47 = vadd.f32 1.0, %v6475_v38  ;;  %6488 = vtanh.f32 %v4210_v7  ;;  %v4136_v17 = vpop.f32.mrb[152].mxu0 }
 0x485   :  { %v6479_v29 = vpop.eup %6478  ;;  %v4332_v36 = vadd.f32 1.0, %v6477_v6  ;;  %v5331_v40 = vadd.f32 %v4136_v17, %v9381_v9  ;;  %v4138_v58 = vpop.f32.mrb[153].mxu0  ;;  %4691 = vmatprep.mubr.bf16.mxu1 %v4434_v15 }
 0x486   :  { %v6481_v62 = vpop.eup %6480  ;;  %v4333_v57 = vadd.f32 1.0, %v6479_v29  ;;  %v5332_v39 = vadd.f32 %v4138_v58, %v9384_v23  ;;  %v4140_v49 = vpop.f32.mrb[154].mxu0  ;;  %4692 = vmatmul.mubr.bf16.gmra.mrb[204].mxu1 %v4433_v12  ;;  %v4395_v54 = vmul.f32 %v4331_v47, %v9512_v60 }
 0x487   :  { %v4334_v46 = vadd.f32 1.0, %v6481_v62  ;;  %v4211_v30 = vmul.f32 0.5, %v5331_v40  ;;  %v5333_v43 = vadd.f32 %v4140_v49, %v9381_v9  ;;  %v4142_v14 = vpop.f32.mrb[155].mxu0  ;;  %v4396_v52 = vmul.f32 %v4332_v36, %v9516_v25 }
 0x488   :  { %v4397_v27 = vmul.f32 %v4333_v57, %v4205_v63  ;;  %v4212_v59 = vmul.f32 0.5, %v5332_v39  ;;  %v5334_v51 = vadd.f32 %v4142_v14, %v9384_v23 }
 0x489   :  { %v4398_v44 = vmul.f32 %v4334_v46, %v4206_v1  ;;  %6490 = vtanh.f32 %v4211_v30  ;;  %v4213_v4 = vmul.f32 0.5, %v5333_v43 }
 0x48a   :  { %6492 = vtanh.f32 %v4212_v59  ;;  %v4214_v41 = vmul.f32 0.5, %v5334_v51  ;;  %v4435_v33 = vpack.c.bf16 %v4397_v27, %v4395_v54 }
 0x48b   :  { %v6483_v32 = vpop.eup %6482  ;;  %6494 = vtanh.f32 %v4213_v4  ;;  %v4436_v53 = vpack.c.bf16 %v4398_v44, %v4396_v52 }
 0x48c   :  { %v6485_v0 = vpop.eup %6484  ;;  %v4335_v2 = vadd.f32 1.0, %v6483_v32  ;;  %6496 = vtanh.f32 %v4214_v41  ;;  %v4146_v3 = vpop.f32.mrb[156].mxu0 }
 0x48d   :  { %v6487_v60 = vpop.eup %6486  ;;  %v4336_v63 = vadd.f32 1.0, %v6485_v0  ;;  %v5335_v42 = vadd.f32 %v4146_v3, %v9381_v9  ;;  %v4148_v5 = vpop.f32.mrb[157].mxu0  ;;  %4699 = vmatprep.mubr.bf16.mxu1 %v4436_v53 }
 0x48e   :  { %v6489_v25 = vpop.eup %6488  ;;  %v4337_v1 = vadd.f32 1.0, %v6487_v60  ;;  %v5336_v28 = vadd.f32 %v4148_v5, %v9384_v23  ;;  %v4150_v61 = vpop.f32.mrb[158].mxu0  ;;  %4700 = vmatmul.mubr.bf16.gmra.mrb[208].mxu1 %v4435_v33  ;;  %v4399_v18 = vmul.f32 %v4335_v2, %v9524_v26 }
 0x48f   :  { %v4338_v22 = vadd.f32 1.0, %v6489_v25  ;;  %v4215_v16 = vmul.f32 0.5, %v5335_v42  ;;  %v5337_v35 = vadd.f32 %v4150_v61, %v9381_v9  ;;  %v4152_v37 = vpop.f32.mrb[159].mxu0  ;;  %v4400_v48 = vmul.f32 %v4336_v63, %v9528_v13 }
 0x490   :  { %v4401_v31 = vmul.f32 %v4337_v1, %v4209_v56  ;;  %v4216_v45 = vmul.f32 0.5, %v5336_v28  ;;  %v5338_v55 = vadd.f32 %v4152_v37, %v9384_v23 }
 0x491   :  { %v4402_v10 = vmul.f32 %v4338_v22, %v4210_v7  ;;  %6498 = vtanh.f32 %v4215_v16  ;;  %v4217_v20 = vmul.f32 0.5, %v5337_v35 }
 0x492   :  { %6500 = vtanh.f32 %v4216_v45  ;;  %v4218_v19 = vmul.f32 0.5, %v5338_v55  ;;  %v4437_v11 = vpack.c.bf16 %v4401_v31, %v4399_v18 }
 0x493   :  { %v6491_v50 = vpop.eup %6490  ;;  %6502 = vtanh.f32 %v4217_v20  ;;  %v4438_v24 = vpack.c.bf16 %v4402_v10, %v4400_v48 }
 0x494   :  { %v6493_v21 = vpop.eup %6492  ;;  %v4339_v9 = vadd.f32 1.0, %v6491_v50  ;;  %6504 = vtanh.f32 %v4218_v19 }
 0x495   :  { %v6495_v8 = vpop.eup %6494  ;;  %v4340_v26 = vadd.f32 1.0, %v6493_v21  ;;  %4707 = vmatprep.mubr.bf16.mxu1 %v4438_v24 }
 0x496   :  { %v6497_v34 = vpop.eup %6496  ;;  %v4341_v56 = vadd.f32 1.0, %v6495_v8  ;;  %4708 = vmatmul.mubr.bf16.gmra.mrb[212].mxu1 %v4437_v11  ;;  %v4403_v13 = vmul.f32 %v4339_v9, %v4211_v30 }
 0x497   :  { %v4342_v23 = vadd.f32 1.0, %v6497_v34  ;;  %v4404_v12 = vmul.f32 %v4340_v26, %v4212_v59 }
 0x498   :  { %v4405_v7 = vmul.f32 %v4341_v56, %v4213_v4 }
 0x499   :  { %v4406_v38 = vmul.f32 %v4342_v23, %v4214_v41 }
 0x49a   :  { %v4439_v15 = vpack.c.bf16 %v4405_v7, %v4403_v13 }
 0x49b   :  { %v6499_v6 = vpop.eup %6498  ;;  %v4440_v47 = vpack.c.bf16 %v4406_v38, %v4404_v12 }
 0x49c   :  { %v6501_v17 = vpop.eup %6500  ;;  %v4343_v29 = vadd.f32 1.0, %v6499_v6 }
 0x49d   :  { %v6503_v36 = vpop.eup %6502  ;;  %v4344_v40 = vadd.f32 1.0, %v6501_v17  ;;  %4715 = vmatprep.mubr.bf16.mxu1 %v4440_v47 }
 0x49e   :  { %v6505_v58 = vpop.eup %6504  ;;  %v4345_v62 = vadd.f32 1.0, %v6503_v36  ;;  %4716 = vmatmul.mubr.bf16.gmra.mrb[216].mxu1 %v4439_v15  ;;  %v4407_v39 = vmul.f32 %v4343_v29, %v4215_v16 }
 0x49f   :  { %v4346_v57 = vadd.f32 1.0, %v6505_v58  ;;  %v4408_v46 = vmul.f32 %v4344_v40, %v4216_v45 }
 0x4a0   :  { %v4409_v49 = vmul.f32 %v4345_v62, %v4217_v20 }
 0x4a1   :  { %v4410_v43 = vmul.f32 %v4346_v57, %v4218_v19 }
 0x4a2   :  { %v4441_v30 = vpack.c.bf16 %v4409_v49, %v4407_v39 }
 0x4a3   :  { %v4442_v14 = vpack.c.bf16 %v4410_v43, %v4408_v46 }
 0x4a5   :  { %4723 = vmatprep.mubr.bf16.mxu1 %v4442_v14 }
 0x4a6   :  { %4724 = vmatmul.mubr.bf16.gmra.mrb[220].mxu1 %v4441_v30 }
 0x501   :  { %v5043_v54 = vpop.f32.mrb[160].mxu1 }
 0x502   :  { %v5044_v27 = vpop.f32.mrb[161].mxu1 }
 0x503   :  { %v5045_v59 = vadd.f32 %v5044_v27, %v5043_v54  ;;  %v5046_v51 = vpop.f32.mrb[162].mxu1 }
 0x504   :  { %v5047_v52 = vpop.f32.mrb[163].mxu1 }
 0x505   :  { %4733 = vst.msk [vmem:[%s9682_s8] sm:$0xff] %vm4732_vm1, %v5045_v59  ;;  %v5048_v44 = vadd.f32 %v5047_v52, %v5046_v51 }
 0x507   :  { %4734 = vst.msk [vmem:[%s9682_s8 + $0x8] sm:$0xff] %vm4732_vm1, %v5048_v44 }
 0x509   :  { %v5049_v4 = vpop.f32.mrb[164].mxu1 }
 0x50a   :  { %v5050_v41 = vpop.f32.mrb[165].mxu1 }
 0x50b   :  { %v5051_v33 = vadd.f32 %v5050_v41, %v5049_v4  ;;  %v5052_v32 = vpop.f32.mrb[166].mxu1 }
 0x50c   :  { %v5053_v53 = vpop.f32.mrb[167].mxu1 }
 0x50d   :  { %4735 = vst.msk [vmem:[%s9682_s8 + $0x10] sm:$0xff] %vm4732_vm1, %v5051_v33  ;;  %v5054_v0 = vadd.f32 %v5053_v53, %v5052_v32 }
 0x50f   :  { %4736 = vst.msk [vmem:[%s9682_s8 + $0x18] sm:$0xff] %vm4732_vm1, %v5054_v0 }
 0x511   :  { %v5055_v2 = vpop.f32.mrb[168].mxu1 }
 0x512   :  { %v5056_v3 = vpop.f32.mrb[169].mxu1 }
 0x513   :  { %v5057_v60 = vadd.f32 %v5056_v3, %v5055_v2  ;;  %v5058_v63 = vpop.f32.mrb[170].mxu1 }
 0x514   :  { %v5059_v42 = vpop.f32.mrb[171].mxu1 }
 0x515   :  { %4737 = vst.msk [vmem:[%s9682_s8 + $0x20] sm:$0xff] %vm4732_vm1, %v5057_v60  ;;  %v5060_v5 = vadd.f32 %v5059_v42, %v5058_v63 }
 0x517   :  { %4738 = vst.msk [vmem:[%s9682_s8 + $0x28] sm:$0xff] %vm4732_vm1, %v5060_v5 }
 0x519   :  { %v5061_v25 = vpop.f32.mrb[172].mxu1 }
 0x51a   :  { %v5062_v1 = vpop.f32.mrb[173].mxu1 }
 0x51b   :  { %v5063_v28 = vadd.f32 %v5062_v1, %v5061_v25  ;;  %v5064_v61 = vpop.f32.mrb[174].mxu1 }
 0x51c   :  { %v5065_v22 = vpop.f32.mrb[175].mxu1 }
 0x51d   :  { %4739 = vst.msk [vmem:[%s9682_s8 + $0x30] sm:$0xff] %vm4732_vm1, %v5063_v28  ;;  %v5066_v16 = vadd.f32 %v5065_v22, %v5064_v61 }
 0x51f   :  { %4740 = vst.msk [vmem:[%s9682_s8 + $0x38] sm:$0xff] %vm4732_vm1, %v5066_v16 }
 0x521   :  { %v5067_v35 = vpop.f32.mrb[176].mxu1 }
 0x522   :  { %v5068_v37 = vpop.f32.mrb[177].mxu1 }
 0x523   :  { %v5069_v18 = vadd.f32 %v5068_v37, %v5067_v35  ;;  %v5070_v31 = vpop.f32.mrb[178].mxu1 }
 0x524   :  { %v5071_v45 = vpop.f32.mrb[179].mxu1 }
 0x525   :  { %4741 = vst.msk [vmem:[%s9682_s8 + $0x40] sm:$0xff] %vm4732_vm1, %v5069_v18  ;;  %v5072_v55 = vadd.f32 %v5071_v45, %v5070_v31 }
 0x527   :  { %4742 = vst.msk [vmem:[%s9682_s8 + $0x48] sm:$0xff] %vm4732_vm1, %v5072_v55 }
 0x529   :  { %v5073_v48 = vpop.f32.mrb[180].mxu1 }
 0x52a   :  { %v5074_v10 = vpop.f32.mrb[181].mxu1 }
 0x52b   :  { %v5075_v20 = vadd.f32 %v5074_v10, %v5073_v48  ;;  %v5076_v19 = vpop.f32.mrb[182].mxu1 }
 0x52c   :  { %v5077_v11 = vpop.f32.mrb[183].mxu1 }
 0x52d   :  { %4743 = vst.msk [vmem:[%s9682_s8 + $0x50] sm:$0xff] %vm4732_vm1, %v5075_v20  ;;  %v5078_v50 = vadd.f32 %v5077_v11, %v5076_v19 }
 0x52f   :  { %4744 = vst.msk [vmem:[%s9682_s8 + $0x58] sm:$0xff] %vm4732_vm1, %v5078_v50 }
 0x531   :  { %v5079_v24 = vpop.f32.mrb[184].mxu1 }
 0x532   :  { %v5080_v21 = vpop.f32.mrb[185].mxu1 }
 0x533   :  { %v5081_v9 = vadd.f32 %v5080_v21, %v5079_v24  ;;  %v5082_v8 = vpop.f32.mrb[186].mxu1 }
 0x534   :  { %v5083_v26 = vpop.f32.mrb[187].mxu1 }
 0x535   :  { %4745 = vst.msk [vmem:[%s9682_s8 + $0x60] sm:$0xff] %vm4732_vm1, %v5081_v9  ;;  %v5084_v34 = vadd.f32 %v5083_v26, %v5082_v8 }
 0x537   :  { %4746 = vst.msk [vmem:[%s9682_s8 + $0x68] sm:$0xff] %vm4732_vm1, %v5084_v34 }
 0x539   :  { %v5085_v56 = vpop.f32.mrb[188].mxu1 }
 0x53a   :  { %v5086_v23 = vpop.f32.mrb[189].mxu1 }
 0x53b   :  { %v5087_v13 = vadd.f32 %v5086_v23, %v5085_v56  ;;  %v5088_v7 = vpop.f32.mrb[190].mxu1 }
 0x53c   :  { %v5089_v12 = vpop.f32.mrb[191].mxu1 }
 0x53d   :  { %4747 = vst.msk [vmem:[%s9682_s8 + $0x70] sm:$0xff] %vm4732_vm1, %v5087_v13  ;;  %v5090_v38 = vadd.f32 %v5089_v12, %v5088_v7 }
 0x53f   :  { %4748 = vst.msk [vmem:[%s9682_s8 + $0x78] sm:$0xff] %vm4732_vm1, %v5090_v38 }
 0x541   :  { %v5091_v15 = vpop.f32.mrb[192].mxu1 }
 0x542   :  { %v5092_v6 = vpop.f32.mrb[193].mxu1 }
 0x543   :  { %v5093_v47 = vadd.f32 %v5092_v6, %v5091_v15  ;;  %v5094_v17 = vpop.f32.mrb[194].mxu1 }
 0x544   :  { %v5095_v29 = vpop.f32.mrb[195].mxu1 }
 0x545   :  { %4749 = vst.msk [vmem:[%s9682_s8 + $0x80] sm:$0xff] %vm4732_vm1, %v5093_v47  ;;  %v5096_v36 = vadd.f32 %v5095_v29, %v5094_v17 }
 0x547   :  { %4750 = vst.msk [vmem:[%s9682_s8 + $0x88] sm:$0xff] %vm4732_vm1, %v5096_v36 }
 0x549   :  { %v5097_v40 = vpop.f32.mrb[196].mxu1 }
 0x54a   :  { %v5098_v58 = vpop.f32.mrb[197].mxu1 }
 0x54b   :  { %v5099_v62 = vadd.f32 %v5098_v58, %v5097_v40  ;;  %v5100_v57 = vpop.f32.mrb[198].mxu1 }
 0x54c   :  { %v5101_v39 = vpop.f32.mrb[199].mxu1 }
 0x54d   :  { %4751 = vst.msk [vmem:[%s9682_s8 + $0x90] sm:$0xff] %vm4732_vm1, %v5099_v62  ;;  %v5102_v49 = vadd.f32 %v5101_v39, %v5100_v57 }
 0x54f   :  { %4752 = vst.msk [vmem:[%s9682_s8 + $0x98] sm:$0xff] %vm4732_vm1, %v5102_v49 }
 0x551   :  { %v5103_v46 = vpop.f32.mrb[200].mxu1 }
 0x552   :  { %v5104_v43 = vpop.f32.mrb[201].mxu1 }
 0x553   :  { %v5105_v30 = vadd.f32 %v5104_v43, %v5103_v46  ;;  %v5106_v14 = vpop.f32.mrb[202].mxu1 }
 0x554   :  { %v5107_v54 = vpop.f32.mrb[203].mxu1 }
 0x555   :  { %4753 = vst.msk [vmem:[%s9682_s8 + $0xa0] sm:$0xff] %vm4732_vm1, %v5105_v30  ;;  %v5108_v27 = vadd.f32 %v5107_v54, %v5106_v14 }
 0x557   :  { %4754 = vst.msk [vmem:[%s9682_s8 + $0xa8] sm:$0xff] %vm4732_vm1, %v5108_v27 }
 0x559   :  { %v5109_v59 = vpop.f32.mrb[204].mxu1 }
 0x55a   :  { %v5110_v51 = vpop.f32.mrb[205].mxu1 }
 0x55b   :  { %v5111_v52 = vadd.f32 %v5110_v51, %v5109_v59  ;;  %v5112_v44 = vpop.f32.mrb[206].mxu1 }
 0x55c   :  { %v5113_v4 = vpop.f32.mrb[207].mxu1 }
 0x55d   :  { %4755 = vst.msk [vmem:[%s9682_s8 + $0xb0] sm:$0xff] %vm4732_vm1, %v5111_v52  ;;  %v5114_v41 = vadd.f32 %v5113_v4, %v5112_v44 }
 0x55f   :  { %4756 = vst.msk [vmem:[%s9682_s8 + $0xb8] sm:$0xff] %vm4732_vm1, %v5114_v41 }
 0x561   :  { %v5115_v33 = vpop.f32.mrb[208].mxu1 }
 0x562   :  { %v5116_v32 = vpop.f32.mrb[209].mxu1 }
 0x563   :  { %v5117_v53 = vadd.f32 %v5116_v32, %v5115_v33  ;;  %v5118_v0 = vpop.f32.mrb[210].mxu1 }
 0x564   :  { %v5119_v2 = vpop.f32.mrb[211].mxu1 }
 0x565   :  { %4757 = vst.msk [vmem:[%s9682_s8 + $0xc0] sm:$0xff] %vm4732_vm1, %v5117_v53  ;;  %v5120_v3 = vadd.f32 %v5119_v2, %v5118_v0 }
 0x567   :  { %4758 = vst.msk [vmem:[%s9682_s8 + $0xc8] sm:$0xff] %vm4732_vm1, %v5120_v3 }
 0x569   :  { %v5121_v60 = vpop.f32.mrb[212].mxu1 }
 0x56a   :  { %v5122_v63 = vpop.f32.mrb[213].mxu1 }
 0x56b   :  { %v5123_v42 = vadd.f32 %v5122_v63, %v5121_v60  ;;  %v5124_v5 = vpop.f32.mrb[214].mxu1 }
 0x56c   :  { %v5125_v25 = vpop.f32.mrb[215].mxu1 }
 0x56d   :  { %4759 = vst.msk [vmem:[%s9682_s8 + $0xd0] sm:$0xff] %vm4732_vm1, %v5123_v42  ;;  %v5126_v1 = vadd.f32 %v5125_v25, %v5124_v5 }
 0x56f   :  { %4760 = vst.msk [vmem:[%s9682_s8 + $0xd8] sm:$0xff] %vm4732_vm1, %v5126_v1 }
 0x571   :  { %v5127_v28 = vpop.f32.mrb[216].mxu1 }
 0x572   :  { %v5128_v61 = vpop.f32.mrb[217].mxu1 }
 0x573   :  { %v5129_v22 = vadd.f32 %v5128_v61, %v5127_v28  ;;  %v5130_v16 = vpop.f32.mrb[218].mxu1 }
 0x574   :  { %v5131_v35 = vpop.f32.mrb[219].mxu1 }
 0x575   :  { %4761 = vst.msk [vmem:[%s9682_s8 + $0xe0] sm:$0xff] %vm4732_vm1, %v5129_v22  ;;  %v5132_v37 = vadd.f32 %v5131_v35, %v5130_v16 }
 0x577   :  { %4762 = vst.msk [vmem:[%s9682_s8 + $0xe8] sm:$0xff] %vm4732_vm1, %v5132_v37 }
 0x579   :  { %v5133_v18 = vpop.f32.mrb[220].mxu1 }
 0x57a   :  { %v5134_v31 = vpop.f32.mrb[221].mxu1 }
 0x57b   :  { %v5135_v45 = vadd.f32 %v5134_v31, %v5133_v18  ;;  %v5136_v55 = vpop.f32.mrb[222].mxu1 }
 0x57c   :  { %v5137_v48 = vpop.f32.mrb[223].mxu1 }
 0x57d   :  { %4763 = vst.msk [vmem:[%s9682_s8 + $0xf0] sm:$0xff] %vm4732_vm1, %v5135_v45  ;;  %v5138_v10 = vadd.f32 %v5137_v48, %v5136_v55 }
 0x57f   :  { %4764 = vst.msk [vmem:[%s9682_s8 + $0xf8] sm:$0xff] %vm4732_vm1, %v5138_v10 }
 0x580   :  { %4769 = vsyncpa [#allocation3], 1 }
 0x581   :  { %4770 = vsyncpa [#allocation5], 1 }

</bundles_post_ra>
